<compile_context>
chip_gen: v6e
topology: v6e:2x2x1
jax: 0.10.0
libtpu: 0.0.40
codegen_flags: <defaults>
</compile_context>

<pallas_src>
import functools

import jax
import jax.numpy as jnp
from jax.experimental import pallas as pl
from jax.experimental.pallas import tpu as pltpu


# --------------------------------------------------------------------------
# Pallas kernels
# --------------------------------------------------------------------------
def _gemm_bias_kernel(x_ref, w_ref, b_ref, o_ref, *, relu):
    # bf16 x bf16 -> f32 accumulation on the MXU; epilogue kept in f32 (fast
    # VPU path on all generations, incl. v5e which has no bf16 VALU).
    acc = jnp.dot(x_ref[...], w_ref[...], preferred_element_type=jnp.float32)
    acc = acc + b_ref[...]
    if relu:
        acc = jnp.maximum(acc, 0.0)
    o_ref[...] = acc


def _maxpool_kernel(p_ref, o_ref):
    # p_ref: (k*k, M', 128) -> elementwise max over the window axis.
    o_ref[...] = jnp.max(p_ref[...], axis=0)


# --------------------------------------------------------------------------
# Pallas wrappers
# --------------------------------------------------------------------------
def _choose_tm(M, K, requested=None):
    """Pick an M-tile: honor `requested` if it divides M and is 8-aligned,
    else use the whole M when small, else the largest 8-aligned divisor that
    keeps the bf16 LHS block under ~1 MiB (VMEM safety for large batches)."""
    if requested and requested <= M and M % requested == 0 and requested % 8 == 0:
        return requested
    cap = max(8, (1 << 20) // max(2 * K, 1))
    if M <= cap:
        return M
    t = (min(cap, M) // 8) * 8
    while t >= 8:
        if M % t == 0:
            return t
        t -= 8
    return M


def fused_gemm(x, w, bias, relu=False, tm=None):
    """out = relu?( (x @ w) + bias ), bf16 MXU operands, f32 accumulate/output."""
    M, K = x.shape
    Kw, N = w.shape
    assert K == Kw
    tm = _choose_tm(M, K, tm)
    grid = (M // tm,)

    bias2 = bias.reshape(1, N).astype(jnp.float32)
    kernel = functools.partial(_gemm_bias_kernel, relu=relu)

    return pl.pallas_call(
        kernel,
        out_shape=jax.ShapeDtypeStruct((M, N), jnp.float32),
        grid=grid,
        in_specs=[
            pl.BlockSpec((tm, K), lambda i: (i, 0)),
            pl.BlockSpec((K, N), lambda i: (0, 0)),
            pl.BlockSpec((1, N), lambda i: (0, 0)),
        ],
        out_specs=pl.BlockSpec((tm, N), lambda i: (i, 0)),
        compiler_params=pltpu.CompilerParams(
            dimension_semantics=("parallel",)),
    )(x.astype(jnp.bfloat16), w.astype(jnp.bfloat16), bias2)


def maxpool_from_patches(patches):
    """patches: (k*k, M, C) -> (M, C) max over window axis (lane-dense)."""
    KK, M, C = patches.shape
    p = patches.astype(jnp.float32)
    if (M * C) % 128 == 0:
        # Contiguous reshape: the reduction is elementwise over the (M, C)
        # plane, so folding it to 128-wide lanes avoids masked partial stores.
        p = p.reshape(KK, (M * C) // 128, 128)
    out = pl.pallas_call(
        _maxpool_kernel,
        out_shape=jax.ShapeDtypeStruct(p.shape[1:], jnp.float32),
        grid=(1,),
        in_specs=[pl.BlockSpec(p.shape, lambda i: (0, 0, 0))],
        out_specs=pl.BlockSpec(p.shape[1:], lambda i: (0, 0)),
    )(p)
    return out.reshape(M, C)


# --------------------------------------------------------------------------
# JAX glue: im2col / layout helpers
# --------------------------------------------------------------------------
def _window_slices(xp, k, s, Ho, Wo):
    cols = []
    for di in range(k):
        for dj in range(k):
            cols.append(xp[:, di:di + (Ho - 1) * s + 1:s,
                              dj:dj + (Wo - 1) * s + 1:s, :])
    return cols


def im2col(x, k, s, p):
    """x: (N,H,W,C) -> ((N*Ho*Wo, k*k*C), (N, Ho, Wo)) in (kh, kw, Cin) order."""
    N, H, W, C = x.shape
    xp = jnp.pad(x, ((0, 0), (p, p), (p, p), (0, 0)))
    Hp, Wp = H + 2 * p, W + 2 * p
    Ho = (Hp - k) // s + 1
    Wo = (Wp - k) // s + 1
    cols = _window_slices(xp, k, s, Ho, Wo)
    patches = jnp.stack(cols, axis=3)            # (N, Ho, Wo, k*k, C)
    return patches.reshape(N * Ho * Wo, k * k * C), (N, Ho, Wo)


def pool_patches(x, k, s, p):
    """x: (N,H,W,C) -> ((k*k, N*Ho*Wo, C), (N, Ho, Wo)), -inf padded."""
    N, H, W, C = x.shape
    xp = jnp.pad(x, ((0, 0), (p, p), (p, p), (0, 0)),
                 constant_values=-jnp.inf)
    Hp, Wp = H + 2 * p, W + 2 * p
    Ho = (Hp - k) // s + 1
    Wo = (Wp - k) // s + 1
    cols = _window_slices(xp, k, s, Ho, Wo)
    patches = jnp.stack(cols, axis=0)            # (k*k, N, Ho, Wo, C)
    return patches.reshape(k * k, N * Ho * Wo, C), (N, Ho, Wo)


def conv_w_to_gemm(w):
    """PyTorch (Cout, Cin, kh, kw) -> (kh*kw*Cin, Cout)."""
    Cout, Cin, kh, kw = w.shape
    return jnp.transpose(w, (2, 3, 1, 0)).reshape(kh * kw * Cin, Cout)


def bn_fold(gamma, beta, rm, rv, eps=1e-5):
    scale = gamma / jnp.sqrt(rv + eps)
    bias = beta - rm * scale
    return scale, bias


# --------------------------------------------------------------------------
# Parameters (deterministic, matching nn.Module __init__ shapes / init scheme)
# --------------------------------------------------------------------------
def kaiming_normal_fan_out(key, shape):
    cout, _cin, kh, kw = shape
    fan_out = cout * kh * kw
    std = (2.0 / fan_out) ** 0.5
    return jax.random.normal(key, shape, jnp.float32) * std


def init_params(key, num_classes=10):
    ks = jax.random.split(key, 8)
    p = {}
    p["conv1_w"] = kaiming_normal_fan_out(ks[0], (32, 1, 7, 7))
    p["conv2_w"] = kaiming_normal_fan_out(ks[1], (64, 32, 3, 3))
    p["conv3_w"] = kaiming_normal_fan_out(ks[2], (128, 64, 3, 3))
    p["ds1_w"] = kaiming_normal_fan_out(ks[3], (64, 32, 1, 1))
    p["ds2_w"] = kaiming_normal_fan_out(ks[4], (128, 64, 1, 1))
    # BatchNorm2d: weight=1, bias=0, running_mean=0, running_var=1 (eval mode)
    for name, c in [("bn1", 32), ("bn2", 64), ("bn3", 128),
                    ("bnd1", 64), ("bnd2", 128)]:
        p[name + "_g"] = jnp.ones((c,), jnp.float32)
        p[name + "_b"] = jnp.zeros((c,), jnp.float32)
        p[name + "_rm"] = jnp.zeros((c,), jnp.float32)
        p[name + "_rv"] = jnp.ones((c,), jnp.float32)
    # nn.Linear default init: U(-1/sqrt(fan_in), 1/sqrt(fan_in))
    fan_in = 4608
    bound = 1.0 / (fan_in ** 0.5)
    p["fc_w"] = jax.random.uniform(ks[5], (fan_in, num_classes),
                                   jnp.float32, -bound, bound)
    p["fc_b"] = jax.random.uniform(ks[6], (num_classes,),
                                   jnp.float32, -bound, bound)
    return p


def prepare_params(p):
    """One-time weight preprocessing: GEMM layout transpose, BN-scale fold into
    W, K-concatenation of the fused (conv | 1x1-downsample) GEMMs, bf16 cast,
    and FC-weight row permutation so the flatten can stay in NHWC order."""
    gp = {}

    s1, b1 = bn_fold(p["bn1_g"], p["bn1_b"], p["bn1_rm"], p["bn1_rv"])
    gp["w1"] = (conv_w_to_gemm(p["conv1_w"]) * s1[None, :]).astype(jnp.bfloat16)
    gp["b1"] = b1.astype(jnp.float32)

    s2, b2 = bn_fold(p["bn2_g"], p["bn2_b"], p["bn2_rm"], p["bn2_rv"])
    sd1, bd1 = bn_fold(p["bnd1_g"], p["bnd1_b"], p["bnd1_rm"], p["bnd1_rv"])
    w2 = conv_w_to_gemm(p["conv2_w"]) * s2[None, :]
    wd1 = conv_w_to_gemm(p["ds1_w"]) * sd1[None, :]
    gp["w2"] = jnp.concatenate([w2, wd1], axis=0).astype(jnp.bfloat16)
    gp["b2"] = (b2 + bd1).astype(jnp.float32)

    s3, b3 = bn_fold(p["bn3_g"], p["bn3_b"], p["bn3_rm"], p["bn3_rv"])
    sd2, bd2 = bn_fold(p["bnd2_g"], p["bnd2_b"], p["bnd2_rm"], p["bnd2_rv"])
    w3 = conv_w_to_gemm(p["conv3_w"]) * s3[None, :]
    wd2 = conv_w_to_gemm(p["ds2_w"]) * sd2[None, :]
    gp["w3"] = jnp.concatenate([w3, wd2], axis=0).astype(jnp.bfloat16)
    gp["b3"] = (b3 + bd2).astype(jnp.float32)

    # torch.flatten flattens NCHW; we keep activations NHWC and permute the FC
    # weight rows once instead: row (c*HW + hw) -> (hw*C + c).
    C3 = p["conv3_w"].shape[0]                       # 128
    K_fc, n_cls = p["fc_w"].shape                    # (4608, num_classes)
    HW3 = K_fc // C3                                 # 36
    gp["fc_w"] = (p["fc_w"].reshape(C3, HW3, n_cls)
                  .transpose(1, 0, 2).reshape(K_fc, n_cls).astype(jnp.float32))
    gp["fc_b"] = p["fc_b"].astype(jnp.float32)
    return gp


# --------------------------------------------------------------------------
# Forward pass
# --------------------------------------------------------------------------
def mynet_forward(x_nchw, gp):
    N = x_nchw.shape[0]
    x = jnp.transpose(x_nchw, (0, 2, 3, 1)).astype(jnp.bfloat16)   # NHWC bf16

    # conv1 (1->32, k7 s2 p3) + bn1 + relu   (2 parallel M-blocks -> v7x megacore)
    cols, (_, Ho, Wo) = im2col(x, 7, 2, 3)
    y = fused_gemm(cols, gp["w1"], gp["b1"], relu=True, tm=cols.shape[0] // 2)
    y = y.reshape(N, Ho, Wo, 32)                                   # (N,48,48,32)

    # maxpool k3 s2 p1  (lane-dense Pallas reduction)
    pp, (_, Ho, Wo) = pool_patches(y, 3, 2, 1)
    y = maxpool_from_patches(pp).reshape(N, Ho, Wo, 32)            # (N,24,24,32)

    # conv2+bn2 and downsample1 (1x1 s2 conv + bn) fused into ONE GEMM via
    # K-concat: conv2(x)+ds1(x) == [im2col(x) | x[::2,::2]] @ [[W2],[Wd1]] + (b2+bd1)
    yb = y.astype(jnp.bfloat16)
    cols, (_, Ho, Wo) = im2col(yb, 3, 2, 1)
    ds_in = yb[:, ::2, ::2, :].reshape(-1, 32)
    y = fused_gemm(jnp.concatenate([cols, ds_in], axis=1),
                   gp["w2"], gp["b2"], relu=True)
    y = y.reshape(N, Ho, Wo, 64)                                   # (N,12,12,64)

    # conv3+bn3 and downsample2 fused the same way, then relu
    yb = y.astype(jnp.bfloat16)
    cols, (_, Ho, Wo) = im2col(yb, 3, 2, 1)
    ds_in = yb[:, ::2, ::2, :].reshape(-1, 64)
    y = fused_gemm(jnp.concatenate([cols, ds_in], axis=1),
                   gp["w3"], gp["b3"], relu=True)                  # (N*6*6, 128)

    # flatten: contiguous NHWC reshape (FC rows were pre-permuted to match
    # torch.flatten of NCHW).  dropout(0.4) is eval-mode identity.
    # TODO(synk): training-mode stochastic dropout masking not implemented.
    flat = y.reshape(N, -1)                                        # (N, 4608)

    # fc: tiny (N x 4608 x num_classes) GEMV -> plain XLA dot per perf review
    # (a pallas_call's launch + DMA overhead exceeds the compute here).
    return flat @ gp["fc_w"] + gp["fc_b"]


if __name__ == "__main__":
    key = jax.random.PRNGKey(0)
    k_x, k_p = jax.random.split(key)
    # fc(4608) implies a 96x96 single-channel input (96 ->48 ->24 ->12 ->6, 128*6*6=4608)
    x = jax.random.normal(k_x, (2, 1, 96, 96), jnp.float32)
    params = init_params(k_p, num_classes=10)
    gemm_params = prepare_params(params)          # one-time weight preprocessing

    fwd = jax.jit(mynet_forward)
    out = fwd(x, gemm_params)
    jax.block_until_ready(out)
    assert out.shape == (2, 10), out.shape
    print("KERNEL_OK")
</pallas_src>

<mosaic_0001>
module attributes {stable_mosaic.version = 11 : i64} {
  func.func @_gemm_bias_kernel(%arg0: i32, %arg1: memref<2304x49xbf16, #tpu.memory_space<vmem>>, %arg2: memref<49x32xbf16, #tpu.memory_space<vmem>>, %arg3: memref<1x32xf32, #tpu.memory_space<vmem>>, %arg4: memref<2304x32xf32, #tpu.memory_space<vmem>>) attributes {dimension_semantics = [#tpu.dimension_semantics<parallel>], iteration_bounds = array<i64: 2>, scalar_prefetch = 0 : i64, scratch_operands = 0 : i64, tpu.core_type = #tpu.core_type<tc>, window_params = [{transform_indices = @transform_0, window_bounds = array<i64: 2304, 49>}, {pipeline_mode = #tpu.pipeline_mode<synchronous>, transform_indices = @transform_1, window_bounds = array<i64: 49, 32>}, {pipeline_mode = #tpu.pipeline_mode<synchronous>, transform_indices = @transform_2, window_bounds = array<i64: 1, 32>}, {transform_indices = @transform_3, window_bounds = array<i64: 2304, 32>}]} {
    %c0 = arith.constant 0 : index
    %c0_0 = arith.constant 0 : index
    %0 = vector.load %arg1[%c0, %c0_0] : memref<2304x49xbf16, #tpu.memory_space<vmem>>, vector<2304x49xbf16>
    %c0_1 = arith.constant 0 : index
    %c0_2 = arith.constant 0 : index
    %1 = vector.load %arg2[%c0_1, %c0_2] : memref<49x32xbf16, #tpu.memory_space<vmem>>, vector<49x32xbf16>
    %cst = arith.constant dense<0.000000e+00> : vector<2304x32xf32>
    %2 = tpu.matmul %0, %1, %cst {dimension_numbers = #tpu.dot_dimension_numbers<[1], [0], [0], [1], [0, 0, 1, 1], [], []>} : vector<2304x49xbf16>, vector<49x32xbf16>, vector<2304x32xf32> -> vector<2304x32xf32>
    %c0_3 = arith.constant 0 : index
    %c0_4 = arith.constant 0 : index
    %3 = vector.load %arg3[%c0_3, %c0_4] : memref<1x32xf32, #tpu.memory_space<vmem>>, vector<1x32xf32>
    %4 = vector.broadcast %3 : vector<1x32xf32> to vector<2304x32xf32>
    %5 = arith.addf %2, %4 : vector<2304x32xf32>
    %cst_5 = arith.constant 0.000000e+00 : f32
    %6 = vector.broadcast %cst_5 : f32 to vector<2304x32xf32>
    %7 = arith.maximumf %5, %6 : vector<2304x32xf32>
    %c0_6 = arith.constant 0 : index
    %c0_7 = arith.constant 0 : index
    %8 = vector.load %arg4[%c0_6, %c0_7] : memref<2304x32xf32, #tpu.memory_space<vmem>>, vector<2304x32xf32>
    tpu.vector_store %arg4[%c0_6, %c0_7], %7 {strides = array<i32>} : memref<2304x32xf32, #tpu.memory_space<vmem>>, vector<2304x32xf32>,
    return
  }
  func.func @transform_0(%arg0: i32) -> (i32, i32) {
    %c0_i32 = arith.constant 0 : i32
    %c0_i32_0 = arith.constant 0 : i32
    return %arg0, %c0_i32 : i32, i32
  }
  func.func @transform_1(%arg0: i32) -> (i32, i32) {
    %c0_i32 = arith.constant 0 : i32
    %c0_i32_0 = arith.constant 0 : i32
    %c0_i32_1 = arith.constant 0 : i32
    return %c0_i32, %c0_i32_0 : i32, i32
  }
  func.func @transform_2(%arg0: i32) -> (i32, i32) {
    %c0_i32 = arith.constant 0 : i32
    %c0_i32_0 = arith.constant 0 : i32
    %c0_i32_1 = arith.constant 0 : i32
    return %c0_i32, %c0_i32_0 : i32, i32
  }
  func.func @transform_3(%arg0: i32) -> (i32, i32) {
    %c0_i32 = arith.constant 0 : i32
    %c0_i32_0 = arith.constant 0 : i32
    return %arg0, %c0_i32 : i32, i32
  }
}

module attributes {stable_mosaic.version = 11 : i64} {
  func.func @_maxpool_kernel(%arg0: i32, %arg1: memref<9x288x128xf32, #tpu.memory_space<vmem>>, %arg2: memref<288x128xf32, #tpu.memory_space<vmem>>) attributes {dimension_semantics = [#tpu.dimension_semantics<arbitrary>], iteration_bounds = array<i64: 1>, scalar_prefetch = 0 : i64, scratch_operands = 0 : i64, tpu.core_type = #tpu.core_type<tc>, window_params = [{pipeline_mode = #tpu.pipeline_mode<synchronous>, transform_indices = @transform_0, window_bounds = array<i64: 9, 288, 128>}, {pipeline_mode = #tpu.pipeline_mode<synchronous>, transform_indices = @transform_1, window_bounds = array<i64: 288, 128>}]} {
    %c0 = arith.constant 0 : index
    %c0_0 = arith.constant 0 : index
    %c0_1 = arith.constant 0 : index
    %0 = vector.load %arg1[%c0, %c0_0, %c0_1] : memref<9x288x128xf32, #tpu.memory_space<vmem>>, vector<9x288x128xf32>
    %cst = arith.constant dense<0xFF800000> : vector<288x128xf32>
    %1 = vector.multi_reduction <maximumf>, %0, %cst [0] : vector<9x288x128xf32> to vector<288x128xf32>
    %c0_2 = arith.constant 0 : index
    %c0_3 = arith.constant 0 : index
    %2 = vector.load %arg2[%c0_2, %c0_3] : memref<288x128xf32, #tpu.memory_space<vmem>>, vector<288x128xf32>
    tpu.vector_store %arg2[%c0_2, %c0_3], %1 {strides = array<i32>} : memref<288x128xf32, #tpu.memory_space<vmem>>, vector<288x128xf32>,
    return
  }
  func.func @transform_0(%arg0: i32) -> (i32, i32, i32) {
    %c0_i32 = arith.constant 0 : i32
    %c0_i32_0 = arith.constant 0 : i32
    %c0_i32_1 = arith.constant 0 : i32
    %c0_i32_2 = arith.constant 0 : i32
    return %c0_i32, %c0_i32_0, %c0_i32_1 : i32, i32, i32
  }
  func.func @transform_1(%arg0: i32) -> (i32, i32) {
    %c0_i32 = arith.constant 0 : i32
    %c0_i32_0 = arith.constant 0 : i32
    %c0_i32_1 = arith.constant 0 : i32
    return %c0_i32, %c0_i32_0 : i32, i32
  }
}

module attributes {stable_mosaic.version = 11 : i64} {
  func.func @_gemm_bias_kernel(%arg0: i32, %arg1: memref<288x320xbf16, #tpu.memory_space<vmem>>, %arg2: memref<320x64xbf16, #tpu.memory_space<vmem>>, %arg3: memref<1x64xf32, #tpu.memory_space<vmem>>, %arg4: memref<288x64xf32, #tpu.memory_space<vmem>>) attributes {dimension_semantics = [#tpu.dimension_semantics<parallel>], iteration_bounds = array<i64: 1>, scalar_prefetch = 0 : i64, scratch_operands = 0 : i64, tpu.core_type = #tpu.core_type<tc>, window_params = [{transform_indices = @transform_0, window_bounds = array<i64: 288, 320>}, {pipeline_mode = #tpu.pipeline_mode<synchronous>, transform_indices = @transform_1, window_bounds = array<i64: 320, 64>}, {pipeline_mode = #tpu.pipeline_mode<synchronous>, transform_indices = @transform_2, window_bounds = array<i64: 1, 64>}, {transform_indices = @transform_3, window_bounds = array<i64: 288, 64>}]} {
    %c0 = arith.constant 0 : index
    %c0_0 = arith.constant 0 : index
    %0 = vector.load %arg1[%c0, %c0_0] : memref<288x320xbf16, #tpu.memory_space<vmem>>, vector<288x320xbf16>
    %c0_1 = arith.constant 0 : index
    %c0_2 = arith.constant 0 : index
    %1 = vector.load %arg2[%c0_1, %c0_2] : memref<320x64xbf16, #tpu.memory_space<vmem>>, vector<320x64xbf16>
    %cst = arith.constant dense<0.000000e+00> : vector<288x64xf32>
    %2 = tpu.matmul %0, %1, %cst {dimension_numbers = #tpu.dot_dimension_numbers<[1], [0], [0], [1], [0, 0, 1, 1], [], []>} : vector<288x320xbf16>, vector<320x64xbf16>, vector<288x64xf32> -> vector<288x64xf32>
    %c0_3 = arith.constant 0 : index
    %c0_4 = arith.constant 0 : index
    %3 = vector.load %arg3[%c0_3, %c0_4] : memref<1x64xf32, #tpu.memory_space<vmem>>, vector<1x64xf32>
    %4 = vector.broadcast %3 : vector<1x64xf32> to vector<288x64xf32>
    %5 = arith.addf %2, %4 : vector<288x64xf32>
    %cst_5 = arith.constant 0.000000e+00 : f32
    %6 = vector.broadcast %cst_5 : f32 to vector<288x64xf32>
    %7 = arith.maximumf %5, %6 : vector<288x64xf32>
    %c0_6 = arith.constant 0 : index
    %c0_7 = arith.constant 0 : index
    %8 = vector.load %arg4[%c0_6, %c0_7] : memref<288x64xf32, #tpu.memory_space<vmem>>, vector<288x64xf32>
    tpu.vector_store %arg4[%c0_6, %c0_7], %7 {strides = array<i32>} : memref<288x64xf32, #tpu.memory_space<vmem>>, vector<288x64xf32>,
    return
  }
  func.func @transform_0(%arg0: i32) -> (i32, i32) {
    %c0_i32 = arith.constant 0 : i32
    %c0_i32_0 = arith.constant 0 : i32
    return %arg0, %c0_i32 : i32, i32
  }
  func.func @transform_1(%arg0: i32) -> (i32, i32) {
    %c0_i32 = arith.constant 0 : i32
    %c0_i32_0 = arith.constant 0 : i32
    %c0_i32_1 = arith.constant 0 : i32
    return %c0_i32, %c0_i32_0 : i32, i32
  }
  func.func @transform_2(%arg0: i32) -> (i32, i32) {
    %c0_i32 = arith.constant 0 : i32
    %c0_i32_0 = arith.constant 0 : i32
    %c0_i32_1 = arith.constant 0 : i32
    return %c0_i32, %c0_i32_0 : i32, i32
  }
  func.func @transform_3(%arg0: i32) -> (i32, i32) {
    %c0_i32 = arith.constant 0 : i32
    %c0_i32_0 = arith.constant 0 : i32
    return %arg0, %c0_i32 : i32, i32
  }
}

module attributes {stable_mosaic.version = 11 : i64} {
  func.func @_gemm_bias_kernel(%arg0: i32, %arg1: memref<72x640xbf16, #tpu.memory_space<vmem>>, %arg2: memref<640x128xbf16, #tpu.memory_space<vmem>>, %arg3: memref<1x128xf32, #tpu.memory_space<vmem>>, %arg4: memref<72x128xf32, #tpu.memory_space<vmem>>) attributes {dimension_semantics = [#tpu.dimension_semantics<parallel>], iteration_bounds = array<i64: 1>, scalar_prefetch = 0 : i64, scratch_operands = 0 : i64, tpu.core_type = #tpu.core_type<tc>, window_params = [{transform_indices = @transform_0, window_bounds = array<i64: 72, 640>}, {pipeline_mode = #tpu.pipeline_mode<synchronous>, transform_indices = @transform_1, window_bounds = array<i64: 640, 128>}, {pipeline_mode = #tpu.pipeline_mode<synchronous>, transform_indices = @transform_2, window_bounds = array<i64: 1, 128>}, {transform_indices = @transform_3, window_bounds = array<i64: 72, 128>}]} {
    %c0 = arith.constant 0 : index
    %c0_0 = arith.constant 0 : index
    %0 = vector.load %arg1[%c0, %c0_0] : memref<72x640xbf16, #tpu.memory_space<vmem>>, vector<72x640xbf16>
    %c0_1 = arith.constant 0 : index
    %c0_2 = arith.constant 0 : index
    %1 = vector.load %arg2[%c0_1, %c0_2] : memref<640x128xbf16, #tpu.memory_space<vmem>>, vector<640x128xbf16>
    %cst = arith.constant dense<0.000000e+00> : vector<72x128xf32>
    %2 = tpu.matmul %0, %1, %cst {dimension_numbers = #tpu.dot_dimension_numbers<[1], [0], [0], [1], [0, 0, 1, 1], [], []>} : vector<72x640xbf16>, vector<640x128xbf16>, vector<72x128xf32> -> vector<72x128xf32>
    %c0_3 = arith.constant 0 : index
    %c0_4 = arith.constant 0 : index
    %3 = vector.load %arg3[%c0_3, %c0_4] : memref<1x128xf32, #tpu.memory_space<vmem>>, vector<1x128xf32>
    %4 = vector.broadcast %3 : vector<1x128xf32> to vector<72x128xf32>
    %5 = arith.addf %2, %4 : vector<72x128xf32>
    %cst_5 = arith.constant 0.000000e+00 : f32
    %6 = vector.broadcast %cst_5 : f32 to vector<72x128xf32>
    %7 = arith.maximumf %5, %6 : vector<72x128xf32>
    %c0_6 = arith.constant 0 : index
    %c0_7 = arith.constant 0 : index
    %8 = vector.load %arg4[%c0_6, %c0_7] : memref<72x128xf32, #tpu.memory_space<vmem>>, vector<72x128xf32>
    tpu.vector_store %arg4[%c0_6, %c0_7], %7 {strides = array<i32>} : memref<72x128xf32, #tpu.memory_space<vmem>>, vector<72x128xf32>,
    return
  }
  func.func @transform_0(%arg0: i32) -> (i32, i32) {
    %c0_i32 = arith.constant 0 : i32
    %c0_i32_0 = arith.constant 0 : i32
    return %arg0, %c0_i32 : i32, i32
  }
  func.func @transform_1(%arg0: i32) -> (i32, i32) {
    %c0_i32 = arith.constant 0 : i32
    %c0_i32_0 = arith.constant 0 : i32
    %c0_i32_1 = arith.constant 0 : i32
    return %c0_i32, %c0_i32_0 : i32, i32
  }
  func.func @transform_2(%arg0: i32) -> (i32, i32) {
    %c0_i32 = arith.constant 0 : i32
    %c0_i32_0 = arith.constant 0 : i32
    %c0_i32_1 = arith.constant 0 : i32
    return %c0_i32, %c0_i32_0 : i32, i32
  }
  func.func @transform_3(%arg0: i32) -> (i32, i32) {
    %c0_i32 = arith.constant 0 : i32
    %c0_i32_0 = arith.constant 0 : i32
    return %arg0, %c0_i32 : i32, i32
  }
}

</mosaic_0001>

<bundles_post_ra>
// kernel: mynet_forward.4
= control target key start
LH: loop header
LB: loop body
LE: loop exit
PB: predicated region body
PF: predicated region fallthrough
CT: control target
= control target key end

     0   :  { %s4417_s12 = smov 0   ;;  %s5621_s0 = inlined_call_operand.vmem [shape: bf16[4608,49], index: 0, kind: input, shape index: {}]   ;;  %s5622_s1 = inlined_call_operand.vmem [shape: bf16[49,32], index: 1, kind: input, shape index: {}]   ;;  %s5623_s2 = inlined_call_operand.vmem [shape: f32[1,32], index: 2, kind: input, shape index: {}]   ;;  %s5624_s3 = inlined_call_operand.vmem [shape: f32[4608,32], index: 3, kind: output, shape index: {}]  }
   0x1 LB: > { %s3475_s13 = sadd.s32 4294967295, %s4394_s12   ;;  %p3479_p0 = scmp.ge.s32.totalorder %s4394_s12, 1  ;;  %s4394_s12 = sphi %s4417_s12, %s13_s12  }
   0x2   : > { %p138_p1 = scmp.lt.s32.totalorder %s4394_s12, 3 }
   0x4   : > { %p139_p2 = pnand %p3479_p0, %p138_p1 }
   0x5   : > { %s162_s18 = smul.u32 (!%p139_p2), 288, %s3475_s13 }
   0x6   : > { %142 = sbr.rel (%p139_p2) target bundleno = 515 (0x203), region = 32 }
   0x7   : > { %p163_p3 = scmp.lt.s32.totalorder (!%p139_p2), %s162_s18, 575 }
   0xb   : > { %v4238_v0 = vld [vmem:[%s5622_s1 + $0x18] ss:$0 sps:$4 sm:$0x11]   ;;  %vm1651_vm0 = vcmask 1040384   ;;  %v4396_v1 = vmov 0   ;;  %v4239_v4 = vld [vmem:[%s5622_s1 + $0x10] sm:$0xff]  }
   0xc   : > { %v1653_v2 = vsel %vm1651_vm0, 65535, %v4396_v1  ;;  %v4240_v5 = vld [vmem:[%s5622_s1 + $0x8] sm:$0xff]   ;;  %s5626_s18 = smov (!%p163_p3, %s162_s18), 575  ;;  %v4241_v6 = vld [vmem:[%s5622_s1] sm:$0xff]   ;;  %vm1218_vm1 = vcmask 400384   ;;  %vm3130_vm2 = vcmask 261120  }
   0xd   : > { %v1655_v3 = vand.u32 %v4238_v0, %v1653_v2  ;;  %s3480_s21 = sshll.u32 %s5626_s18, 2  ;;  %s3481_s29 = sshll.u32 %s5626_s18, 3 }
   0xe   : > { %s4443_s26 = scalar_lea.vmem %s5621_s0, %s3480_s21  ;;  %s4660_s5 = scalar_lea.vmem %s5624_s3, %s3481_s29 }
   0xf   : > { %3925 = vmatprep.subr.bf16.mxu0 %v1655_v3  ;;  %4221 = vmatprep.subr.bf16.mxu1 %v1655_v3  ;;  %v4242_v7 = vld [vmem:[%s4443_s26] sm:$0xff]   ;;  %v4244_v9 = vld [vmem:[%s4443_s26 + $0x8] sm:$0xff]   ;;  %v4246_v11 = vld [vmem:[%s4443_s26 + $0x10] sm:$0xff]  }
  0x10   : > { %3926 = vmatpush3.bf16.msra.mxu0 %v1655_v3  ;;  %4225 = vmatpush3.bf16.msra.mxu1 %v1655_v3  ;;  %v4243_v8 = vld [vmem:[%s4443_s26 + $0x240] sm:$0xff]   ;;  %v4245_v10 = vld [vmem:[%s4443_s26 + $0x248] sm:$0xff]   ;;  %v4247_v12 = vld [vmem:[%s4443_s26 + $0x250] sm:$0xff]  }
  0x11   : > { %3927 = vmatprep.subr.bf16.mxu0 %v4239_v4  ;;  %4222 = vmatprep.subr.bf16.mxu1 %v4239_v4  ;;  %v4248_v13 = vld [vmem:[%s4443_s26 + $0x18] sm:$0xff]   ;;  %v4250_v15 = vld [vmem:[%s4443_s26 + $0x20] sm:$0xff]   ;;  %v4252_v17 = vld [vmem:[%s4443_s26 + $0x28] sm:$0xff]  }
  0x12   : > { %3933 = vmatprep.mubr.msk.bf16.mxu0 %vm1218_vm1, %v4242_v7  ;;  %4077 = vmatprep.mubr.msk.bf16.mxu1 %vm1218_vm1, %v4243_v8  ;;  %v4249_v14 = vld [vmem:[%s4443_s26 + $0x258] sm:$0xff]   ;;  %v4251_v16 = vld [vmem:[%s4443_s26 + $0x260] sm:$0xff]   ;;  %v4253_v18 = vld [vmem:[%s4443_s26 + $0x268] sm:$0xff]  }
  0x13   : > { %v4254_v19 = vld [vmem:[%s4443_s26 + $0x30] sm:$0xff]   ;;  %v4256_v21 = vld [vmem:[%s4443_s26 + $0x38] sm:$0xff]   ;;  %v4258_v23 = vld [vmem:[%s4443_s26 + $0x40] sm:$0xff]  }
  0x14   : > { %3928 = vmatpush3.bf16.msra.mxu0 %v4239_v4  ;;  %4226 = vmatpush3.bf16.msra.mxu1 %v4239_v4  ;;  %v4255_v20 = vld [vmem:[%s4443_s26 + $0x270] sm:$0xff]   ;;  %v4257_v22 = vld [vmem:[%s4443_s26 + $0x278] sm:$0xff]   ;;  %v4259_v24 = vld [vmem:[%s4443_s26 + $0x280] sm:$0xff]  }
  0x15   : > { %3929 = vmatprep.subr.bf16.mxu0 %v4240_v5  ;;  %4223 = vmatprep.subr.bf16.mxu1 %v4240_v5  ;;  %v4260_v25 = vld [vmem:[%s4443_s26 + $0x48] sm:$0xff]   ;;  %v4262_v27 = vld [vmem:[%s4443_s26 + $0x50] sm:$0xff]   ;;  %v4264_v29 = vld [vmem:[%s4443_s26 + $0x58] sm:$0xff]  }
  0x16   : > { %v4261_v26 = vld [vmem:[%s4443_s26 + $0x288] sm:$0xff]   ;;  %v4263_v28 = vld [vmem:[%s4443_s26 + $0x290] sm:$0xff]   ;;  %v4265_v30 = vld [vmem:[%s4443_s26 + $0x298] sm:$0xff]  }
  0x17   : > { %v4266_v31 = vld [vmem:[%s4443_s26 + $0x60] sm:$0xff]   ;;  %v4268_v33 = vld [vmem:[%s4443_s26 + $0x68] sm:$0xff]   ;;  %v4270_v35 = vld [vmem:[%s4443_s26 + $0x70] sm:$0xff]  }
  0x18   : > { %3930 = vmatpush3.bf16.msra.mxu0 %v4240_v5  ;;  %4227 = vmatpush3.bf16.msra.mxu1 %v4240_v5  ;;  %v4267_v32 = vld [vmem:[%s4443_s26 + $0x2a0] sm:$0xff]   ;;  %v4269_v34 = vld [vmem:[%s4443_s26 + $0x2a8] sm:$0xff]   ;;  %v4271_v36 = vld [vmem:[%s4443_s26 + $0x2b0] sm:$0xff]  }
  0x19   : > { %3931 = vmatprep.subr.bf16.mxu0 %v4241_v6  ;;  %4224 = vmatprep.subr.bf16.mxu1 %v4241_v6  ;;  %v4272_v37 = vld [vmem:[%s4443_s26 + $0x78] sm:$0xff]   ;;  %v4274_v39 = vld [vmem:[%s4443_s26 + $0x80] sm:$0xff]   ;;  %v4276_v41 = vld [vmem:[%s4443_s26 + $0x88] sm:$0xff]  }
  0x1a   : > { %v4273_v38 = vld [vmem:[%s4443_s26 + $0x2b8] sm:$0xff]   ;;  %v4275_v40 = vld [vmem:[%s4443_s26 + $0x2c0] sm:$0xff]   ;;  %v4277_v42 = vld [vmem:[%s4443_s26 + $0x2c8] sm:$0xff]  }
  0x1b   : > { %v4278_v43 = vld [vmem:[%s4443_s26 + $0x90] sm:$0xff]   ;;  %v4280_v45 = vld [vmem:[%s4443_s26 + $0x98] sm:$0xff]   ;;  %v4282_v47 = vld [vmem:[%s4443_s26 + $0xa0] sm:$0xff]  }
  0x1c   : > { %3932 = vmatpush3.bf16.msra.mxu0 %v4241_v6  ;;  %4228 = vmatpush3.bf16.msra.mxu1 %v4241_v6  ;;  %v4279_v44 = vld [vmem:[%s4443_s26 + $0x2d0] sm:$0xff]   ;;  %v4281_v46 = vld [vmem:[%s4443_s26 + $0x2d8] sm:$0xff]   ;;  %v4283_v48 = vld [vmem:[%s4443_s26 + $0x2e0] sm:$0xff]  }
  0x1d   : > { %v4284_v49 = vld [vmem:[%s4443_s26 + $0xa8] sm:$0xff]   ;;  %v4286_v51 = vld [vmem:[%s4443_s26 + $0xb0] sm:$0xff]   ;;  %v4288_v53 = vld [vmem:[%s4443_s26 + $0xb8] sm:$0xff]  }
  0x1e   : > { %v4285_v50 = vld [vmem:[%s4443_s26 + $0x2e8] sm:$0xff]   ;;  %v4287_v52 = vld [vmem:[%s4443_s26 + $0x2f0] sm:$0xff]   ;;  %v4289_v54 = vld [vmem:[%s4443_s26 + $0x2f8] sm:$0xff]  }
  0x1f   : > { %3934 = vmatmul.mubr.msk.bf16.vlgmr.msra.gmra.mxu0 %vm1218_vm1, %v4244_v9  ;;  %4078 = vmatmul.mubr.msk.bf16.vlgmr.msra.gmra.mxu1 %vm1218_vm1, %v4245_v10  ;;  %v4290_v55 = vld [vmem:[%s4443_s26 + $0xc0] sm:$0xff]   ;;  %v4292_v57 = vld [vmem:[%s4443_s26 + $0xc8] sm:$0xff]   ;;  %v4294_v59 = vld [vmem:[%s4443_s26 + $0xd0] sm:$0xff]  }
  0x20   : > { %3937 = vmatprep.mubr.msk.bf16.mxu0 %vm1218_vm1, %v4246_v11  ;;  %4081 = vmatprep.mubr.msk.bf16.mxu1 %vm1218_vm1, %v4247_v12  ;;  %v4291_v56 = vld [vmem:[%s4443_s26 + $0x300] sm:$0xff]   ;;  %v4293_v58 = vld [vmem:[%s4443_s26 + $0x308] sm:$0xff]   ;;  %v4295_v60 = vld [vmem:[%s4443_s26 + $0x310] sm:$0xff]  }
  0x21   : > { %v4296_v61 = vld [vmem:[%s4443_s26 + $0xd8] sm:$0xff]   ;;  %v4298_v63 = vld [vmem:[%s4443_s26 + $0xe0] sm:$0xff]   ;;  %v4300_v1 = vld [vmem:[%s4443_s26 + $0xe8] sm:$0xff]  }
  0x22   : > { %v4297_v62 = vld [vmem:[%s4443_s26 + $0x318] sm:$0xff]   ;;  %v4299_v0 = vld [vmem:[%s4443_s26 + $0x320] sm:$0xff]   ;;  %v4301_v2 = vld [vmem:[%s4443_s26 + $0x328] sm:$0xff]  }
  0x23   : > { %v4302_v3 = vld [vmem:[%s4443_s26 + $0xf0] sm:$0xff]   ;;  %v4304_v5 = vld [vmem:[%s4443_s26 + $0xf8] sm:$0xff]   ;;  %v4306_v7 = vld [vmem:[%s4443_s26 + $0x100] sm:$0xff]  }
  0x24   : > { %v4303_v4 = vld [vmem:[%s4443_s26 + $0x330] sm:$0xff]   ;;  %v4305_v6 = vld [vmem:[%s4443_s26 + $0x338] sm:$0xff]   ;;  %v4307_v8 = vld [vmem:[%s4443_s26 + $0x340] sm:$0xff]  }
  0x25   : > { %v4308_v9 = vld [vmem:[%s4443_s26 + $0x108] sm:$0xff]   ;;  %v4310_v11 = vld [vmem:[%s4443_s26 + $0x110] sm:$0xff]  }
  0x26   : > { %v4309_v10 = vld [vmem:[%s4443_s26 + $0x348] sm:$0xff]   ;;  %v4311_v12 = vld [vmem:[%s4443_s26 + $0x350] sm:$0xff]  }
  0x27   : > { %3938 = vmatmul.mubr.msk.bf16.gmra.mxu0 %vm1218_vm1, %v4248_v13  ;;  %4082 = vmatmul.mubr.msk.bf16.gmra.mxu1 %vm1218_vm1, %v4249_v14  ;;  %v4312_v13 = vld [vmem:[%s4443_s26 + $0x118] sm:$0xff]  }
  0x28   : > { %3941 = vmatprep.mubr.msk.bf16.mxu0 %vm1218_vm1, %v4250_v15  ;;  %4085 = vmatprep.mubr.msk.bf16.mxu1 %vm1218_vm1, %v4251_v16  ;;  %v4313_v14 = vld [vmem:[%s4443_s26 + $0x358] sm:$0xff]   ;;  %v4314_v15 = vld [vmem:[%s4443_s26 + $0x120] sm:$0xff]  }
  0x29   : > { %v4315_v16 = vld [vmem:[%s4443_s26 + $0x360] sm:$0xff]  }
  0x2f   : > { %3942 = vmatmul.mubr.msk.bf16.gmra.mxu0 %vm1218_vm1, %v4252_v17  ;;  %4086 = vmatmul.mubr.msk.bf16.gmra.mxu1 %vm1218_vm1, %v4253_v18  ;;  %v4316_v17 = vld [vmem:[%s4443_s26 + $0x128] sm:$0xff]  }
  0x30   : > { %3945 = vmatprep.mubr.msk.bf16.mxu0 %vm1218_vm1, %v4254_v19  ;;  %4089 = vmatprep.mubr.msk.bf16.mxu1 %vm1218_vm1, %v4255_v20  ;;  %v4317_v18 = vld [vmem:[%s4443_s26 + $0x368] sm:$0xff]   ;;  %v4318_v19 = vld [vmem:[%s4443_s26 + $0x130] sm:$0xff]  }
  0x31   : > { %v4319_v20 = vld [vmem:[%s4443_s26 + $0x370] sm:$0xff]  }
  0x37   : > { %3946 = vmatmul.mubr.msk.bf16.gmra.mxu0 %vm1218_vm1, %v4256_v21  ;;  %4090 = vmatmul.mubr.msk.bf16.gmra.mxu1 %vm1218_vm1, %v4257_v22  ;;  %v4320_v21 = vld [vmem:[%s4443_s26 + $0x138] sm:$0xff]  }
  0x38   : > { %3949 = vmatprep.mubr.msk.bf16.mxu0 %vm1218_vm1, %v4258_v23  ;;  %4093 = vmatprep.mubr.msk.bf16.mxu1 %vm1218_vm1, %v4259_v24  ;;  %v4321_v22 = vld [vmem:[%s4443_s26 + $0x378] sm:$0xff]   ;;  %v4322_v23 = vld [vmem:[%s4443_s26 + $0x140] sm:$0xff]  }
  0x39   : > { %v4323_v24 = vld [vmem:[%s4443_s26 + $0x380] sm:$0xff]  }
  0x3f   : > { %3950 = vmatmul.mubr.msk.bf16.gmra.mxu0 %vm1218_vm1, %v4260_v25  ;;  %4094 = vmatmul.mubr.msk.bf16.gmra.mxu1 %vm1218_vm1, %v4261_v26  ;;  %v4324_v25 = vld [vmem:[%s4443_s26 + $0x148] sm:$0xff]  }
  0x40   : > { %3953 = vmatprep.mubr.msk.bf16.mxu0 %vm1218_vm1, %v4262_v27  ;;  %4097 = vmatprep.mubr.msk.bf16.mxu1 %vm1218_vm1, %v4263_v28  ;;  %v4325_v26 = vld [vmem:[%s4443_s26 + $0x388] sm:$0xff]   ;;  %v4326_v27 = vld [vmem:[%s4443_s26 + $0x150] sm:$0xff]  }
  0x41   : > { %v4327_v28 = vld [vmem:[%s4443_s26 + $0x390] sm:$0xff]  }
  0x47   : > { %3954 = vmatmul.mubr.msk.bf16.gmra.mxu0 %vm1218_vm1, %v4264_v29  ;;  %4098 = vmatmul.mubr.msk.bf16.gmra.mxu1 %vm1218_vm1, %v4265_v30  ;;  %v4328_v29 = vld [vmem:[%s4443_s26 + $0x158] sm:$0xff]  }
  0x48   : > { %3957 = vmatprep.mubr.msk.bf16.mxu0 %vm1218_vm1, %v4266_v31  ;;  %4101 = vmatprep.mubr.msk.bf16.mxu1 %vm1218_vm1, %v4267_v32  ;;  %v4329_v30 = vld [vmem:[%s4443_s26 + $0x398] sm:$0xff]   ;;  %v4330_v31 = vld [vmem:[%s4443_s26 + $0x160] sm:$0xff]  }
  0x49   : > { %v4331_v32 = vld [vmem:[%s4443_s26 + $0x3a0] sm:$0xff]  }
  0x4f   : > { %3958 = vmatmul.mubr.msk.bf16.gmra.mxu0 %vm1218_vm1, %v4268_v33  ;;  %4102 = vmatmul.mubr.msk.bf16.gmra.mxu1 %vm1218_vm1, %v4269_v34  ;;  %v4332_v33 = vld [vmem:[%s4443_s26 + $0x168] sm:$0xff]  }
  0x50   : > { %3961 = vmatprep.mubr.msk.bf16.mxu0 %vm1218_vm1, %v4270_v35  ;;  %4105 = vmatprep.mubr.msk.bf16.mxu1 %vm1218_vm1, %v4271_v36  ;;  %v4333_v34 = vld [vmem:[%s4443_s26 + $0x3a8] sm:$0xff]   ;;  %v4334_v35 = vld [vmem:[%s4443_s26 + $0x170] sm:$0xff]  }
  0x51   : > { %v4335_v36 = vld [vmem:[%s4443_s26 + $0x3b0] sm:$0xff]  }
  0x57   : > { %3962 = vmatmul.mubr.msk.bf16.gmra.mxu0 %vm1218_vm1, %v4272_v37  ;;  %4106 = vmatmul.mubr.msk.bf16.gmra.mxu1 %vm1218_vm1, %v4273_v38  ;;  %v4336_v37 = vld [vmem:[%s4443_s26 + $0x178] sm:$0xff]  }
  0x58   : > { %3965 = vmatprep.mubr.msk.bf16.mxu0 %vm1218_vm1, %v4274_v39  ;;  %4109 = vmatprep.mubr.msk.bf16.mxu1 %vm1218_vm1, %v4275_v40  ;;  %v4337_v38 = vld [vmem:[%s4443_s26 + $0x3b8] sm:$0xff]   ;;  %v4338_v39 = vld [vmem:[%s4443_s26 + $0x180] sm:$0xff]  }
  0x59   : > { %v4339_v40 = vld [vmem:[%s4443_s26 + $0x3c0] sm:$0xff]  }
  0x5f   : > { %3966 = vmatmul.mubr.msk.bf16.gmra.mxu0 %vm1218_vm1, %v4276_v41  ;;  %4110 = vmatmul.mubr.msk.bf16.gmra.mxu1 %vm1218_vm1, %v4277_v42  ;;  %v4340_v41 = vld [vmem:[%s4443_s26 + $0x188] sm:$0xff]  }
  0x60   : > { %3969 = vmatprep.mubr.msk.bf16.mxu0 %vm1218_vm1, %v4278_v43  ;;  %4113 = vmatprep.mubr.msk.bf16.mxu1 %vm1218_vm1, %v4279_v44  ;;  %v4341_v42 = vld [vmem:[%s4443_s26 + $0x3c8] sm:$0xff]   ;;  %v4342_v43 = vld [vmem:[%s4443_s26 + $0x190] sm:$0xff]  }
  0x61   : > { %v4343_v44 = vld [vmem:[%s4443_s26 + $0x3d0] sm:$0xff]  }
  0x67   : > { %3970 = vmatmul.mubr.msk.bf16.gmra.mxu0 %vm1218_vm1, %v4280_v45  ;;  %4114 = vmatmul.mubr.msk.bf16.gmra.mxu1 %vm1218_vm1, %v4281_v46  ;;  %v4648_v45 = vld [vmem:[%s5623_s2] ss:$0 sm:$0xff] }
  0x68   : > { %3973 = vmatprep.mubr.msk.bf16.mxu0 %vm1218_vm1, %v4282_v47  ;;  %4117 = vmatprep.mubr.msk.bf16.mxu1 %vm1218_vm1, %v4283_v48 }
  0x6f   : > { %3974 = vmatmul.mubr.msk.bf16.gmra.mxu0 %vm1218_vm1, %v4284_v49  ;;  %4118 = vmatmul.mubr.msk.bf16.gmra.mxu1 %vm1218_vm1, %v4285_v50 }
  0x70   : > { %3977 = vmatprep.mubr.msk.bf16.mxu0 %vm1218_vm1, %v4286_v51  ;;  %4121 = vmatprep.mubr.msk.bf16.mxu1 %vm1218_vm1, %v4287_v52 }
  0x77   : > { %3978 = vmatmul.mubr.msk.bf16.gmra.mxu0 %vm1218_vm1, %v4288_v53  ;;  %4122 = vmatmul.mubr.msk.bf16.gmra.mxu1 %vm1218_vm1, %v4289_v54 }
  0x78   : > { %3981 = vmatprep.mubr.msk.bf16.mxu0 %vm1218_vm1, %v4290_v55  ;;  %4125 = vmatprep.mubr.msk.bf16.mxu1 %vm1218_vm1, %v4291_v56 }
  0x7f   : > { %3982 = vmatmul.mubr.msk.bf16.gmra.mxu0 %vm1218_vm1, %v4292_v57  ;;  %4126 = vmatmul.mubr.msk.bf16.gmra.mxu1 %vm1218_vm1, %v4293_v58  ;;  %v4344_v58 = vld [vmem:[%s4443_s26 + $0x198] sm:$0xff]  }
  0x80   : > { %3985 = vmatprep.mubr.msk.bf16.mxu0 %vm1218_vm1, %v4294_v59  ;;  %4129 = vmatprep.mubr.msk.bf16.mxu1 %vm1218_vm1, %v4295_v60  ;;  %v4345_v59 = vld [vmem:[%s4443_s26 + $0x3d8] sm:$0xff]  }
  0x87   : > { %3986 = vmatmul.mubr.msk.bf16.gmra.mxu0 %vm1218_vm1, %v4296_v61  ;;  %4130 = vmatmul.mubr.msk.bf16.gmra.mxu1 %vm1218_vm1, %v4297_v62 }
  0x88   : > { %3989 = vmatprep.mubr.msk.bf16.mxu0 %vm1218_vm1, %v4298_v63  ;;  %4133 = vmatprep.mubr.msk.bf16.mxu1 %vm1218_vm1, %v4299_v0  ;;  %v4346_v0 = vld [vmem:[%s4443_s26 + $0x1a0] sm:$0xff]  }
  0x8f   : > { %3990 = vmatmul.mubr.msk.bf16.gmra.mxu0 %vm1218_vm1, %v4300_v1  ;;  %4134 = vmatmul.mubr.msk.bf16.gmra.mxu1 %vm1218_vm1, %v4301_v2  ;;  %v4347_v1 = vld [vmem:[%s4443_s26 + $0x3e0] sm:$0xff]  }
  0x90   : > { %3993 = vmatprep.mubr.msk.bf16.mxu0 %vm1218_vm1, %v4302_v3  ;;  %4137 = vmatprep.mubr.msk.bf16.mxu1 %vm1218_vm1, %v4303_v4 }
  0x97   : > { %3994 = vmatmul.mubr.msk.bf16.gmra.mxu0 %vm1218_vm1, %v4304_v5  ;;  %4138 = vmatmul.mubr.msk.bf16.gmra.mxu1 %vm1218_vm1, %v4305_v6 }
  0x98   : > { %3997 = vmatprep.mubr.msk.bf16.mxu0 %vm1218_vm1, %v4306_v7  ;;  %4141 = vmatprep.mubr.msk.bf16.mxu1 %vm1218_vm1, %v4307_v8 }
  0x9f   : > { %3998 = vmatmul.mubr.msk.bf16.gmra.mxu0 %vm1218_vm1, %v4308_v9  ;;  %4142 = vmatmul.mubr.msk.bf16.gmra.mxu1 %vm1218_vm1, %v4309_v10 }
  0xa0   : > { %4001 = vmatprep.mubr.msk.bf16.mxu0 %vm1218_vm1, %v4310_v11  ;;  %4145 = vmatprep.mubr.msk.bf16.mxu1 %vm1218_vm1, %v4311_v12 }
  0xa7   : > { %4002 = vmatmul.mubr.msk.bf16.gmra.mxu0 %vm1218_vm1, %v4312_v13  ;;  %4146 = vmatmul.mubr.msk.bf16.gmra.mxu1 %vm1218_vm1, %v4313_v14 }
  0xa8   : > { %4005 = vmatprep.mubr.msk.bf16.mxu0 %vm1218_vm1, %v4314_v15  ;;  %4149 = vmatprep.mubr.msk.bf16.mxu1 %vm1218_vm1, %v4315_v16 }
  0xaf   : > { %4006 = vmatmul.mubr.msk.bf16.gmra.mxu0 %vm1218_vm1, %v4316_v17  ;;  %4150 = vmatmul.mubr.msk.bf16.gmra.mxu1 %vm1218_vm1, %v4317_v18 }
  0xb0   : > { %4009 = vmatprep.mubr.msk.bf16.mxu0 %vm1218_vm1, %v4318_v19  ;;  %4153 = vmatprep.mubr.msk.bf16.mxu1 %vm1218_vm1, %v4319_v20 }
  0xb7   : > { %4010 = vmatmul.mubr.msk.bf16.gmra.mxu0 %vm1218_vm1, %v4320_v21  ;;  %4154 = vmatmul.mubr.msk.bf16.gmra.mxu1 %vm1218_vm1, %v4321_v22  ;;  %v4348_v22 = vld [vmem:[%s4443_s26 + $0x1a8] sm:$0xff]  }
  0xb8   : > { %4013 = vmatprep.mubr.msk.bf16.mxu0 %vm1218_vm1, %v4322_v23  ;;  %4157 = vmatprep.mubr.msk.bf16.mxu1 %vm1218_vm1, %v4323_v24  ;;  %v4349_v23 = vld [vmem:[%s4443_s26 + $0x3e8] sm:$0xff]  }
  0xbf   : > { %4014 = vmatmul.mubr.msk.bf16.gmra.mxu0 %vm1218_vm1, %v4324_v25  ;;  %4158 = vmatmul.mubr.msk.bf16.gmra.mxu1 %vm1218_vm1, %v4325_v26 }
  0xc0   : > { %4017 = vmatprep.mubr.msk.bf16.mxu0 %vm1218_vm1, %v4326_v27  ;;  %4161 = vmatprep.mubr.msk.bf16.mxu1 %vm1218_vm1, %v4327_v28  ;;  %v4350_v28 = vld [vmem:[%s4443_s26 + $0x1b0] sm:$0xff]  }
  0xc7   : > { %4018 = vmatmul.mubr.msk.bf16.gmra.mxu0 %vm1218_vm1, %v4328_v29  ;;  %4162 = vmatmul.mubr.msk.bf16.gmra.mxu1 %vm1218_vm1, %v4329_v30  ;;  %v4351_v29 = vld [vmem:[%s4443_s26 + $0x3f0] sm:$0xff]  }
  0xc8   : > { %4021 = vmatprep.mubr.msk.bf16.mxu0 %vm1218_vm1, %v4330_v31  ;;  %4165 = vmatprep.mubr.msk.bf16.mxu1 %vm1218_vm1, %v4331_v32 }
  0xcf   : > { %4022 = vmatmul.mubr.msk.bf16.gmra.mxu0 %vm1218_vm1, %v4332_v33  ;;  %4166 = vmatmul.mubr.msk.bf16.gmra.mxu1 %vm1218_vm1, %v4333_v34 }
  0xd0   : > { %4025 = vmatprep.mubr.msk.bf16.mxu0 %vm1218_vm1, %v4334_v35  ;;  %4169 = vmatprep.mubr.msk.bf16.mxu1 %vm1218_vm1, %v4335_v36 }
  0xd7   : > { %4026 = vmatmul.mubr.msk.bf16.gmra.mxu0 %vm1218_vm1, %v4336_v37  ;;  %4170 = vmatmul.mubr.msk.bf16.gmra.mxu1 %vm1218_vm1, %v4337_v38 }
  0xd8   : > { %4029 = vmatprep.mubr.msk.bf16.mxu0 %vm1218_vm1, %v4338_v39  ;;  %4173 = vmatprep.mubr.msk.bf16.mxu1 %vm1218_vm1, %v4339_v40 }
  0xdf   : > { %v3935_v46 = vpop.f32.mrf.mxu0  ;;  %4030 = vmatmul.mubr.msk.bf16.gmra.mxu0 %vm1218_vm1, %v4340_v41  ;;  %v4079_v47 = vpop.f32.mrf.mxu1  ;;  %4174 = vmatmul.mubr.msk.bf16.gmra.mxu1 %vm1218_vm1, %v4341_v42 }
  0xe0   : > { %v1700_v48 = vadd.f32 %v3935_v46, %v4648_v45  ;;  %v2276_v49 = vadd.f32 %v4079_v47, %v4648_v45  ;;  %4033 = vmatprep.mubr.msk.bf16.mxu0 %vm1218_vm1, %v4342_v43  ;;  %4177 = vmatprep.mubr.msk.bf16.mxu1 %vm1218_vm1, %v4343_v44 }
  0xe1   : > { %v1691_v50 = vpop.f32.mrf.mxu0  ;;  %v2267_v51 = vpop.f32.mrf.mxu1 }
  0xe2   : > { %v2844_v52 = vmax.f32 %v1700_v48, 0.0  ;;  %v2988_v53 = vmax.f32 %v2276_v49, 0.0  ;;  %v1692_v54 = vadd.f32 %v4648_v45, %v1691_v50  ;;  %v2268_v55 = vadd.f32 %v4648_v45, %v2267_v51  ;;  %v4352_v51 = vld [vmem:[%s4443_s26 + $0x1b8] sm:$0xff]  }
  0xe3   : > { %v3936_v56 = vpop.f32.mrf.mxu0  ;;  %v4080_v57 = vpop.f32.mrf.mxu1 }
  0xe4   : > { %3133 = vst.msk [vmem:[%s4660_s5 + $0x10] sm:$0xff] %vm3130_vm2, %v2844_v52  ;;  %3277 = vst.msk [vmem:[%s4660_s5 + $0x490] sm:$0xff] %vm3130_vm2, %v2988_v53  ;;  %v2842_v60 = vmax.f32 %v1692_v54, 0.0  ;;  %v2986_v61 = vmax.f32 %v2268_v55, 0.0  ;;  %v1703_v62 = vadd.f32 %v3936_v56, %v4648_v45  ;;  %v2279_v63 = vadd.f32 %v4080_v57, %v4648_v45  ;;  %v4353_v52 = vld [vmem:[%s4443_s26 + $0x3f8] sm:$0xff]   ;;  %v4354_v57 = vld [vmem:[%s4443_s26 + $0x1c0] sm:$0xff]  }
  0xe5   : > { %v1694_v2 = vpop.f32.mrf.mxu0  ;;  %v2270_v3 = vpop.f32.mrf.mxu1 }
  0xe6   : > { %3131 = vst.msk [vmem:[%s4660_s5] sm:$0xff] %vm3130_vm2, %v2842_v60  ;;  %3275 = vst.msk [vmem:[%s4660_s5 + $0x480] sm:$0xff] %vm3130_vm2, %v2986_v61  ;;  %v2845_v4 = vmax.f32 %v1703_v62, 0.0  ;;  %v2989_v5 = vmax.f32 %v2279_v63, 0.0  ;;  %v1695_v6 = vadd.f32 %v4648_v45, %v1694_v2  ;;  %v2271_v7 = vadd.f32 %v4648_v45, %v2270_v3 }
  0xe7   : > { %v3939_v8 = vpop.f32.mrf.mxu0  ;;  %4034 = vmatmul.mubr.msk.bf16.gmra.mxu0 %vm1218_vm1, %v4344_v58  ;;  %v4083_v9 = vpop.f32.mrf.mxu1  ;;  %4178 = vmatmul.mubr.msk.bf16.gmra.mxu1 %vm1218_vm1, %v4345_v59  ;;  %v4355_v58 = vld [vmem:[%s4443_s26 + $0x400] sm:$0xff]  }
  0xe8   : > { %3134 = vst.msk [vmem:[%s4660_s5 + $0x18] sm:$0xff] %vm3130_vm2, %v2845_v4  ;;  %3278 = vst.msk [vmem:[%s4660_s5 + $0x498] sm:$0xff] %vm3130_vm2, %v2989_v5  ;;  %v2843_v10 = vmax.f32 %v1695_v6, 0.0  ;;  %v2987_v11 = vmax.f32 %v2271_v7, 0.0  ;;  %v1716_v12 = vadd.f32 %v3939_v8, %v4648_v45  ;;  %v2292_v13 = vadd.f32 %v4083_v9, %v4648_v45  ;;  %4037 = vmatprep.mubr.msk.bf16.mxu0 %vm1218_vm1, %v4346_v0 }
  0xe9   : > { %4181 = vmatprep.mubr.msk.bf16.mxu1 %vm1218_vm1, %v4347_v1  ;;  %v1707_v14 = vpop.f32.mrf.mxu0  ;;  %v2283_v15 = vpop.f32.mrf.mxu1 }
  0xea   : > { %3132 = vst.msk [vmem:[%s4660_s5 + $0x8] sm:$0xff] %vm3130_vm2, %v2843_v10  ;;  %3276 = vst.msk [vmem:[%s4660_s5 + $0x488] sm:$0xff] %vm3130_vm2, %v2987_v11  ;;  %v2848_v16 = vmax.f32 %v1716_v12, 0.0  ;;  %v2992_v17 = vmax.f32 %v2292_v13, 0.0  ;;  %v1708_v18 = vadd.f32 %v4648_v45, %v1707_v14  ;;  %v2284_v19 = vadd.f32 %v4648_v45, %v2283_v15  ;;  %v4356_v15 = vld [vmem:[%s4443_s26 + $0x1c8] sm:$0xff]  }
  0xeb   : > { %v3940_v20 = vpop.f32.mrf.mxu0  ;;  %v4084_v21 = vpop.f32.mrf.mxu1 }
  0xec   : > { %3137 = vst.msk [vmem:[%s4660_s5 + $0x30] sm:$0xff] %vm3130_vm2, %v2848_v16  ;;  %3281 = vst.msk [vmem:[%s4660_s5 + $0x4b0] sm:$0xff] %vm3130_vm2, %v2992_v17  ;;  %v2846_v24 = vmax.f32 %v1708_v18, 0.0  ;;  %v2990_v25 = vmax.f32 %v2284_v19, 0.0  ;;  %v1719_v26 = vadd.f32 %v3940_v20, %v4648_v45  ;;  %v2295_v27 = vadd.f32 %v4084_v21, %v4648_v45  ;;  %v4357_v16 = vld [vmem:[%s4443_s26 + $0x408] sm:$0xff]   ;;  %v4358_v21 = vld [vmem:[%s4443_s26 + $0x1d0] sm:$0xff]  }
  0xed   : > { %v1710_v30 = vpop.f32.mrf.mxu0  ;;  %v2286_v31 = vpop.f32.mrf.mxu1 }
  0xee   : > { %3135 = vst.msk [vmem:[%s4660_s5 + $0x20] sm:$0xff] %vm3130_vm2, %v2846_v24  ;;  %3279 = vst.msk [vmem:[%s4660_s5 + $0x4a0] sm:$0xff] %vm3130_vm2, %v2990_v25  ;;  %v2849_v32 = vmax.f32 %v1719_v26, 0.0  ;;  %v2993_v33 = vmax.f32 %v2295_v27, 0.0  ;;  %v1711_v34 = vadd.f32 %v4648_v45, %v1710_v30  ;;  %v2287_v35 = vadd.f32 %v4648_v45, %v2286_v31 }
  0xef   : > { %v3943_v36 = vpop.f32.mrf.mxu0  ;;  %4038 = vmatmul.mubr.msk.bf16.gmra.mxu0 %vm1218_vm1, %v4348_v22  ;;  %v4087_v37 = vpop.f32.mrf.mxu1  ;;  %4182 = vmatmul.mubr.msk.bf16.gmra.mxu1 %vm1218_vm1, %v4349_v23  ;;  %v4359_v22 = vld [vmem:[%s4443_s26 + $0x410] sm:$0xff]  }
  0xf0   : > { %3138 = vst.msk [vmem:[%s4660_s5 + $0x38] sm:$0xff] %vm3130_vm2, %v2849_v32  ;;  %3282 = vst.msk [vmem:[%s4660_s5 + $0x4b8] sm:$0xff] %vm3130_vm2, %v2993_v33  ;;  %v2847_v38 = vmax.f32 %v1711_v34, 0.0  ;;  %v2991_v39 = vmax.f32 %v2287_v35, 0.0  ;;  %v1732_v40 = vadd.f32 %v3943_v36, %v4648_v45  ;;  %v2308_v41 = vadd.f32 %v4087_v37, %v4648_v45  ;;  %4041 = vmatprep.mubr.msk.bf16.mxu0 %vm1218_vm1, %v4350_v28 }
  0xf1   : > { %4185 = vmatprep.mubr.msk.bf16.mxu1 %vm1218_vm1, %v4351_v29  ;;  %v1723_v42 = vpop.f32.mrf.mxu0  ;;  %v2299_v43 = vpop.f32.mrf.mxu1 }
  0xf2   : > { %3136 = vst.msk [vmem:[%s4660_s5 + $0x28] sm:$0xff] %vm3130_vm2, %v2847_v38  ;;  %3280 = vst.msk [vmem:[%s4660_s5 + $0x4a8] sm:$0xff] %vm3130_vm2, %v2991_v39  ;;  %v2852_v44 = vmax.f32 %v1732_v40, 0.0  ;;  %v2996_v46 = vmax.f32 %v2308_v41, 0.0  ;;  %v1724_v47 = vadd.f32 %v4648_v45, %v1723_v42  ;;  %v2300_v48 = vadd.f32 %v4648_v45, %v2299_v43  ;;  %v4360_v43 = vld [vmem:[%s4443_s26 + $0x1d8] sm:$0xff]  }
  0xf3   : > { %v3944_v49 = vpop.f32.mrf.mxu0  ;;  %v4088_v50 = vpop.f32.mrf.mxu1 }
  0xf4   : > { %3141 = vst.msk [vmem:[%s4660_s5 + $0x50] sm:$0xff] %vm3130_vm2, %v2852_v44  ;;  %3285 = vst.msk [vmem:[%s4660_s5 + $0x4d0] sm:$0xff] %vm3130_vm2, %v2996_v46  ;;  %v2850_v53 = vmax.f32 %v1724_v47, 0.0  ;;  %v2994_v54 = vmax.f32 %v2300_v48, 0.0  ;;  %v1735_v55 = vadd.f32 %v3944_v49, %v4648_v45  ;;  %v2311_v56 = vadd.f32 %v4088_v50, %v4648_v45  ;;  %v4361_v44 = vld [vmem:[%s4443_s26 + $0x418] sm:$0xff]   ;;  %v4362_v50 = vld [vmem:[%s4443_s26 + $0x1e0] sm:$0xff]  }
  0xf5   : > { %v1726_v59 = vpop.f32.mrf.mxu0  ;;  %v2302_v60 = vpop.f32.mrf.mxu1 }
  0xf6   : > { %3139 = vst.msk [vmem:[%s4660_s5 + $0x40] sm:$0xff] %vm3130_vm2, %v2850_v53  ;;  %3283 = vst.msk [vmem:[%s4660_s5 + $0x4c0] sm:$0xff] %vm3130_vm2, %v2994_v54  ;;  %v2853_v61 = vmax.f32 %v1735_v55, 0.0  ;;  %v2997_v62 = vmax.f32 %v2311_v56, 0.0  ;;  %v1727_v63 = vadd.f32 %v4648_v45, %v1726_v59  ;;  %v2303_v0 = vadd.f32 %v4648_v45, %v2302_v60 }
  0xf7   : > { %v3947_v1 = vpop.f32.mrf.mxu0  ;;  %4042 = vmatmul.mubr.msk.bf16.gmra.mxu0 %vm1218_vm1, %v4352_v51  ;;  %v4091_v2 = vpop.f32.mrf.mxu1  ;;  %4186 = vmatmul.mubr.msk.bf16.gmra.mxu1 %vm1218_vm1, %v4353_v52  ;;  %v4363_v51 = vld [vmem:[%s4443_s26 + $0x420] sm:$0xff]  }
  0xf8   : > { %3142 = vst.msk [vmem:[%s4660_s5 + $0x58] sm:$0xff] %vm3130_vm2, %v2853_v61  ;;  %3286 = vst.msk [vmem:[%s4660_s5 + $0x4d8] sm:$0xff] %vm3130_vm2, %v2997_v62  ;;  %v2851_v3 = vmax.f32 %v1727_v63, 0.0  ;;  %v2995_v4 = vmax.f32 %v2303_v0, 0.0  ;;  %v1748_v5 = vadd.f32 %v3947_v1, %v4648_v45  ;;  %v2324_v6 = vadd.f32 %v4091_v2, %v4648_v45  ;;  %4045 = vmatprep.mubr.msk.bf16.mxu0 %vm1218_vm1, %v4354_v57 }
  0xf9   : > { %4189 = vmatprep.mubr.msk.bf16.mxu1 %vm1218_vm1, %v4355_v58  ;;  %v1739_v7 = vpop.f32.mrf.mxu0  ;;  %v2315_v8 = vpop.f32.mrf.mxu1 }
  0xfa   : > { %3140 = vst.msk [vmem:[%s4660_s5 + $0x48] sm:$0xff] %vm3130_vm2, %v2851_v3  ;;  %3284 = vst.msk [vmem:[%s4660_s5 + $0x4c8] sm:$0xff] %vm3130_vm2, %v2995_v4  ;;  %v2856_v9 = vmax.f32 %v1748_v5, 0.0  ;;  %v3000_v10 = vmax.f32 %v2324_v6, 0.0  ;;  %v1740_v11 = vadd.f32 %v4648_v45, %v1739_v7  ;;  %v2316_v12 = vadd.f32 %v4648_v45, %v2315_v8  ;;  %v4364_v8 = vld [vmem:[%s4443_s26 + $0x1e8] sm:$0xff]  }
  0xfb   : > { %v3948_v13 = vpop.f32.mrf.mxu0  ;;  %v4092_v14 = vpop.f32.mrf.mxu1 }
  0xfc   : > { %3145 = vst.msk [vmem:[%s4660_s5 + $0x70] sm:$0xff] %vm3130_vm2, %v2856_v9  ;;  %3289 = vst.msk [vmem:[%s4660_s5 + $0x4f0] sm:$0xff] %vm3130_vm2, %v3000_v10  ;;  %v2854_v17 = vmax.f32 %v1740_v11, 0.0  ;;  %v2998_v18 = vmax.f32 %v2316_v12, 0.0  ;;  %v1751_v19 = vadd.f32 %v3948_v13, %v4648_v45  ;;  %v2327_v20 = vadd.f32 %v4092_v14, %v4648_v45  ;;  %v4365_v9 = vld [vmem:[%s4443_s26 + $0x428] sm:$0xff]   ;;  %v4366_v14 = vld [vmem:[%s4443_s26 + $0x1f0] sm:$0xff]  }
  0xfd   : > { %v1742_v23 = vpop.f32.mrf.mxu0  ;;  %v2318_v24 = vpop.f32.mrf.mxu1 }
  0xfe   : > { %3143 = vst.msk [vmem:[%s4660_s5 + $0x60] sm:$0xff] %vm3130_vm2, %v2854_v17  ;;  %3287 = vst.msk [vmem:[%s4660_s5 + $0x4e0] sm:$0xff] %vm3130_vm2, %v2998_v18  ;;  %v2857_v25 = vmax.f32 %v1751_v19, 0.0  ;;  %v3001_v26 = vmax.f32 %v2327_v20, 0.0  ;;  %v1743_v27 = vadd.f32 %v4648_v45, %v1742_v23  ;;  %v2319_v28 = vadd.f32 %v4648_v45, %v2318_v24 }
  0xff   : > { %v3951_v29 = vpop.f32.mrf.mxu0  ;;  %4046 = vmatmul.mubr.msk.bf16.gmra.mxu0 %vm1218_vm1, %v4356_v15  ;;  %v4095_v30 = vpop.f32.mrf.mxu1  ;;  %4190 = vmatmul.mubr.msk.bf16.gmra.mxu1 %vm1218_vm1, %v4357_v16  ;;  %v4367_v15 = vld [vmem:[%s4443_s26 + $0x430] sm:$0xff]  }
 0x100   : > { %3146 = vst.msk [vmem:[%s4660_s5 + $0x78] sm:$0xff] %vm3130_vm2, %v2857_v25  ;;  %3290 = vst.msk [vmem:[%s4660_s5 + $0x4f8] sm:$0xff] %vm3130_vm2, %v3001_v26  ;;  %v2855_v31 = vmax.f32 %v1743_v27, 0.0  ;;  %v2999_v32 = vmax.f32 %v2319_v28, 0.0  ;;  %v1764_v33 = vadd.f32 %v3951_v29, %v4648_v45  ;;  %v2340_v34 = vadd.f32 %v4095_v30, %v4648_v45  ;;  %4049 = vmatprep.mubr.msk.bf16.mxu0 %vm1218_vm1, %v4358_v21 }
 0x101   : > { %4193 = vmatprep.mubr.msk.bf16.mxu1 %vm1218_vm1, %v4359_v22  ;;  %v1755_v35 = vpop.f32.mrf.mxu0  ;;  %v2331_v36 = vpop.f32.mrf.mxu1 }
 0x102   : > { %3144 = vst.msk [vmem:[%s4660_s5 + $0x68] sm:$0xff] %vm3130_vm2, %v2855_v31  ;;  %3288 = vst.msk [vmem:[%s4660_s5 + $0x4e8] sm:$0xff] %vm3130_vm2, %v2999_v32  ;;  %v2860_v37 = vmax.f32 %v1764_v33, 0.0  ;;  %v3004_v38 = vmax.f32 %v2340_v34, 0.0  ;;  %v1756_v39 = vadd.f32 %v4648_v45, %v1755_v35  ;;  %v2332_v40 = vadd.f32 %v4648_v45, %v2331_v36  ;;  %v4368_v36 = vld [vmem:[%s4443_s26 + $0x1f8] sm:$0xff]  }
 0x103   : > { %v3952_v41 = vpop.f32.mrf.mxu0  ;;  %v4096_v42 = vpop.f32.mrf.mxu1 }
 0x104   : > { %3149 = vst.msk [vmem:[%s4660_s5 + $0x90] sm:$0xff] %vm3130_vm2, %v2860_v37  ;;  %3293 = vst.msk [vmem:[%s4660_s5 + $0x510] sm:$0xff] %vm3130_vm2, %v3004_v38  ;;  %v2858_v46 = vmax.f32 %v1756_v39, 0.0  ;;  %v3002_v47 = vmax.f32 %v2332_v40, 0.0  ;;  %v1767_v48 = vadd.f32 %v3952_v41, %v4648_v45  ;;  %v2343_v49 = vadd.f32 %v4096_v42, %v4648_v45  ;;  %v4369_v37 = vld [vmem:[%s4443_s26 + $0x438] sm:$0xff]   ;;  %v4370_v42 = vld [vmem:[%s4443_s26 + $0x200] sm:$0xff]  }
 0x105   : > { %v1758_v52 = vpop.f32.mrf.mxu0  ;;  %v2334_v53 = vpop.f32.mrf.mxu1 }
 0x106   : > { %3147 = vst.msk [vmem:[%s4660_s5 + $0x80] sm:$0xff] %vm3130_vm2, %v2858_v46  ;;  %3291 = vst.msk [vmem:[%s4660_s5 + $0x500] sm:$0xff] %vm3130_vm2, %v3002_v47  ;;  %v2861_v54 = vmax.f32 %v1767_v48, 0.0  ;;  %v3005_v55 = vmax.f32 %v2343_v49, 0.0  ;;  %v1759_v56 = vadd.f32 %v4648_v45, %v1758_v52  ;;  %v2335_v57 = vadd.f32 %v4648_v45, %v2334_v53 }
 0x107   : > { %v3955_v58 = vpop.f32.mrf.mxu0  ;;  %4050 = vmatmul.mubr.msk.bf16.gmra.mxu0 %vm1218_vm1, %v4360_v43  ;;  %v4099_v59 = vpop.f32.mrf.mxu1  ;;  %4194 = vmatmul.mubr.msk.bf16.gmra.mxu1 %vm1218_vm1, %v4361_v44  ;;  %v4371_v43 = vld [vmem:[%s4443_s26 + $0x440] sm:$0xff]  }
 0x108   : > { %3150 = vst.msk [vmem:[%s4660_s5 + $0x98] sm:$0xff] %vm3130_vm2, %v2861_v54  ;;  %3294 = vst.msk [vmem:[%s4660_s5 + $0x518] sm:$0xff] %vm3130_vm2, %v3005_v55  ;;  %v2859_v60 = vmax.f32 %v1759_v56, 0.0  ;;  %v3003_v61 = vmax.f32 %v2335_v57, 0.0  ;;  %v1780_v62 = vadd.f32 %v3955_v58, %v4648_v45  ;;  %v2356_v63 = vadd.f32 %v4099_v59, %v4648_v45  ;;  %4053 = vmatprep.mubr.msk.bf16.mxu0 %vm1218_vm1, %v4362_v50 }
 0x109   : > { %4197 = vmatprep.mubr.msk.bf16.mxu1 %vm1218_vm1, %v4363_v51  ;;  %v1771_v0 = vpop.f32.mrf.mxu0  ;;  %v2347_v1 = vpop.f32.mrf.mxu1 }
 0x10a   : > { %3148 = vst.msk [vmem:[%s4660_s5 + $0x88] sm:$0xff] %vm3130_vm2, %v2859_v60  ;;  %3292 = vst.msk [vmem:[%s4660_s5 + $0x508] sm:$0xff] %vm3130_vm2, %v3003_v61  ;;  %v2864_v2 = vmax.f32 %v1780_v62, 0.0  ;;  %v3008_v3 = vmax.f32 %v2356_v63, 0.0  ;;  %v1772_v4 = vadd.f32 %v4648_v45, %v1771_v0  ;;  %v2348_v5 = vadd.f32 %v4648_v45, %v2347_v1  ;;  %v4372_v1 = vld [vmem:[%s4443_s26 + $0x208] sm:$0xff]  }
 0x10b   : > { %v3956_v6 = vpop.f32.mrf.mxu0  ;;  %v4100_v7 = vpop.f32.mrf.mxu1 }
 0x10c   : > { %3153 = vst.msk [vmem:[%s4660_s5 + $0xb0] sm:$0xff] %vm3130_vm2, %v2864_v2  ;;  %3297 = vst.msk [vmem:[%s4660_s5 + $0x530] sm:$0xff] %vm3130_vm2, %v3008_v3  ;;  %v2862_v10 = vmax.f32 %v1772_v4, 0.0  ;;  %v3006_v11 = vmax.f32 %v2348_v5, 0.0  ;;  %v1783_v12 = vadd.f32 %v3956_v6, %v4648_v45  ;;  %v2359_v13 = vadd.f32 %v4100_v7, %v4648_v45  ;;  %v4373_v2 = vld [vmem:[%s4443_s26 + $0x448] sm:$0xff]   ;;  %v4374_v7 = vld [vmem:[%s4443_s26 + $0x210] sm:$0xff]  }
 0x10d   : > { %v1774_v16 = vpop.f32.mrf.mxu0  ;;  %v2350_v17 = vpop.f32.mrf.mxu1 }
 0x10e   : > { %3151 = vst.msk [vmem:[%s4660_s5 + $0xa0] sm:$0xff] %vm3130_vm2, %v2862_v10  ;;  %3295 = vst.msk [vmem:[%s4660_s5 + $0x520] sm:$0xff] %vm3130_vm2, %v3006_v11  ;;  %v2865_v18 = vmax.f32 %v1783_v12, 0.0  ;;  %v3009_v19 = vmax.f32 %v2359_v13, 0.0  ;;  %v1775_v20 = vadd.f32 %v4648_v45, %v1774_v16  ;;  %v2351_v21 = vadd.f32 %v4648_v45, %v2350_v17 }
 0x10f   : > { %v3959_v22 = vpop.f32.mrf.mxu0  ;;  %4054 = vmatmul.mubr.msk.bf16.gmra.mxu0 %vm1218_vm1, %v4364_v8  ;;  %v4103_v23 = vpop.f32.mrf.mxu1  ;;  %4198 = vmatmul.mubr.msk.bf16.gmra.mxu1 %vm1218_vm1, %v4365_v9  ;;  %v4375_v8 = vld [vmem:[%s4443_s26 + $0x450] sm:$0xff]  }
 0x110   : > { %3154 = vst.msk [vmem:[%s4660_s5 + $0xb8] sm:$0xff] %vm3130_vm2, %v2865_v18  ;;  %3298 = vst.msk [vmem:[%s4660_s5 + $0x538] sm:$0xff] %vm3130_vm2, %v3009_v19  ;;  %v2863_v24 = vmax.f32 %v1775_v20, 0.0  ;;  %v3007_v25 = vmax.f32 %v2351_v21, 0.0  ;;  %v1796_v26 = vadd.f32 %v3959_v22, %v4648_v45  ;;  %v2372_v27 = vadd.f32 %v4103_v23, %v4648_v45  ;;  %4057 = vmatprep.mubr.msk.bf16.mxu0 %vm1218_vm1, %v4366_v14 }
 0x111   : > { %4201 = vmatprep.mubr.msk.bf16.mxu1 %vm1218_vm1, %v4367_v15  ;;  %v1787_v28 = vpop.f32.mrf.mxu0  ;;  %v2363_v29 = vpop.f32.mrf.mxu1 }
 0x112   : > { %3152 = vst.msk [vmem:[%s4660_s5 + $0xa8] sm:$0xff] %vm3130_vm2, %v2863_v24  ;;  %3296 = vst.msk [vmem:[%s4660_s5 + $0x528] sm:$0xff] %vm3130_vm2, %v3007_v25  ;;  %v2868_v30 = vmax.f32 %v1796_v26, 0.0  ;;  %v3012_v31 = vmax.f32 %v2372_v27, 0.0  ;;  %v1788_v32 = vadd.f32 %v4648_v45, %v1787_v28  ;;  %v2364_v33 = vadd.f32 %v4648_v45, %v2363_v29  ;;  %v4376_v29 = vld [vmem:[%s4443_s26 + $0x218] sm:$0xff]  }
 0x113   : > { %v3960_v34 = vpop.f32.mrf.mxu0  ;;  %v4104_v35 = vpop.f32.mrf.mxu1 }
 0x114   : > { %3157 = vst.msk [vmem:[%s4660_s5 + $0xd0] sm:$0xff] %vm3130_vm2, %v2868_v30  ;;  %3301 = vst.msk [vmem:[%s4660_s5 + $0x550] sm:$0xff] %vm3130_vm2, %v3012_v31  ;;  %v2866_v38 = vmax.f32 %v1788_v32, 0.0  ;;  %v3010_v39 = vmax.f32 %v2364_v33, 0.0  ;;  %v1799_v40 = vadd.f32 %v3960_v34, %v4648_v45  ;;  %v2375_v41 = vadd.f32 %v4104_v35, %v4648_v45  ;;  %v4377_v30 = vld [vmem:[%s4443_s26 + $0x458] sm:$0xff]   ;;  %v4378_v35 = vld [vmem:[%s4443_s26 + $0x220] sm:$0xff]  }
 0x115   : > { %v1790_v44 = vpop.f32.mrf.mxu0  ;;  %v2366_v46 = vpop.f32.mrf.mxu1 }
 0x116   : > { %3155 = vst.msk [vmem:[%s4660_s5 + $0xc0] sm:$0xff] %vm3130_vm2, %v2866_v38  ;;  %3299 = vst.msk [vmem:[%s4660_s5 + $0x540] sm:$0xff] %vm3130_vm2, %v3010_v39  ;;  %v2869_v47 = vmax.f32 %v1799_v40, 0.0  ;;  %v3013_v48 = vmax.f32 %v2375_v41, 0.0  ;;  %v1791_v49 = vadd.f32 %v4648_v45, %v1790_v44  ;;  %v2367_v50 = vadd.f32 %v4648_v45, %v2366_v46 }
 0x117   : > { %v3963_v51 = vpop.f32.mrf.mxu0  ;;  %4058 = vmatmul.mubr.msk.bf16.gmra.mxu0 %vm1218_vm1, %v4368_v36  ;;  %v4107_v52 = vpop.f32.mrf.mxu1  ;;  %4202 = vmatmul.mubr.msk.bf16.gmra.mxu1 %vm1218_vm1, %v4369_v37  ;;  %v4379_v36 = vld [vmem:[%s4443_s26 + $0x460] sm:$0xff]  }
 0x118   : > { %3158 = vst.msk [vmem:[%s4660_s5 + $0xd8] sm:$0xff] %vm3130_vm2, %v2869_v47  ;;  %3302 = vst.msk [vmem:[%s4660_s5 + $0x558] sm:$0xff] %vm3130_vm2, %v3013_v48  ;;  %v2867_v53 = vmax.f32 %v1791_v49, 0.0  ;;  %v3011_v54 = vmax.f32 %v2367_v50, 0.0  ;;  %v1812_v55 = vadd.f32 %v3963_v51, %v4648_v45  ;;  %v2388_v56 = vadd.f32 %v4107_v52, %v4648_v45  ;;  %4061 = vmatprep.mubr.msk.bf16.mxu0 %vm1218_vm1, %v4370_v42 }
 0x119   : > { %4205 = vmatprep.mubr.msk.bf16.mxu1 %vm1218_vm1, %v4371_v43  ;;  %v1803_v57 = vpop.f32.mrf.mxu0  ;;  %v2379_v58 = vpop.f32.mrf.mxu1 }
 0x11a   : > { %3156 = vst.msk [vmem:[%s4660_s5 + $0xc8] sm:$0xff] %vm3130_vm2, %v2867_v53  ;;  %3300 = vst.msk [vmem:[%s4660_s5 + $0x548] sm:$0xff] %vm3130_vm2, %v3011_v54  ;;  %v2872_v59 = vmax.f32 %v1812_v55, 0.0  ;;  %v3016_v60 = vmax.f32 %v2388_v56, 0.0  ;;  %v1804_v61 = vadd.f32 %v4648_v45, %v1803_v57  ;;  %v2380_v62 = vadd.f32 %v4648_v45, %v2379_v58  ;;  %v4380_v58 = vld [vmem:[%s4443_s26 + $0x228] sm:$0xff]  }
 0x11b   : > { %v3964_v63 = vpop.f32.mrf.mxu0  ;;  %v4108_v0 = vpop.f32.mrf.mxu1 }
 0x11c   : > { %3161 = vst.msk [vmem:[%s4660_s5 + $0xf0] sm:$0xff] %vm3130_vm2, %v2872_v59  ;;  %3305 = vst.msk [vmem:[%s4660_s5 + $0x570] sm:$0xff] %vm3130_vm2, %v3016_v60  ;;  %v2870_v3 = vmax.f32 %v1804_v61, 0.0  ;;  %v3014_v4 = vmax.f32 %v2380_v62, 0.0  ;;  %v1815_v5 = vadd.f32 %v3964_v63, %v4648_v45  ;;  %v2391_v6 = vadd.f32 %v4108_v0, %v4648_v45  ;;  %v4381_v59 = vld [vmem:[%s4443_s26 + $0x468] sm:$0xff]   ;;  %v4382_v0 = vld [vmem:[%s4443_s26 + $0x230] sm:$0xff]  }
 0x11d   : > { %v1806_v9 = vpop.f32.mrf.mxu0  ;;  %v2382_v10 = vpop.f32.mrf.mxu1 }
 0x11e   : > { %3159 = vst.msk [vmem:[%s4660_s5 + $0xe0] sm:$0xff] %vm3130_vm2, %v2870_v3  ;;  %3303 = vst.msk [vmem:[%s4660_s5 + $0x560] sm:$0xff] %vm3130_vm2, %v3014_v4  ;;  %v2873_v11 = vmax.f32 %v1815_v5, 0.0  ;;  %v3017_v12 = vmax.f32 %v2391_v6, 0.0  ;;  %v1807_v13 = vadd.f32 %v4648_v45, %v1806_v9  ;;  %v2383_v14 = vadd.f32 %v4648_v45, %v2382_v10 }
 0x11f   : > { %v3967_v15 = vpop.f32.mrf.mxu0  ;;  %4062 = vmatmul.mubr.msk.bf16.gmra.mxu0 %vm1218_vm1, %v4372_v1  ;;  %v4111_v16 = vpop.f32.mrf.mxu1  ;;  %4206 = vmatmul.mubr.msk.bf16.gmra.mxu1 %vm1218_vm1, %v4373_v2  ;;  %v4383_v1 = vld [vmem:[%s4443_s26 + $0x470] sm:$0xff]  }
 0x120   : > { %3162 = vst.msk [vmem:[%s4660_s5 + $0xf8] sm:$0xff] %vm3130_vm2, %v2873_v11  ;;  %3306 = vst.msk [vmem:[%s4660_s5 + $0x578] sm:$0xff] %vm3130_vm2, %v3017_v12  ;;  %v2871_v17 = vmax.f32 %v1807_v13, 0.0  ;;  %v3015_v18 = vmax.f32 %v2383_v14, 0.0  ;;  %v1828_v19 = vadd.f32 %v3967_v15, %v4648_v45  ;;  %v2404_v20 = vadd.f32 %v4111_v16, %v4648_v45  ;;  %4065 = vmatprep.mubr.msk.bf16.mxu0 %vm1218_vm1, %v4374_v7 }
 0x121   : > { %4209 = vmatprep.mubr.msk.bf16.mxu1 %vm1218_vm1, %v4375_v8  ;;  %v1819_v21 = vpop.f32.mrf.mxu0  ;;  %v2395_v22 = vpop.f32.mrf.mxu1 }
 0x122   : > { %3160 = vst.msk [vmem:[%s4660_s5 + $0xe8] sm:$0xff] %vm3130_vm2, %v2871_v17  ;;  %3304 = vst.msk [vmem:[%s4660_s5 + $0x568] sm:$0xff] %vm3130_vm2, %v3015_v18  ;;  %v2876_v23 = vmax.f32 %v1828_v19, 0.0  ;;  %v3020_v24 = vmax.f32 %v2404_v20, 0.0  ;;  %v1820_v25 = vadd.f32 %v4648_v45, %v1819_v21  ;;  %v2396_v26 = vadd.f32 %v4648_v45, %v2395_v22  ;;  %v4384_v22 = vld [vmem:[%s4443_s26 + $0x238] sm:$0xff]  }
 0x123   : > { %v3968_v27 = vpop.f32.mrf.mxu0  ;;  %v4112_v28 = vpop.f32.mrf.mxu1 }
 0x124   : > { %3165 = vst.msk [vmem:[%s4660_s5 + $0x110] sm:$0xff] %vm3130_vm2, %v2876_v23  ;;  %3309 = vst.msk [vmem:[%s4660_s5 + $0x590] sm:$0xff] %vm3130_vm2, %v3020_v24  ;;  %v2874_v31 = vmax.f32 %v1820_v25, 0.0  ;;  %v3018_v32 = vmax.f32 %v2396_v26, 0.0  ;;  %v1831_v33 = vadd.f32 %v3968_v27, %v4648_v45  ;;  %v2407_v34 = vadd.f32 %v4112_v28, %v4648_v45  ;;  %v4385_v23 = vld [vmem:[%s4443_s26 + $0x478] sm:$0xff]  }
 0x125   : > { %v1822_v37 = vpop.f32.mrf.mxu0  ;;  %v2398_v38 = vpop.f32.mrf.mxu1 }
 0x126   : > { %3163 = vst.msk [vmem:[%s4660_s5 + $0x100] sm:$0xff] %vm3130_vm2, %v2874_v31  ;;  %3307 = vst.msk [vmem:[%s4660_s5 + $0x580] sm:$0xff] %vm3130_vm2, %v3018_v32  ;;  %v2877_v39 = vmax.f32 %v1831_v33, 0.0  ;;  %v3021_v40 = vmax.f32 %v2407_v34, 0.0  ;;  %v1823_v41 = vadd.f32 %v4648_v45, %v1822_v37  ;;  %v2399_v42 = vadd.f32 %v4648_v45, %v2398_v38 }
 0x127   : > { %v3971_v43 = vpop.f32.mrf.mxu0  ;;  %4066 = vmatmul.mubr.msk.bf16.gmra.mxu0 %vm1218_vm1, %v4376_v29  ;;  %v4115_v44 = vpop.f32.mrf.mxu1  ;;  %4210 = vmatmul.mubr.msk.bf16.gmra.mxu1 %vm1218_vm1, %v4377_v30 }
 0x128   : > { %3166 = vst.msk [vmem:[%s4660_s5 + $0x118] sm:$0xff] %vm3130_vm2, %v2877_v39  ;;  %3310 = vst.msk [vmem:[%s4660_s5 + $0x598] sm:$0xff] %vm3130_vm2, %v3021_v40  ;;  %v2875_v46 = vmax.f32 %v1823_v41, 0.0  ;;  %v3019_v47 = vmax.f32 %v2399_v42, 0.0  ;;  %v1844_v48 = vadd.f32 %v3971_v43, %v4648_v45  ;;  %v2420_v49 = vadd.f32 %v4115_v44, %v4648_v45  ;;  %4069 = vmatprep.mubr.msk.bf16.mxu0 %vm1218_vm1, %v4378_v35 }
 0x129   : > { %4213 = vmatprep.mubr.msk.bf16.mxu1 %vm1218_vm1, %v4379_v36  ;;  %v1835_v50 = vpop.f32.mrf.mxu0  ;;  %v2411_v51 = vpop.f32.mrf.mxu1 }
 0x12a   : > { %3164 = vst.msk [vmem:[%s4660_s5 + $0x108] sm:$0xff] %vm3130_vm2, %v2875_v46  ;;  %3308 = vst.msk [vmem:[%s4660_s5 + $0x588] sm:$0xff] %vm3130_vm2, %v3019_v47  ;;  %v2880_v52 = vmax.f32 %v1844_v48, 0.0  ;;  %v3024_v53 = vmax.f32 %v2420_v49, 0.0  ;;  %v1836_v54 = vadd.f32 %v4648_v45, %v1835_v50  ;;  %v2412_v55 = vadd.f32 %v4648_v45, %v2411_v51 }
 0x12b   : > { %v3972_v56 = vpop.f32.mrf.mxu0  ;;  %v4116_v57 = vpop.f32.mrf.mxu1 }
 0x12c   : > { %3169 = vst.msk [vmem:[%s4660_s5 + $0x130] sm:$0xff] %vm3130_vm2, %v2880_v52  ;;  %3313 = vst.msk [vmem:[%s4660_s5 + $0x5b0] sm:$0xff] %vm3130_vm2, %v3024_v53  ;;  %v2878_v60 = vmax.f32 %v1836_v54, 0.0  ;;  %v3022_v61 = vmax.f32 %v2412_v55, 0.0  ;;  %v1847_v62 = vadd.f32 %v3972_v56, %v4648_v45  ;;  %v2423_v63 = vadd.f32 %v4116_v57, %v4648_v45 }
 0x12d   : > { %v1838_v2 = vpop.f32.mrf.mxu0  ;;  %v2414_v3 = vpop.f32.mrf.mxu1 }
 0x12e   : > { %3167 = vst.msk [vmem:[%s4660_s5 + $0x120] sm:$0xff] %vm3130_vm2, %v2878_v60  ;;  %3311 = vst.msk [vmem:[%s4660_s5 + $0x5a0] sm:$0xff] %vm3130_vm2, %v3022_v61  ;;  %v2881_v4 = vmax.f32 %v1847_v62, 0.0  ;;  %v3025_v5 = vmax.f32 %v2423_v63, 0.0  ;;  %v1839_v6 = vadd.f32 %v4648_v45, %v1838_v2  ;;  %v2415_v7 = vadd.f32 %v4648_v45, %v2414_v3 }
 0x12f   : > { %v3975_v8 = vpop.f32.mrf.mxu0  ;;  %4070 = vmatmul.mubr.msk.bf16.gmra.mxu0 %vm1218_vm1, %v4380_v58  ;;  %v4119_v9 = vpop.f32.mrf.mxu1  ;;  %4214 = vmatmul.mubr.msk.bf16.gmra.mxu1 %vm1218_vm1, %v4381_v59 }
 0x130   : > { %3170 = vst.msk [vmem:[%s4660_s5 + $0x138] sm:$0xff] %vm3130_vm2, %v2881_v4  ;;  %3314 = vst.msk [vmem:[%s4660_s5 + $0x5b8] sm:$0xff] %vm3130_vm2, %v3025_v5  ;;  %v2879_v10 = vmax.f32 %v1839_v6, 0.0  ;;  %v3023_v11 = vmax.f32 %v2415_v7, 0.0  ;;  %v1860_v12 = vadd.f32 %v3975_v8, %v4648_v45  ;;  %v2436_v13 = vadd.f32 %v4119_v9, %v4648_v45  ;;  %4073 = vmatprep.mubr.msk.bf16.mxu0 %vm1218_vm1, %v4382_v0 }
 0x131   : > { %4217 = vmatprep.mubr.msk.bf16.mxu1 %vm1218_vm1, %v4383_v1  ;;  %v1851_v14 = vpop.f32.mrf.mxu0  ;;  %v2427_v15 = vpop.f32.mrf.mxu1 }
 0x132   : > { %3168 = vst.msk [vmem:[%s4660_s5 + $0x128] sm:$0xff] %vm3130_vm2, %v2879_v10  ;;  %3312 = vst.msk [vmem:[%s4660_s5 + $0x5a8] sm:$0xff] %vm3130_vm2, %v3023_v11  ;;  %v2884_v16 = vmax.f32 %v1860_v12, 0.0  ;;  %v3028_v17 = vmax.f32 %v2436_v13, 0.0  ;;  %v1852_v18 = vadd.f32 %v4648_v45, %v1851_v14  ;;  %v2428_v19 = vadd.f32 %v4648_v45, %v2427_v15 }
 0x133   : > { %v3976_v20 = vpop.f32.mrf.mxu0  ;;  %v4120_v21 = vpop.f32.mrf.mxu1 }
 0x134   : > { %3173 = vst.msk [vmem:[%s4660_s5 + $0x150] sm:$0xff] %vm3130_vm2, %v2884_v16  ;;  %3317 = vst.msk [vmem:[%s4660_s5 + $0x5d0] sm:$0xff] %vm3130_vm2, %v3028_v17  ;;  %v2882_v24 = vmax.f32 %v1852_v18, 0.0  ;;  %v3026_v25 = vmax.f32 %v2428_v19, 0.0  ;;  %v1863_v26 = vadd.f32 %v3976_v20, %v4648_v45  ;;  %v2439_v27 = vadd.f32 %v4120_v21, %v4648_v45 }
 0x135   : > { %v1854_v28 = vpop.f32.mrf.mxu0  ;;  %v2430_v29 = vpop.f32.mrf.mxu1 }
 0x136   : > { %3171 = vst.msk [vmem:[%s4660_s5 + $0x140] sm:$0xff] %vm3130_vm2, %v2882_v24  ;;  %3315 = vst.msk [vmem:[%s4660_s5 + $0x5c0] sm:$0xff] %vm3130_vm2, %v3026_v25  ;;  %v2885_v30 = vmax.f32 %v1863_v26, 0.0  ;;  %v3029_v31 = vmax.f32 %v2439_v27, 0.0  ;;  %v1855_v32 = vadd.f32 %v4648_v45, %v1854_v28  ;;  %v2431_v33 = vadd.f32 %v4648_v45, %v2430_v29  ;;  %v5061_v29 = vld [vmem:[%s5623_s2] ss:$0 sm:$0xff] }
 0x137   : > { %v3979_v34 = vpop.f32.mrf.mxu0  ;;  %4074 = vmatmul.mubr.msk.bf16.gmra.mxu0 %vm1218_vm1, %v4384_v22  ;;  %v4123_v35 = vpop.f32.mrf.mxu1  ;;  %4218 = vmatmul.mubr.msk.bf16.gmra.mxu1 %vm1218_vm1, %v4385_v23 }
 0x138   : > { %3174 = vst.msk [vmem:[%s4660_s5 + $0x158] sm:$0xff] %vm3130_vm2, %v2885_v30  ;;  %3318 = vst.msk [vmem:[%s4660_s5 + $0x5d8] sm:$0xff] %vm3130_vm2, %v3029_v31  ;;  %v2883_v36 = vmax.f32 %v1855_v32, 0.0  ;;  %v3027_v37 = vmax.f32 %v2431_v33, 0.0  ;;  %v1876_v38 = vadd.f32 %v3979_v34, %v4648_v45  ;;  %v2452_v39 = vadd.f32 %v4123_v35, %v4648_v45 }
 0x139   : > { %v1867_v40 = vpop.f32.mrf.mxu0  ;;  %v2443_v41 = vpop.f32.mrf.mxu1 }
 0x13a   : > { %3172 = vst.msk [vmem:[%s4660_s5 + $0x148] sm:$0xff] %vm3130_vm2, %v2883_v36  ;;  %3316 = vst.msk [vmem:[%s4660_s5 + $0x5c8] sm:$0xff] %vm3130_vm2, %v3027_v37  ;;  %v2888_v42 = vmax.f32 %v1876_v38, 0.0  ;;  %v3032_v43 = vmax.f32 %v2452_v39, 0.0  ;;  %v1868_v44 = vadd.f32 %v4648_v45, %v1867_v40  ;;  %v2444_v46 = vadd.f32 %v4648_v45, %v2443_v41 }
 0x13b   : > { %v3980_v47 = vpop.f32.mrf.mxu0  ;;  %v4124_v48 = vpop.f32.mrf.mxu1 }
 0x13c   : > { %3177 = vst.msk [vmem:[%s4660_s5 + $0x170] sm:$0xff] %vm3130_vm2, %v2888_v42  ;;  %3321 = vst.msk [vmem:[%s4660_s5 + $0x5f0] sm:$0xff] %vm3130_vm2, %v3032_v43  ;;  %v2886_v49 = vmax.f32 %v1868_v44, 0.0  ;;  %v3030_v50 = vmax.f32 %v2444_v46, 0.0  ;;  %v1879_v51 = vadd.f32 %v3980_v47, %v4648_v45  ;;  %v2455_v52 = vadd.f32 %v4124_v48, %v4648_v45 }
 0x13d   : > { %v1870_v53 = vpop.f32.mrf.mxu0  ;;  %v2446_v54 = vpop.f32.mrf.mxu1 }
 0x13e   : > { %3175 = vst.msk [vmem:[%s4660_s5 + $0x160] sm:$0xff] %vm3130_vm2, %v2886_v49  ;;  %3319 = vst.msk [vmem:[%s4660_s5 + $0x5e0] sm:$0xff] %vm3130_vm2, %v3030_v50  ;;  %v2889_v55 = vmax.f32 %v1879_v51, 0.0  ;;  %v3033_v56 = vmax.f32 %v2455_v52, 0.0  ;;  %v1871_v57 = vadd.f32 %v4648_v45, %v1870_v53  ;;  %v2447_v58 = vadd.f32 %v4648_v45, %v2446_v54 }
 0x13f   : > { %v3983_v59 = vpop.f32.mrf.mxu0  ;;  %v4127_v60 = vpop.f32.mrf.mxu1 }
 0x140   : > { %3178 = vst.msk [vmem:[%s4660_s5 + $0x178] sm:$0xff] %vm3130_vm2, %v2889_v55  ;;  %3322 = vst.msk [vmem:[%s4660_s5 + $0x5f8] sm:$0xff] %vm3130_vm2, %v3033_v56  ;;  %v2887_v61 = vmax.f32 %v1871_v57, 0.0  ;;  %v3031_v62 = vmax.f32 %v2447_v58, 0.0  ;;  %v1892_v63 = vadd.f32 %v3983_v59, %v4648_v45  ;;  %v2468_v0 = vadd.f32 %v4127_v60, %v4648_v45 }
 0x141   : > { %v1883_v1 = vpop.f32.mrf.mxu0  ;;  %v2459_v2 = vpop.f32.mrf.mxu1 }
 0x142   : > { %3176 = vst.msk [vmem:[%s4660_s5 + $0x168] sm:$0xff] %vm3130_vm2, %v2887_v61  ;;  %3320 = vst.msk [vmem:[%s4660_s5 + $0x5e8] sm:$0xff] %vm3130_vm2, %v3031_v62  ;;  %v2892_v3 = vmax.f32 %v1892_v63, 0.0  ;;  %v3036_v4 = vmax.f32 %v2468_v0, 0.0  ;;  %v1884_v5 = vadd.f32 %v4648_v45, %v1883_v1  ;;  %v2460_v6 = vadd.f32 %v4648_v45, %v2459_v2 }
 0x143   : > { %v3984_v7 = vpop.f32.mrf.mxu0  ;;  %v4128_v8 = vpop.f32.mrf.mxu1 }
 0x144   : > { %3181 = vst.msk [vmem:[%s4660_s5 + $0x190] sm:$0xff] %vm3130_vm2, %v2892_v3  ;;  %3325 = vst.msk [vmem:[%s4660_s5 + $0x610] sm:$0xff] %vm3130_vm2, %v3036_v4  ;;  %v2890_v9 = vmax.f32 %v1884_v5, 0.0  ;;  %v3034_v10 = vmax.f32 %v2460_v6, 0.0  ;;  %v1895_v11 = vadd.f32 %v3984_v7, %v4648_v45  ;;  %v2471_v12 = vadd.f32 %v4128_v8, %v4648_v45 }
 0x145   : > { %v1886_v13 = vpop.f32.mrf.mxu0  ;;  %v2462_v14 = vpop.f32.mrf.mxu1 }
 0x146   : > { %3179 = vst.msk [vmem:[%s4660_s5 + $0x180] sm:$0xff] %vm3130_vm2, %v2890_v9  ;;  %3323 = vst.msk [vmem:[%s4660_s5 + $0x600] sm:$0xff] %vm3130_vm2, %v3034_v10  ;;  %v2893_v15 = vmax.f32 %v1895_v11, 0.0  ;;  %v3037_v16 = vmax.f32 %v2471_v12, 0.0  ;;  %v1887_v17 = vadd.f32 %v4648_v45, %v1886_v13  ;;  %v2463_v18 = vadd.f32 %v4648_v45, %v2462_v14 }
 0x147   : > { %v3987_v19 = vpop.f32.mrf.mxu0  ;;  %v4131_v20 = vpop.f32.mrf.mxu1 }
 0x148   : > { %3182 = vst.msk [vmem:[%s4660_s5 + $0x198] sm:$0xff] %vm3130_vm2, %v2893_v15  ;;  %3326 = vst.msk [vmem:[%s4660_s5 + $0x618] sm:$0xff] %vm3130_vm2, %v3037_v16  ;;  %v2891_v21 = vmax.f32 %v1887_v17, 0.0  ;;  %v3035_v22 = vmax.f32 %v2463_v18, 0.0  ;;  %v1908_v23 = vadd.f32 %v3987_v19, %v4648_v45  ;;  %v2484_v24 = vadd.f32 %v4131_v20, %v4648_v45 }
 0x149   : > { %v1899_v25 = vpop.f32.mrf.mxu0  ;;  %v2475_v26 = vpop.f32.mrf.mxu1 }
 0x14a   : > { %3180 = vst.msk [vmem:[%s4660_s5 + $0x188] sm:$0xff] %vm3130_vm2, %v2891_v21  ;;  %3324 = vst.msk [vmem:[%s4660_s5 + $0x608] sm:$0xff] %vm3130_vm2, %v3035_v22  ;;  %v2896_v27 = vmax.f32 %v1908_v23, 0.0  ;;  %v3040_v28 = vmax.f32 %v2484_v24, 0.0  ;;  %v1900_v30 = vadd.f32 %v5061_v29, %v1899_v25  ;;  %v2476_v31 = vadd.f32 %v5061_v29, %v2475_v26 }
 0x14b   : > { %v3988_v45 = vpop.f32.mrf.mxu0  ;;  %v4132_v32 = vpop.f32.mrf.mxu1 }
 0x14c   : > { %3185 = vst.msk [vmem:[%s4660_s5 + $0x1b0] sm:$0xff] %vm3130_vm2, %v2896_v27  ;;  %3329 = vst.msk [vmem:[%s4660_s5 + $0x630] sm:$0xff] %vm3130_vm2, %v3040_v28  ;;  %v2894_v33 = vmax.f32 %v1900_v30, 0.0  ;;  %v3038_v34 = vmax.f32 %v2476_v31, 0.0  ;;  %v1911_v35 = vadd.f32 %v5061_v29, %v3988_v45  ;;  %v2487_v36 = vadd.f32 %v5061_v29, %v4132_v32 }
 0x14d   : > { %v1902_v37 = vpop.f32.mrf.mxu0  ;;  %v2478_v38 = vpop.f32.mrf.mxu1 }
 0x14e   : > { %3183 = vst.msk [vmem:[%s4660_s5 + $0x1a0] sm:$0xff] %vm3130_vm2, %v2894_v33  ;;  %3327 = vst.msk [vmem:[%s4660_s5 + $0x620] sm:$0xff] %vm3130_vm2, %v3038_v34  ;;  %v2897_v39 = vmax.f32 %v1911_v35, 0.0  ;;  %v3041_v40 = vmax.f32 %v2487_v36, 0.0  ;;  %v1903_v41 = vadd.f32 %v5061_v29, %v1902_v37  ;;  %v2479_v42 = vadd.f32 %v5061_v29, %v2478_v38 }
 0x14f   : > { %v3991_v43 = vpop.f32.mrf.mxu0  ;;  %v4135_v44 = vpop.f32.mrf.mxu1 }
 0x150   : > { %3186 = vst.msk [vmem:[%s4660_s5 + $0x1b8] sm:$0xff] %vm3130_vm2, %v2897_v39  ;;  %3330 = vst.msk [vmem:[%s4660_s5 + $0x638] sm:$0xff] %vm3130_vm2, %v3041_v40  ;;  %v2895_v46 = vmax.f32 %v1903_v41, 0.0  ;;  %v3039_v47 = vmax.f32 %v2479_v42, 0.0  ;;  %v1924_v48 = vadd.f32 %v5061_v29, %v3991_v43  ;;  %v2500_v49 = vadd.f32 %v5061_v29, %v4135_v44 }
 0x151   : > { %v1915_v50 = vpop.f32.mrf.mxu0  ;;  %v2491_v51 = vpop.f32.mrf.mxu1 }
 0x152   : > { %3184 = vst.msk [vmem:[%s4660_s5 + $0x1a8] sm:$0xff] %vm3130_vm2, %v2895_v46  ;;  %3328 = vst.msk [vmem:[%s4660_s5 + $0x628] sm:$0xff] %vm3130_vm2, %v3039_v47  ;;  %v2900_v52 = vmax.f32 %v1924_v48, 0.0  ;;  %v3044_v53 = vmax.f32 %v2500_v49, 0.0  ;;  %v1916_v54 = vadd.f32 %v5061_v29, %v1915_v50  ;;  %v2492_v55 = vadd.f32 %v5061_v29, %v2491_v51 }
 0x153   : > { %v3992_v56 = vpop.f32.mrf.mxu0  ;;  %v4136_v57 = vpop.f32.mrf.mxu1 }
 0x154   : > { %3189 = vst.msk [vmem:[%s4660_s5 + $0x1d0] sm:$0xff] %vm3130_vm2, %v2900_v52  ;;  %3333 = vst.msk [vmem:[%s4660_s5 + $0x650] sm:$0xff] %vm3130_vm2, %v3044_v53  ;;  %v2898_v58 = vmax.f32 %v1916_v54, 0.0  ;;  %v3042_v59 = vmax.f32 %v2492_v55, 0.0  ;;  %v1927_v60 = vadd.f32 %v5061_v29, %v3992_v56  ;;  %v2503_v61 = vadd.f32 %v5061_v29, %v4136_v57 }
 0x155   : > { %v1918_v62 = vpop.f32.mrf.mxu0  ;;  %v2494_v63 = vpop.f32.mrf.mxu1 }
 0x156   : > { %3187 = vst.msk [vmem:[%s4660_s5 + $0x1c0] sm:$0xff] %vm3130_vm2, %v2898_v58  ;;  %3331 = vst.msk [vmem:[%s4660_s5 + $0x640] sm:$0xff] %vm3130_vm2, %v3042_v59  ;;  %v2901_v0 = vmax.f32 %v1927_v60, 0.0  ;;  %v3045_v1 = vmax.f32 %v2503_v61, 0.0  ;;  %v1919_v2 = vadd.f32 %v5061_v29, %v1918_v62  ;;  %v2495_v3 = vadd.f32 %v5061_v29, %v2494_v63 }
 0x157   : > { %v3995_v4 = vpop.f32.mrf.mxu0  ;;  %v4139_v5 = vpop.f32.mrf.mxu1 }
 0x158   : > { %3190 = vst.msk [vmem:[%s4660_s5 + $0x1d8] sm:$0xff] %vm3130_vm2, %v2901_v0  ;;  %3334 = vst.msk [vmem:[%s4660_s5 + $0x658] sm:$0xff] %vm3130_vm2, %v3045_v1  ;;  %v2899_v6 = vmax.f32 %v1919_v2, 0.0  ;;  %v3043_v7 = vmax.f32 %v2495_v3, 0.0  ;;  %v1940_v8 = vadd.f32 %v5061_v29, %v3995_v4  ;;  %v2516_v9 = vadd.f32 %v5061_v29, %v4139_v5 }
 0x159   : > { %v1931_v10 = vpop.f32.mrf.mxu0  ;;  %v2507_v11 = vpop.f32.mrf.mxu1 }
 0x15a   : > { %3188 = vst.msk [vmem:[%s4660_s5 + $0x1c8] sm:$0xff] %vm3130_vm2, %v2899_v6  ;;  %3332 = vst.msk [vmem:[%s4660_s5 + $0x648] sm:$0xff] %vm3130_vm2, %v3043_v7  ;;  %v2904_v12 = vmax.f32 %v1940_v8, 0.0  ;;  %v3048_v13 = vmax.f32 %v2516_v9, 0.0  ;;  %v1932_v14 = vadd.f32 %v5061_v29, %v1931_v10  ;;  %v2508_v15 = vadd.f32 %v5061_v29, %v2507_v11 }
 0x15b   : > { %v3996_v16 = vpop.f32.mrf.mxu0  ;;  %v4140_v17 = vpop.f32.mrf.mxu1 }
 0x15c   : > { %3193 = vst.msk [vmem:[%s4660_s5 + $0x1f0] sm:$0xff] %vm3130_vm2, %v2904_v12  ;;  %3337 = vst.msk [vmem:[%s4660_s5 + $0x670] sm:$0xff] %vm3130_vm2, %v3048_v13  ;;  %v2902_v18 = vmax.f32 %v1932_v14, 0.0  ;;  %v3046_v19 = vmax.f32 %v2508_v15, 0.0  ;;  %v1943_v20 = vadd.f32 %v5061_v29, %v3996_v16  ;;  %v2519_v21 = vadd.f32 %v5061_v29, %v4140_v17 }
 0x15d   : > { %v1934_v22 = vpop.f32.mrf.mxu0  ;;  %v2510_v23 = vpop.f32.mrf.mxu1 }
 0x15e   : > { %3191 = vst.msk [vmem:[%s4660_s5 + $0x1e0] sm:$0xff] %vm3130_vm2, %v2902_v18  ;;  %3335 = vst.msk [vmem:[%s4660_s5 + $0x660] sm:$0xff] %vm3130_vm2, %v3046_v19  ;;  %v2905_v24 = vmax.f32 %v1943_v20, 0.0  ;;  %v3049_v25 = vmax.f32 %v2519_v21, 0.0  ;;  %v1935_v26 = vadd.f32 %v5061_v29, %v1934_v22  ;;  %v2511_v27 = vadd.f32 %v5061_v29, %v2510_v23 }
 0x15f   : > { %v3999_v28 = vpop.f32.mrf.mxu0  ;;  %v4143_v30 = vpop.f32.mrf.mxu1 }
 0x160   : > { %3194 = vst.msk [vmem:[%s4660_s5 + $0x1f8] sm:$0xff] %vm3130_vm2, %v2905_v24  ;;  %3338 = vst.msk [vmem:[%s4660_s5 + $0x678] sm:$0xff] %vm3130_vm2, %v3049_v25  ;;  %v2903_v31 = vmax.f32 %v1935_v26, 0.0  ;;  %v3047_v45 = vmax.f32 %v2511_v27, 0.0  ;;  %v1956_v32 = vadd.f32 %v5061_v29, %v3999_v28  ;;  %v2532_v33 = vadd.f32 %v5061_v29, %v4143_v30 }
 0x161   : > { %v1947_v34 = vpop.f32.mrf.mxu0  ;;  %v2523_v35 = vpop.f32.mrf.mxu1 }
 0x162   : > { %3192 = vst.msk [vmem:[%s4660_s5 + $0x1e8] sm:$0xff] %vm3130_vm2, %v2903_v31  ;;  %3336 = vst.msk [vmem:[%s4660_s5 + $0x668] sm:$0xff] %vm3130_vm2, %v3047_v45  ;;  %v2908_v36 = vmax.f32 %v1956_v32, 0.0  ;;  %v3052_v37 = vmax.f32 %v2532_v33, 0.0  ;;  %v1948_v38 = vadd.f32 %v5061_v29, %v1947_v34  ;;  %v2524_v39 = vadd.f32 %v5061_v29, %v2523_v35 }
 0x163   : > { %v4000_v40 = vpop.f32.mrf.mxu0  ;;  %v4144_v41 = vpop.f32.mrf.mxu1 }
 0x164   : > { %3197 = vst.msk [vmem:[%s4660_s5 + $0x210] sm:$0xff] %vm3130_vm2, %v2908_v36  ;;  %3341 = vst.msk [vmem:[%s4660_s5 + $0x690] sm:$0xff] %vm3130_vm2, %v3052_v37  ;;  %v2906_v42 = vmax.f32 %v1948_v38, 0.0  ;;  %v3050_v43 = vmax.f32 %v2524_v39, 0.0  ;;  %v1959_v44 = vadd.f32 %v5061_v29, %v4000_v40  ;;  %v2535_v46 = vadd.f32 %v5061_v29, %v4144_v41 }
 0x165   : > { %v1950_v47 = vpop.f32.mrf.mxu0  ;;  %v2526_v48 = vpop.f32.mrf.mxu1 }
 0x166   : > { %3195 = vst.msk [vmem:[%s4660_s5 + $0x200] sm:$0xff] %vm3130_vm2, %v2906_v42  ;;  %3339 = vst.msk [vmem:[%s4660_s5 + $0x680] sm:$0xff] %vm3130_vm2, %v3050_v43  ;;  %v2909_v49 = vmax.f32 %v1959_v44, 0.0  ;;  %v3053_v50 = vmax.f32 %v2535_v46, 0.0  ;;  %v1951_v51 = vadd.f32 %v5061_v29, %v1950_v47  ;;  %v2527_v52 = vadd.f32 %v5061_v29, %v2526_v48 }
 0x167   : > { %v4003_v53 = vpop.f32.mrf.mxu0  ;;  %v4147_v54 = vpop.f32.mrf.mxu1 }
 0x168   : > { %3198 = vst.msk [vmem:[%s4660_s5 + $0x218] sm:$0xff] %vm3130_vm2, %v2909_v49  ;;  %3342 = vst.msk [vmem:[%s4660_s5 + $0x698] sm:$0xff] %vm3130_vm2, %v3053_v50  ;;  %v2907_v55 = vmax.f32 %v1951_v51, 0.0  ;;  %v3051_v56 = vmax.f32 %v2527_v52, 0.0  ;;  %v1972_v57 = vadd.f32 %v5061_v29, %v4003_v53  ;;  %v2548_v58 = vadd.f32 %v5061_v29, %v4147_v54 }
 0x169   : > { %v1963_v59 = vpop.f32.mrf.mxu0  ;;  %v2539_v60 = vpop.f32.mrf.mxu1 }
 0x16a   : > { %3196 = vst.msk [vmem:[%s4660_s5 + $0x208] sm:$0xff] %vm3130_vm2, %v2907_v55  ;;  %3340 = vst.msk [vmem:[%s4660_s5 + $0x688] sm:$0xff] %vm3130_vm2, %v3051_v56  ;;  %v2912_v61 = vmax.f32 %v1972_v57, 0.0  ;;  %v3056_v62 = vmax.f32 %v2548_v58, 0.0  ;;  %v1964_v63 = vadd.f32 %v5061_v29, %v1963_v59  ;;  %v2540_v0 = vadd.f32 %v5061_v29, %v2539_v60 }
 0x16b   : > { %v4004_v1 = vpop.f32.mrf.mxu0  ;;  %v4148_v2 = vpop.f32.mrf.mxu1 }
 0x16c   : > { %3201 = vst.msk [vmem:[%s4660_s5 + $0x230] sm:$0xff] %vm3130_vm2, %v2912_v61  ;;  %3345 = vst.msk [vmem:[%s4660_s5 + $0x6b0] sm:$0xff] %vm3130_vm2, %v3056_v62  ;;  %v2910_v3 = vmax.f32 %v1964_v63, 0.0  ;;  %v3054_v4 = vmax.f32 %v2540_v0, 0.0  ;;  %v1975_v5 = vadd.f32 %v5061_v29, %v4004_v1  ;;  %v2551_v6 = vadd.f32 %v5061_v29, %v4148_v2 }
 0x16d   : > { %v1966_v7 = vpop.f32.mrf.mxu0  ;;  %v2542_v8 = vpop.f32.mrf.mxu1 }
 0x16e   : > { %3199 = vst.msk [vmem:[%s4660_s5 + $0x220] sm:$0xff] %vm3130_vm2, %v2910_v3  ;;  %3343 = vst.msk [vmem:[%s4660_s5 + $0x6a0] sm:$0xff] %vm3130_vm2, %v3054_v4  ;;  %v2913_v9 = vmax.f32 %v1975_v5, 0.0  ;;  %v3057_v10 = vmax.f32 %v2551_v6, 0.0  ;;  %v1967_v11 = vadd.f32 %v5061_v29, %v1966_v7  ;;  %v2543_v12 = vadd.f32 %v5061_v29, %v2542_v8 }
 0x16f   : > { %v4007_v13 = vpop.f32.mrf.mxu0  ;;  %v4151_v14 = vpop.f32.mrf.mxu1 }
 0x170   : > { %3202 = vst.msk [vmem:[%s4660_s5 + $0x238] sm:$0xff] %vm3130_vm2, %v2913_v9  ;;  %3346 = vst.msk [vmem:[%s4660_s5 + $0x6b8] sm:$0xff] %vm3130_vm2, %v3057_v10  ;;  %v2911_v15 = vmax.f32 %v1967_v11, 0.0  ;;  %v3055_v16 = vmax.f32 %v2543_v12, 0.0  ;;  %v1988_v17 = vadd.f32 %v5061_v29, %v4007_v13  ;;  %v2564_v18 = vadd.f32 %v5061_v29, %v4151_v14 }
 0x171   : > { %v1979_v19 = vpop.f32.mrf.mxu0  ;;  %v2555_v20 = vpop.f32.mrf.mxu1 }
 0x172   : > { %3200 = vst.msk [vmem:[%s4660_s5 + $0x228] sm:$0xff] %vm3130_vm2, %v2911_v15  ;;  %3344 = vst.msk [vmem:[%s4660_s5 + $0x6a8] sm:$0xff] %vm3130_vm2, %v3055_v16  ;;  %v2916_v21 = vmax.f32 %v1988_v17, 0.0  ;;  %v3060_v22 = vmax.f32 %v2564_v18, 0.0  ;;  %v1980_v23 = vadd.f32 %v5061_v29, %v1979_v19  ;;  %v2556_v24 = vadd.f32 %v5061_v29, %v2555_v20 }
 0x173   : > { %v4008_v25 = vpop.f32.mrf.mxu0  ;;  %v4152_v26 = vpop.f32.mrf.mxu1 }
 0x174   : > { %3205 = vst.msk [vmem:[%s4660_s5 + $0x250] sm:$0xff] %vm3130_vm2, %v2916_v21  ;;  %3349 = vst.msk [vmem:[%s4660_s5 + $0x6d0] sm:$0xff] %vm3130_vm2, %v3060_v22  ;;  %v2914_v27 = vmax.f32 %v1980_v23, 0.0  ;;  %v3058_v28 = vmax.f32 %v2556_v24, 0.0  ;;  %v1991_v30 = vadd.f32 %v5061_v29, %v4008_v25  ;;  %v2567_v31 = vadd.f32 %v5061_v29, %v4152_v26 }
 0x175   : > { %v1982_v45 = vpop.f32.mrf.mxu0  ;;  %v2558_v32 = vpop.f32.mrf.mxu1 }
 0x176   : > { %3203 = vst.msk [vmem:[%s4660_s5 + $0x240] sm:$0xff] %vm3130_vm2, %v2914_v27  ;;  %3347 = vst.msk [vmem:[%s4660_s5 + $0x6c0] sm:$0xff] %vm3130_vm2, %v3058_v28  ;;  %v2917_v33 = vmax.f32 %v1991_v30, 0.0  ;;  %v3061_v34 = vmax.f32 %v2567_v31, 0.0  ;;  %v1983_v35 = vadd.f32 %v5061_v29, %v1982_v45  ;;  %v2559_v36 = vadd.f32 %v5061_v29, %v2558_v32 }
 0x177   : > { %v4011_v37 = vpop.f32.mrf.mxu0  ;;  %v4155_v38 = vpop.f32.mrf.mxu1 }
 0x178   : > { %3206 = vst.msk [vmem:[%s4660_s5 + $0x258] sm:$0xff] %vm3130_vm2, %v2917_v33  ;;  %3350 = vst.msk [vmem:[%s4660_s5 + $0x6d8] sm:$0xff] %vm3130_vm2, %v3061_v34  ;;  %v2915_v39 = vmax.f32 %v1983_v35, 0.0  ;;  %v3059_v40 = vmax.f32 %v2559_v36, 0.0  ;;  %v2004_v41 = vadd.f32 %v5061_v29, %v4011_v37  ;;  %v2580_v42 = vadd.f32 %v5061_v29, %v4155_v38 }
 0x179   : > { %v1995_v43 = vpop.f32.mrf.mxu0  ;;  %v2571_v44 = vpop.f32.mrf.mxu1 }
 0x17a   : > { %3204 = vst.msk [vmem:[%s4660_s5 + $0x248] sm:$0xff] %vm3130_vm2, %v2915_v39  ;;  %3348 = vst.msk [vmem:[%s4660_s5 + $0x6c8] sm:$0xff] %vm3130_vm2, %v3059_v40  ;;  %v2920_v46 = vmax.f32 %v2004_v41, 0.0  ;;  %v3064_v47 = vmax.f32 %v2580_v42, 0.0  ;;  %v1996_v48 = vadd.f32 %v5061_v29, %v1995_v43  ;;  %v2572_v49 = vadd.f32 %v5061_v29, %v2571_v44 }
 0x17b   : > { %v4012_v50 = vpop.f32.mrf.mxu0  ;;  %v4156_v51 = vpop.f32.mrf.mxu1 }
 0x17c   : > { %3209 = vst.msk [vmem:[%s4660_s5 + $0x270] sm:$0xff] %vm3130_vm2, %v2920_v46  ;;  %3353 = vst.msk [vmem:[%s4660_s5 + $0x6f0] sm:$0xff] %vm3130_vm2, %v3064_v47  ;;  %v2918_v52 = vmax.f32 %v1996_v48, 0.0  ;;  %v3062_v53 = vmax.f32 %v2572_v49, 0.0  ;;  %v2007_v54 = vadd.f32 %v5061_v29, %v4012_v50  ;;  %v2583_v55 = vadd.f32 %v5061_v29, %v4156_v51 }
 0x17d   : > { %v1998_v56 = vpop.f32.mrf.mxu0  ;;  %v2574_v57 = vpop.f32.mrf.mxu1 }
 0x17e   : > { %3207 = vst.msk [vmem:[%s4660_s5 + $0x260] sm:$0xff] %vm3130_vm2, %v2918_v52  ;;  %3351 = vst.msk [vmem:[%s4660_s5 + $0x6e0] sm:$0xff] %vm3130_vm2, %v3062_v53  ;;  %v2921_v58 = vmax.f32 %v2007_v54, 0.0  ;;  %v3065_v59 = vmax.f32 %v2583_v55, 0.0  ;;  %v1999_v60 = vadd.f32 %v5061_v29, %v1998_v56  ;;  %v2575_v61 = vadd.f32 %v5061_v29, %v2574_v57 }
 0x17f   : > { %v4015_v62 = vpop.f32.mrf.mxu0  ;;  %v4159_v63 = vpop.f32.mrf.mxu1 }
 0x180   : > { %3210 = vst.msk [vmem:[%s4660_s5 + $0x278] sm:$0xff] %vm3130_vm2, %v2921_v58  ;;  %3354 = vst.msk [vmem:[%s4660_s5 + $0x6f8] sm:$0xff] %vm3130_vm2, %v3065_v59  ;;  %v2919_v0 = vmax.f32 %v1999_v60, 0.0  ;;  %v3063_v1 = vmax.f32 %v2575_v61, 0.0  ;;  %v2020_v2 = vadd.f32 %v5061_v29, %v4015_v62  ;;  %v2596_v3 = vadd.f32 %v5061_v29, %v4159_v63 }
 0x181   : > { %v2011_v4 = vpop.f32.mrf.mxu0  ;;  %v2587_v5 = vpop.f32.mrf.mxu1 }
 0x182   : > { %3208 = vst.msk [vmem:[%s4660_s5 + $0x268] sm:$0xff] %vm3130_vm2, %v2919_v0  ;;  %3352 = vst.msk [vmem:[%s4660_s5 + $0x6e8] sm:$0xff] %vm3130_vm2, %v3063_v1  ;;  %v2924_v6 = vmax.f32 %v2020_v2, 0.0  ;;  %v3068_v7 = vmax.f32 %v2596_v3, 0.0  ;;  %v2012_v8 = vadd.f32 %v5061_v29, %v2011_v4  ;;  %v2588_v9 = vadd.f32 %v5061_v29, %v2587_v5 }
 0x183   : > { %v4016_v10 = vpop.f32.mrf.mxu0  ;;  %v4160_v11 = vpop.f32.mrf.mxu1 }
 0x184   : > { %3213 = vst.msk [vmem:[%s4660_s5 + $0x290] sm:$0xff] %vm3130_vm2, %v2924_v6  ;;  %3357 = vst.msk [vmem:[%s4660_s5 + $0x710] sm:$0xff] %vm3130_vm2, %v3068_v7  ;;  %v2922_v12 = vmax.f32 %v2012_v8, 0.0  ;;  %v3066_v13 = vmax.f32 %v2588_v9, 0.0  ;;  %v2023_v14 = vadd.f32 %v5061_v29, %v4016_v10  ;;  %v2599_v15 = vadd.f32 %v5061_v29, %v4160_v11 }
 0x185   : > { %v2014_v16 = vpop.f32.mrf.mxu0  ;;  %v2590_v17 = vpop.f32.mrf.mxu1 }
 0x186   : > { %3211 = vst.msk [vmem:[%s4660_s5 + $0x280] sm:$0xff] %vm3130_vm2, %v2922_v12  ;;  %3355 = vst.msk [vmem:[%s4660_s5 + $0x700] sm:$0xff] %vm3130_vm2, %v3066_v13  ;;  %v2925_v18 = vmax.f32 %v2023_v14, 0.0  ;;  %v3069_v19 = vmax.f32 %v2599_v15, 0.0  ;;  %v2015_v20 = vadd.f32 %v5061_v29, %v2014_v16  ;;  %v2591_v21 = vadd.f32 %v5061_v29, %v2590_v17 }
 0x187   : > { %v4019_v22 = vpop.f32.mrf.mxu0  ;;  %v4163_v23 = vpop.f32.mrf.mxu1 }
 0x188   : > { %3214 = vst.msk [vmem:[%s4660_s5 + $0x298] sm:$0xff] %vm3130_vm2, %v2925_v18  ;;  %3358 = vst.msk [vmem:[%s4660_s5 + $0x718] sm:$0xff] %vm3130_vm2, %v3069_v19  ;;  %v2923_v24 = vmax.f32 %v2015_v20, 0.0  ;;  %v3067_v25 = vmax.f32 %v2591_v21, 0.0  ;;  %v2036_v26 = vadd.f32 %v5061_v29, %v4019_v22  ;;  %v2612_v27 = vadd.f32 %v5061_v29, %v4163_v23 }
 0x189   : > { %v2027_v28 = vpop.f32.mrf.mxu0  ;;  %v2603_v30 = vpop.f32.mrf.mxu1 }
 0x18a   : > { %3212 = vst.msk [vmem:[%s4660_s5 + $0x288] sm:$0xff] %vm3130_vm2, %v2923_v24  ;;  %3356 = vst.msk [vmem:[%s4660_s5 + $0x708] sm:$0xff] %vm3130_vm2, %v3067_v25  ;;  %v2928_v31 = vmax.f32 %v2036_v26, 0.0  ;;  %v3072_v45 = vmax.f32 %v2612_v27, 0.0  ;;  %v2028_v32 = vadd.f32 %v5061_v29, %v2027_v28  ;;  %v2604_v33 = vadd.f32 %v5061_v29, %v2603_v30 }
 0x18b   : > { %v4020_v34 = vpop.f32.mrf.mxu0  ;;  %v4164_v35 = vpop.f32.mrf.mxu1 }
 0x18c   : > { %3217 = vst.msk [vmem:[%s4660_s5 + $0x2b0] sm:$0xff] %vm3130_vm2, %v2928_v31  ;;  %3361 = vst.msk [vmem:[%s4660_s5 + $0x730] sm:$0xff] %vm3130_vm2, %v3072_v45  ;;  %v2926_v36 = vmax.f32 %v2028_v32, 0.0  ;;  %v3070_v37 = vmax.f32 %v2604_v33, 0.0  ;;  %v2039_v38 = vadd.f32 %v5061_v29, %v4020_v34  ;;  %v2615_v39 = vadd.f32 %v5061_v29, %v4164_v35 }
 0x18d   : > { %v2030_v40 = vpop.f32.mrf.mxu0  ;;  %v2606_v41 = vpop.f32.mrf.mxu1 }
 0x18e   : > { %3215 = vst.msk [vmem:[%s4660_s5 + $0x2a0] sm:$0xff] %vm3130_vm2, %v2926_v36  ;;  %3359 = vst.msk [vmem:[%s4660_s5 + $0x720] sm:$0xff] %vm3130_vm2, %v3070_v37  ;;  %v2929_v42 = vmax.f32 %v2039_v38, 0.0  ;;  %v3073_v43 = vmax.f32 %v2615_v39, 0.0  ;;  %v2031_v44 = vadd.f32 %v5061_v29, %v2030_v40  ;;  %v2607_v46 = vadd.f32 %v5061_v29, %v2606_v41 }
 0x18f   : > { %v4023_v47 = vpop.f32.mrf.mxu0  ;;  %v4167_v48 = vpop.f32.mrf.mxu1 }
 0x190   : > { %3218 = vst.msk [vmem:[%s4660_s5 + $0x2b8] sm:$0xff] %vm3130_vm2, %v2929_v42  ;;  %3362 = vst.msk [vmem:[%s4660_s5 + $0x738] sm:$0xff] %vm3130_vm2, %v3073_v43  ;;  %v2927_v49 = vmax.f32 %v2031_v44, 0.0  ;;  %v3071_v50 = vmax.f32 %v2607_v46, 0.0  ;;  %v2052_v51 = vadd.f32 %v5061_v29, %v4023_v47  ;;  %v2628_v52 = vadd.f32 %v5061_v29, %v4167_v48 }
 0x191   : > { %v2043_v53 = vpop.f32.mrf.mxu0  ;;  %v2619_v54 = vpop.f32.mrf.mxu1 }
 0x192   : > { %3216 = vst.msk [vmem:[%s4660_s5 + $0x2a8] sm:$0xff] %vm3130_vm2, %v2927_v49  ;;  %3360 = vst.msk [vmem:[%s4660_s5 + $0x728] sm:$0xff] %vm3130_vm2, %v3071_v50  ;;  %v2932_v55 = vmax.f32 %v2052_v51, 0.0  ;;  %v3076_v56 = vmax.f32 %v2628_v52, 0.0  ;;  %v2044_v57 = vadd.f32 %v5061_v29, %v2043_v53  ;;  %v2620_v58 = vadd.f32 %v5061_v29, %v2619_v54 }
 0x193   : > { %v4024_v59 = vpop.f32.mrf.mxu0  ;;  %v4168_v60 = vpop.f32.mrf.mxu1 }
 0x194   : > { %3221 = vst.msk [vmem:[%s4660_s5 + $0x2d0] sm:$0xff] %vm3130_vm2, %v2932_v55  ;;  %3365 = vst.msk [vmem:[%s4660_s5 + $0x750] sm:$0xff] %vm3130_vm2, %v3076_v56  ;;  %v2930_v61 = vmax.f32 %v2044_v57, 0.0  ;;  %v3074_v62 = vmax.f32 %v2620_v58, 0.0  ;;  %v2055_v63 = vadd.f32 %v5061_v29, %v4024_v59  ;;  %v2631_v0 = vadd.f32 %v5061_v29, %v4168_v60 }
 0x195   : > { %v2046_v1 = vpop.f32.mrf.mxu0  ;;  %v2622_v2 = vpop.f32.mrf.mxu1 }
 0x196   : > { %3219 = vst.msk [vmem:[%s4660_s5 + $0x2c0] sm:$0xff] %vm3130_vm2, %v2930_v61  ;;  %3363 = vst.msk [vmem:[%s4660_s5 + $0x740] sm:$0xff] %vm3130_vm2, %v3074_v62  ;;  %v2933_v3 = vmax.f32 %v2055_v63, 0.0  ;;  %v3077_v4 = vmax.f32 %v2631_v0, 0.0  ;;  %v2047_v5 = vadd.f32 %v5061_v29, %v2046_v1  ;;  %v2623_v6 = vadd.f32 %v5061_v29, %v2622_v2 }
 0x197   : > { %v4027_v7 = vpop.f32.mrf.mxu0  ;;  %v4171_v8 = vpop.f32.mrf.mxu1 }
 0x198   : > { %3222 = vst.msk [vmem:[%s4660_s5 + $0x2d8] sm:$0xff] %vm3130_vm2, %v2933_v3  ;;  %3366 = vst.msk [vmem:[%s4660_s5 + $0x758] sm:$0xff] %vm3130_vm2, %v3077_v4  ;;  %v2931_v9 = vmax.f32 %v2047_v5, 0.0  ;;  %v3075_v10 = vmax.f32 %v2623_v6, 0.0  ;;  %v2068_v11 = vadd.f32 %v5061_v29, %v4027_v7  ;;  %v2644_v12 = vadd.f32 %v5061_v29, %v4171_v8 }
 0x199   : > { %v2059_v13 = vpop.f32.mrf.mxu0  ;;  %v2635_v14 = vpop.f32.mrf.mxu1 }
 0x19a   : > { %3220 = vst.msk [vmem:[%s4660_s5 + $0x2c8] sm:$0xff] %vm3130_vm2, %v2931_v9  ;;  %3364 = vst.msk [vmem:[%s4660_s5 + $0x748] sm:$0xff] %vm3130_vm2, %v3075_v10  ;;  %v2936_v15 = vmax.f32 %v2068_v11, 0.0  ;;  %v3080_v16 = vmax.f32 %v2644_v12, 0.0  ;;  %v2060_v17 = vadd.f32 %v5061_v29, %v2059_v13  ;;  %v2636_v18 = vadd.f32 %v5061_v29, %v2635_v14 }
 0x19b   : > { %v4028_v19 = vpop.f32.mrf.mxu0  ;;  %v4172_v20 = vpop.f32.mrf.mxu1 }
 0x19c   : > { %3225 = vst.msk [vmem:[%s4660_s5 + $0x2f0] sm:$0xff] %vm3130_vm2, %v2936_v15  ;;  %3369 = vst.msk [vmem:[%s4660_s5 + $0x770] sm:$0xff] %vm3130_vm2, %v3080_v16  ;;  %v2934_v21 = vmax.f32 %v2060_v17, 0.0  ;;  %v3078_v22 = vmax.f32 %v2636_v18, 0.0  ;;  %v2071_v23 = vadd.f32 %v5061_v29, %v4028_v19  ;;  %v2647_v24 = vadd.f32 %v5061_v29, %v4172_v20 }
 0x19d   : > { %v2062_v25 = vpop.f32.mrf.mxu0  ;;  %v2638_v26 = vpop.f32.mrf.mxu1 }
 0x19e   : > { %3223 = vst.msk [vmem:[%s4660_s5 + $0x2e0] sm:$0xff] %vm3130_vm2, %v2934_v21  ;;  %3367 = vst.msk [vmem:[%s4660_s5 + $0x760] sm:$0xff] %vm3130_vm2, %v3078_v22  ;;  %v2937_v27 = vmax.f32 %v2071_v23, 0.0  ;;  %v3081_v28 = vmax.f32 %v2647_v24, 0.0  ;;  %v2063_v30 = vadd.f32 %v5061_v29, %v2062_v25  ;;  %v2639_v31 = vadd.f32 %v5061_v29, %v2638_v26 }
 0x19f   : > { %v4031_v45 = vpop.f32.mrf.mxu0  ;;  %v4175_v32 = vpop.f32.mrf.mxu1 }
 0x1a0   : > { %3226 = vst.msk [vmem:[%s4660_s5 + $0x2f8] sm:$0xff] %vm3130_vm2, %v2937_v27  ;;  %3370 = vst.msk [vmem:[%s4660_s5 + $0x778] sm:$0xff] %vm3130_vm2, %v3081_v28  ;;  %v2935_v33 = vmax.f32 %v2063_v30, 0.0  ;;  %v3079_v34 = vmax.f32 %v2639_v31, 0.0  ;;  %v2084_v35 = vadd.f32 %v5061_v29, %v4031_v45  ;;  %v2660_v36 = vadd.f32 %v5061_v29, %v4175_v32 }
 0x1a1   : > { %v2075_v37 = vpop.f32.mrf.mxu0  ;;  %v2651_v38 = vpop.f32.mrf.mxu1 }
 0x1a2   : > { %3224 = vst.msk [vmem:[%s4660_s5 + $0x2e8] sm:$0xff] %vm3130_vm2, %v2935_v33  ;;  %3368 = vst.msk [vmem:[%s4660_s5 + $0x768] sm:$0xff] %vm3130_vm2, %v3079_v34  ;;  %v2940_v39 = vmax.f32 %v2084_v35, 0.0  ;;  %v3084_v40 = vmax.f32 %v2660_v36, 0.0  ;;  %v2076_v41 = vadd.f32 %v5061_v29, %v2075_v37  ;;  %v2652_v42 = vadd.f32 %v5061_v29, %v2651_v38 }
 0x1a3   : > { %v4032_v43 = vpop.f32.mrf.mxu0  ;;  %v4176_v44 = vpop.f32.mrf.mxu1 }
 0x1a4   : > { %3229 = vst.msk [vmem:[%s4660_s5 + $0x310] sm:$0xff] %vm3130_vm2, %v2940_v39  ;;  %3373 = vst.msk [vmem:[%s4660_s5 + $0x790] sm:$0xff] %vm3130_vm2, %v3084_v40  ;;  %v2938_v46 = vmax.f32 %v2076_v41, 0.0  ;;  %v3082_v47 = vmax.f32 %v2652_v42, 0.0  ;;  %v2087_v48 = vadd.f32 %v5061_v29, %v4032_v43  ;;  %v2663_v49 = vadd.f32 %v5061_v29, %v4176_v44 }
 0x1a5   : > { %v2078_v50 = vpop.f32.mrf.mxu0  ;;  %v2654_v51 = vpop.f32.mrf.mxu1 }
 0x1a6   : > { %3227 = vst.msk [vmem:[%s4660_s5 + $0x300] sm:$0xff] %vm3130_vm2, %v2938_v46  ;;  %3371 = vst.msk [vmem:[%s4660_s5 + $0x780] sm:$0xff] %vm3130_vm2, %v3082_v47  ;;  %v2941_v52 = vmax.f32 %v2087_v48, 0.0  ;;  %v3085_v53 = vmax.f32 %v2663_v49, 0.0  ;;  %v2079_v54 = vadd.f32 %v5061_v29, %v2078_v50  ;;  %v2655_v55 = vadd.f32 %v5061_v29, %v2654_v51 }
 0x1a7   : > { %v4035_v56 = vpop.f32.mrf.mxu0  ;;  %v4179_v57 = vpop.f32.mrf.mxu1 }
 0x1a8   : > { %3230 = vst.msk [vmem:[%s4660_s5 + $0x318] sm:$0xff] %vm3130_vm2, %v2941_v52  ;;  %3374 = vst.msk [vmem:[%s4660_s5 + $0x798] sm:$0xff] %vm3130_vm2, %v3085_v53  ;;  %v2939_v58 = vmax.f32 %v2079_v54, 0.0  ;;  %v3083_v59 = vmax.f32 %v2655_v55, 0.0  ;;  %v2100_v60 = vadd.f32 %v5061_v29, %v4035_v56  ;;  %v2676_v61 = vadd.f32 %v5061_v29, %v4179_v57 }
 0x1a9   : > { %v2091_v62 = vpop.f32.mrf.mxu0  ;;  %v2667_v63 = vpop.f32.mrf.mxu1 }
 0x1aa   : > { %3228 = vst.msk [vmem:[%s4660_s5 + $0x308] sm:$0xff] %vm3130_vm2, %v2939_v58  ;;  %3372 = vst.msk [vmem:[%s4660_s5 + $0x788] sm:$0xff] %vm3130_vm2, %v3083_v59  ;;  %v2944_v0 = vmax.f32 %v2100_v60, 0.0  ;;  %v3088_v1 = vmax.f32 %v2676_v61, 0.0  ;;  %v2092_v2 = vadd.f32 %v5061_v29, %v2091_v62  ;;  %v2668_v3 = vadd.f32 %v5061_v29, %v2667_v63 }
 0x1ab   : > { %v4036_v4 = vpop.f32.mrf.mxu0  ;;  %v4180_v5 = vpop.f32.mrf.mxu1 }
 0x1ac   : > { %3233 = vst.msk [vmem:[%s4660_s5 + $0x330] sm:$0xff] %vm3130_vm2, %v2944_v0  ;;  %3377 = vst.msk [vmem:[%s4660_s5 + $0x7b0] sm:$0xff] %vm3130_vm2, %v3088_v1  ;;  %v2942_v6 = vmax.f32 %v2092_v2, 0.0  ;;  %v3086_v7 = vmax.f32 %v2668_v3, 0.0  ;;  %v2103_v8 = vadd.f32 %v5061_v29, %v4036_v4  ;;  %v2679_v9 = vadd.f32 %v5061_v29, %v4180_v5 }
 0x1ad   : > { %v2094_v10 = vpop.f32.mrf.mxu0  ;;  %v2670_v11 = vpop.f32.mrf.mxu1 }
 0x1ae   : > { %3231 = vst.msk [vmem:[%s4660_s5 + $0x320] sm:$0xff] %vm3130_vm2, %v2942_v6  ;;  %3375 = vst.msk [vmem:[%s4660_s5 + $0x7a0] sm:$0xff] %vm3130_vm2, %v3086_v7  ;;  %v2945_v12 = vmax.f32 %v2103_v8, 0.0  ;;  %v3089_v13 = vmax.f32 %v2679_v9, 0.0  ;;  %v2095_v14 = vadd.f32 %v5061_v29, %v2094_v10  ;;  %v2671_v15 = vadd.f32 %v5061_v29, %v2670_v11 }
 0x1af   : > { %v4039_v16 = vpop.f32.mrf.mxu0  ;;  %v4183_v17 = vpop.f32.mrf.mxu1 }
 0x1b0   : > { %3234 = vst.msk [vmem:[%s4660_s5 + $0x338] sm:$0xff] %vm3130_vm2, %v2945_v12  ;;  %3378 = vst.msk [vmem:[%s4660_s5 + $0x7b8] sm:$0xff] %vm3130_vm2, %v3089_v13  ;;  %v2943_v18 = vmax.f32 %v2095_v14, 0.0  ;;  %v3087_v19 = vmax.f32 %v2671_v15, 0.0  ;;  %v2116_v20 = vadd.f32 %v5061_v29, %v4039_v16  ;;  %v2692_v21 = vadd.f32 %v5061_v29, %v4183_v17 }
 0x1b1   : > { %v2107_v22 = vpop.f32.mrf.mxu0  ;;  %v2683_v23 = vpop.f32.mrf.mxu1 }
 0x1b2   : > { %3232 = vst.msk [vmem:[%s4660_s5 + $0x328] sm:$0xff] %vm3130_vm2, %v2943_v18  ;;  %3376 = vst.msk [vmem:[%s4660_s5 + $0x7a8] sm:$0xff] %vm3130_vm2, %v3087_v19  ;;  %v2948_v24 = vmax.f32 %v2116_v20, 0.0  ;;  %v3092_v25 = vmax.f32 %v2692_v21, 0.0  ;;  %v2108_v26 = vadd.f32 %v5061_v29, %v2107_v22  ;;  %v2684_v27 = vadd.f32 %v5061_v29, %v2683_v23 }
 0x1b3   : > { %v4040_v28 = vpop.f32.mrf.mxu0  ;;  %v4184_v30 = vpop.f32.mrf.mxu1 }
 0x1b4   : > { %3237 = vst.msk [vmem:[%s4660_s5 + $0x350] sm:$0xff] %vm3130_vm2, %v2948_v24  ;;  %3381 = vst.msk [vmem:[%s4660_s5 + $0x7d0] sm:$0xff] %vm3130_vm2, %v3092_v25  ;;  %v2946_v31 = vmax.f32 %v2108_v26, 0.0  ;;  %v3090_v45 = vmax.f32 %v2684_v27, 0.0  ;;  %v2119_v32 = vadd.f32 %v5061_v29, %v4040_v28  ;;  %v2695_v33 = vadd.f32 %v5061_v29, %v4184_v30 }
 0x1b5   : > { %v2110_v34 = vpop.f32.mrf.mxu0  ;;  %v2686_v35 = vpop.f32.mrf.mxu1 }
 0x1b6   : > { %3235 = vst.msk [vmem:[%s4660_s5 + $0x340] sm:$0xff] %vm3130_vm2, %v2946_v31  ;;  %3379 = vst.msk [vmem:[%s4660_s5 + $0x7c0] sm:$0xff] %vm3130_vm2, %v3090_v45  ;;  %v2949_v36 = vmax.f32 %v2119_v32, 0.0  ;;  %v3093_v37 = vmax.f32 %v2695_v33, 0.0  ;;  %v2111_v38 = vadd.f32 %v5061_v29, %v2110_v34  ;;  %v2687_v39 = vadd.f32 %v5061_v29, %v2686_v35  ;;  %v5450_v35 = vld [vmem:[%s5623_s2] ss:$0 sm:$0xff] }
 0x1b7   : > { %v4043_v40 = vpop.f32.mrf.mxu0  ;;  %v4187_v41 = vpop.f32.mrf.mxu1 }
 0x1b8   : > { %3238 = vst.msk [vmem:[%s4660_s5 + $0x358] sm:$0xff] %vm3130_vm2, %v2949_v36  ;;  %3382 = vst.msk [vmem:[%s4660_s5 + $0x7d8] sm:$0xff] %vm3130_vm2, %v3093_v37  ;;  %v2947_v42 = vmax.f32 %v2111_v38, 0.0  ;;  %v3091_v43 = vmax.f32 %v2687_v39, 0.0  ;;  %v2132_v44 = vadd.f32 %v5061_v29, %v4043_v40  ;;  %v2708_v46 = vadd.f32 %v5061_v29, %v4187_v41 }
 0x1b9   : > { %v2123_v47 = vpop.f32.mrf.mxu0  ;;  %v2699_v48 = vpop.f32.mrf.mxu1 }
 0x1ba   : > { %3236 = vst.msk [vmem:[%s4660_s5 + $0x348] sm:$0xff] %vm3130_vm2, %v2947_v42  ;;  %3380 = vst.msk [vmem:[%s4660_s5 + $0x7c8] sm:$0xff] %vm3130_vm2, %v3091_v43  ;;  %v2952_v49 = vmax.f32 %v2132_v44, 0.0  ;;  %v3096_v50 = vmax.f32 %v2708_v46, 0.0  ;;  %v2124_v51 = vadd.f32 %v5061_v29, %v2123_v47  ;;  %v2700_v52 = vadd.f32 %v5061_v29, %v2699_v48 }
 0x1bb   : > { %v4044_v53 = vpop.f32.mrf.mxu0  ;;  %v4188_v54 = vpop.f32.mrf.mxu1 }
 0x1bc   : > { %3241 = vst.msk [vmem:[%s4660_s5 + $0x370] sm:$0xff] %vm3130_vm2, %v2952_v49  ;;  %3385 = vst.msk [vmem:[%s4660_s5 + $0x7f0] sm:$0xff] %vm3130_vm2, %v3096_v50  ;;  %v2950_v55 = vmax.f32 %v2124_v51, 0.0  ;;  %v3094_v56 = vmax.f32 %v2700_v52, 0.0  ;;  %v2135_v57 = vadd.f32 %v5061_v29, %v4044_v53  ;;  %v2711_v58 = vadd.f32 %v5061_v29, %v4188_v54 }
 0x1bd   : > { %v2126_v59 = vpop.f32.mrf.mxu0  ;;  %v2702_v60 = vpop.f32.mrf.mxu1 }
 0x1be   : > { %3239 = vst.msk [vmem:[%s4660_s5 + $0x360] sm:$0xff] %vm3130_vm2, %v2950_v55  ;;  %3383 = vst.msk [vmem:[%s4660_s5 + $0x7e0] sm:$0xff] %vm3130_vm2, %v3094_v56  ;;  %v2953_v61 = vmax.f32 %v2135_v57, 0.0  ;;  %v3097_v62 = vmax.f32 %v2711_v58, 0.0  ;;  %v2127_v63 = vadd.f32 %v5061_v29, %v2126_v59  ;;  %v2703_v0 = vadd.f32 %v5061_v29, %v2702_v60 }
 0x1bf   : > { %v4047_v1 = vpop.f32.mrf.mxu0  ;;  %v4191_v2 = vpop.f32.mrf.mxu1 }
 0x1c0   : > { %3242 = vst.msk [vmem:[%s4660_s5 + $0x378] sm:$0xff] %vm3130_vm2, %v2953_v61  ;;  %3386 = vst.msk [vmem:[%s4660_s5 + $0x7f8] sm:$0xff] %vm3130_vm2, %v3097_v62  ;;  %v2951_v3 = vmax.f32 %v2127_v63, 0.0  ;;  %v3095_v4 = vmax.f32 %v2703_v0, 0.0  ;;  %v2148_v5 = vadd.f32 %v5061_v29, %v4047_v1  ;;  %v2724_v6 = vadd.f32 %v5061_v29, %v4191_v2 }
 0x1c1   : > { %v2139_v7 = vpop.f32.mrf.mxu0  ;;  %v2715_v8 = vpop.f32.mrf.mxu1 }
 0x1c2   : > { %3240 = vst.msk [vmem:[%s4660_s5 + $0x368] sm:$0xff] %vm3130_vm2, %v2951_v3  ;;  %3384 = vst.msk [vmem:[%s4660_s5 + $0x7e8] sm:$0xff] %vm3130_vm2, %v3095_v4  ;;  %v2956_v9 = vmax.f32 %v2148_v5, 0.0  ;;  %v3100_v10 = vmax.f32 %v2724_v6, 0.0  ;;  %v2140_v11 = vadd.f32 %v5061_v29, %v2139_v7  ;;  %v2716_v12 = vadd.f32 %v5061_v29, %v2715_v8 }
 0x1c3   : > { %v4048_v13 = vpop.f32.mrf.mxu0  ;;  %v4192_v14 = vpop.f32.mrf.mxu1 }
 0x1c4   : > { %3245 = vst.msk [vmem:[%s4660_s5 + $0x390] sm:$0xff] %vm3130_vm2, %v2956_v9  ;;  %3389 = vst.msk [vmem:[%s4660_s5 + $0x810] sm:$0xff] %vm3130_vm2, %v3100_v10  ;;  %v2954_v15 = vmax.f32 %v2140_v11, 0.0  ;;  %v3098_v16 = vmax.f32 %v2716_v12, 0.0  ;;  %v2151_v17 = vadd.f32 %v5061_v29, %v4048_v13  ;;  %v2727_v18 = vadd.f32 %v5061_v29, %v4192_v14 }
 0x1c5   : > { %v2142_v19 = vpop.f32.mrf.mxu0  ;;  %v2718_v20 = vpop.f32.mrf.mxu1 }
 0x1c6   : > { %3243 = vst.msk [vmem:[%s4660_s5 + $0x380] sm:$0xff] %vm3130_vm2, %v2954_v15  ;;  %3387 = vst.msk [vmem:[%s4660_s5 + $0x800] sm:$0xff] %vm3130_vm2, %v3098_v16  ;;  %v2957_v21 = vmax.f32 %v2151_v17, 0.0  ;;  %v3101_v22 = vmax.f32 %v2727_v18, 0.0  ;;  %v2143_v23 = vadd.f32 %v5061_v29, %v2142_v19  ;;  %v2719_v24 = vadd.f32 %v5061_v29, %v2718_v20 }
 0x1c7   : > { %v4051_v25 = vpop.f32.mrf.mxu0  ;;  %v4195_v26 = vpop.f32.mrf.mxu1 }
 0x1c8   : > { %3246 = vst.msk [vmem:[%s4660_s5 + $0x398] sm:$0xff] %vm3130_vm2, %v2957_v21  ;;  %3390 = vst.msk [vmem:[%s4660_s5 + $0x818] sm:$0xff] %vm3130_vm2, %v3101_v22  ;;  %v2955_v27 = vmax.f32 %v2143_v23, 0.0  ;;  %v3099_v28 = vmax.f32 %v2719_v24, 0.0  ;;  %v2164_v30 = vadd.f32 %v5061_v29, %v4051_v25  ;;  %v2740_v31 = vadd.f32 %v5061_v29, %v4195_v26 }
 0x1c9   : > { %v2155_v45 = vpop.f32.mrf.mxu0  ;;  %v2731_v32 = vpop.f32.mrf.mxu1 }
 0x1ca   : > { %3244 = vst.msk [vmem:[%s4660_s5 + $0x388] sm:$0xff] %vm3130_vm2, %v2955_v27  ;;  %3388 = vst.msk [vmem:[%s4660_s5 + $0x808] sm:$0xff] %vm3130_vm2, %v3099_v28  ;;  %v2960_v33 = vmax.f32 %v2164_v30, 0.0  ;;  %v3104_v34 = vmax.f32 %v2740_v31, 0.0  ;;  %v2156_v36 = vadd.f32 %v5450_v35, %v2155_v45  ;;  %v2732_v37 = vadd.f32 %v5450_v35, %v2731_v32 }
 0x1cb   : > { %v4052_v29 = vpop.f32.mrf.mxu0  ;;  %v4196_v38 = vpop.f32.mrf.mxu1 }
 0x1cc   : > { %3249 = vst.msk [vmem:[%s4660_s5 + $0x3b0] sm:$0xff] %vm3130_vm2, %v2960_v33  ;;  %3393 = vst.msk [vmem:[%s4660_s5 + $0x830] sm:$0xff] %vm3130_vm2, %v3104_v34  ;;  %v2958_v39 = vmax.f32 %v2156_v36, 0.0  ;;  %v3102_v40 = vmax.f32 %v2732_v37, 0.0  ;;  %v2167_v41 = vadd.f32 %v5450_v35, %v4052_v29  ;;  %v2743_v42 = vadd.f32 %v5450_v35, %v4196_v38 }
 0x1cd   : > { %v2158_v43 = vpop.f32.mrf.mxu0  ;;  %v2734_v44 = vpop.f32.mrf.mxu1 }
 0x1ce   : > { %3247 = vst.msk [vmem:[%s4660_s5 + $0x3a0] sm:$0xff] %vm3130_vm2, %v2958_v39  ;;  %3391 = vst.msk [vmem:[%s4660_s5 + $0x820] sm:$0xff] %vm3130_vm2, %v3102_v40  ;;  %v2961_v46 = vmax.f32 %v2167_v41, 0.0  ;;  %v3105_v47 = vmax.f32 %v2743_v42, 0.0  ;;  %v2159_v48 = vadd.f32 %v5450_v35, %v2158_v43  ;;  %v2735_v49 = vadd.f32 %v5450_v35, %v2734_v44 }
 0x1cf   : > { %v4055_v50 = vpop.f32.mrf.mxu0  ;;  %v4199_v51 = vpop.f32.mrf.mxu1 }
 0x1d0   : > { %3250 = vst.msk [vmem:[%s4660_s5 + $0x3b8] sm:$0xff] %vm3130_vm2, %v2961_v46  ;;  %3394 = vst.msk [vmem:[%s4660_s5 + $0x838] sm:$0xff] %vm3130_vm2, %v3105_v47  ;;  %v2959_v52 = vmax.f32 %v2159_v48, 0.0  ;;  %v3103_v53 = vmax.f32 %v2735_v49, 0.0  ;;  %v2180_v54 = vadd.f32 %v5450_v35, %v4055_v50  ;;  %v2756_v55 = vadd.f32 %v5450_v35, %v4199_v51 }
 0x1d1   : > { %v2171_v56 = vpop.f32.mrf.mxu0  ;;  %v2747_v57 = vpop.f32.mrf.mxu1 }
 0x1d2   : > { %3248 = vst.msk [vmem:[%s4660_s5 + $0x3a8] sm:$0xff] %vm3130_vm2, %v2959_v52  ;;  %3392 = vst.msk [vmem:[%s4660_s5 + $0x828] sm:$0xff] %vm3130_vm2, %v3103_v53  ;;  %v2964_v58 = vmax.f32 %v2180_v54, 0.0  ;;  %v3108_v59 = vmax.f32 %v2756_v55, 0.0  ;;  %v2172_v60 = vadd.f32 %v5450_v35, %v2171_v56  ;;  %v2748_v61 = vadd.f32 %v5450_v35, %v2747_v57 }
 0x1d3   : > { %v4056_v62 = vpop.f32.mrf.mxu0  ;;  %v4200_v63 = vpop.f32.mrf.mxu1 }
 0x1d4   : > { %3253 = vst.msk [vmem:[%s4660_s5 + $0x3d0] sm:$0xff] %vm3130_vm2, %v2964_v58  ;;  %3397 = vst.msk [vmem:[%s4660_s5 + $0x850] sm:$0xff] %vm3130_vm2, %v3108_v59  ;;  %v2962_v0 = vmax.f32 %v2172_v60, 0.0  ;;  %v3106_v1 = vmax.f32 %v2748_v61, 0.0  ;;  %v2183_v2 = vadd.f32 %v5450_v35, %v4056_v62  ;;  %v2759_v3 = vadd.f32 %v5450_v35, %v4200_v63 }
 0x1d5   : > { %v2174_v4 = vpop.f32.mrf.mxu0  ;;  %v2750_v5 = vpop.f32.mrf.mxu1 }
 0x1d6   : > { %3251 = vst.msk [vmem:[%s4660_s5 + $0x3c0] sm:$0xff] %vm3130_vm2, %v2962_v0  ;;  %3395 = vst.msk [vmem:[%s4660_s5 + $0x840] sm:$0xff] %vm3130_vm2, %v3106_v1  ;;  %v2965_v6 = vmax.f32 %v2183_v2, 0.0  ;;  %v3109_v7 = vmax.f32 %v2759_v3, 0.0  ;;  %v2175_v8 = vadd.f32 %v5450_v35, %v2174_v4  ;;  %v2751_v9 = vadd.f32 %v5450_v35, %v2750_v5 }
 0x1d7   : > { %v4059_v10 = vpop.f32.mrf.mxu0  ;;  %v4203_v11 = vpop.f32.mrf.mxu1 }
 0x1d8   : > { %3254 = vst.msk [vmem:[%s4660_s5 + $0x3d8] sm:$0xff] %vm3130_vm2, %v2965_v6  ;;  %3398 = vst.msk [vmem:[%s4660_s5 + $0x858] sm:$0xff] %vm3130_vm2, %v3109_v7  ;;  %v2963_v12 = vmax.f32 %v2175_v8, 0.0  ;;  %v3107_v13 = vmax.f32 %v2751_v9, 0.0  ;;  %v2196_v14 = vadd.f32 %v5450_v35, %v4059_v10  ;;  %v2772_v15 = vadd.f32 %v5450_v35, %v4203_v11 }
 0x1d9   : > { %v2187_v16 = vpop.f32.mrf.mxu0  ;;  %v2763_v17 = vpop.f32.mrf.mxu1 }
 0x1da   : > { %3252 = vst.msk [vmem:[%s4660_s5 + $0x3c8] sm:$0xff] %vm3130_vm2, %v2963_v12  ;;  %3396 = vst.msk [vmem:[%s4660_s5 + $0x848] sm:$0xff] %vm3130_vm2, %v3107_v13  ;;  %v2968_v18 = vmax.f32 %v2196_v14, 0.0  ;;  %v3112_v19 = vmax.f32 %v2772_v15, 0.0  ;;  %v2188_v20 = vadd.f32 %v5450_v35, %v2187_v16  ;;  %v2764_v21 = vadd.f32 %v5450_v35, %v2763_v17 }
 0x1db   : > { %v4060_v22 = vpop.f32.mrf.mxu0  ;;  %v4204_v23 = vpop.f32.mrf.mxu1 }
 0x1dc   : > { %3257 = vst.msk [vmem:[%s4660_s5 + $0x3f0] sm:$0xff] %vm3130_vm2, %v2968_v18  ;;  %3401 = vst.msk [vmem:[%s4660_s5 + $0x870] sm:$0xff] %vm3130_vm2, %v3112_v19  ;;  %v2966_v24 = vmax.f32 %v2188_v20, 0.0  ;;  %v3110_v25 = vmax.f32 %v2764_v21, 0.0  ;;  %v2199_v26 = vadd.f32 %v5450_v35, %v4060_v22  ;;  %v2775_v27 = vadd.f32 %v5450_v35, %v4204_v23 }
 0x1dd   : > { %v2190_v28 = vpop.f32.mrf.mxu0  ;;  %v2766_v30 = vpop.f32.mrf.mxu1 }
 0x1de   : > { %3255 = vst.msk [vmem:[%s4660_s5 + $0x3e0] sm:$0xff] %vm3130_vm2, %v2966_v24  ;;  %3399 = vst.msk [vmem:[%s4660_s5 + $0x860] sm:$0xff] %vm3130_vm2, %v3110_v25  ;;  %v2969_v31 = vmax.f32 %v2199_v26, 0.0  ;;  %v3113_v45 = vmax.f32 %v2775_v27, 0.0  ;;  %v2191_v32 = vadd.f32 %v5450_v35, %v2190_v28  ;;  %v2767_v33 = vadd.f32 %v5450_v35, %v2766_v30 }
 0x1df   : > { %v4063_v34 = vpop.f32.mrf.mxu0  ;;  %v4207_v36 = vpop.f32.mrf.mxu1 }
 0x1e0   : > { %3258 = vst.msk [vmem:[%s4660_s5 + $0x3f8] sm:$0xff] %vm3130_vm2, %v2969_v31  ;;  %3402 = vst.msk [vmem:[%s4660_s5 + $0x878] sm:$0xff] %vm3130_vm2, %v3113_v45  ;;  %v2967_v37 = vmax.f32 %v2191_v32, 0.0  ;;  %v3111_v29 = vmax.f32 %v2767_v33, 0.0  ;;  %v2212_v38 = vadd.f32 %v5450_v35, %v4063_v34  ;;  %v2788_v39 = vadd.f32 %v5450_v35, %v4207_v36 }
 0x1e1   : > { %v2203_v40 = vpop.f32.mrf.mxu0  ;;  %v2779_v41 = vpop.f32.mrf.mxu1 }
 0x1e2   : > { %3256 = vst.msk [vmem:[%s4660_s5 + $0x3e8] sm:$0xff] %vm3130_vm2, %v2967_v37  ;;  %3400 = vst.msk [vmem:[%s4660_s5 + $0x868] sm:$0xff] %vm3130_vm2, %v3111_v29  ;;  %v2972_v42 = vmax.f32 %v2212_v38, 0.0  ;;  %v3116_v43 = vmax.f32 %v2788_v39, 0.0  ;;  %v2204_v44 = vadd.f32 %v5450_v35, %v2203_v40  ;;  %v2780_v46 = vadd.f32 %v5450_v35, %v2779_v41 }
 0x1e3   : > { %v4064_v47 = vpop.f32.mrf.mxu0  ;;  %v4208_v48 = vpop.f32.mrf.mxu1 }
 0x1e4   : > { %3261 = vst.msk [vmem:[%s4660_s5 + $0x410] sm:$0xff] %vm3130_vm2, %v2972_v42  ;;  %3405 = vst.msk [vmem:[%s4660_s5 + $0x890] sm:$0xff] %vm3130_vm2, %v3116_v43  ;;  %v2970_v49 = vmax.f32 %v2204_v44, 0.0  ;;  %v3114_v50 = vmax.f32 %v2780_v46, 0.0  ;;  %v2215_v51 = vadd.f32 %v5450_v35, %v4064_v47  ;;  %v2791_v52 = vadd.f32 %v5450_v35, %v4208_v48 }
 0x1e5   : > { %v2206_v53 = vpop.f32.mrf.mxu0  ;;  %v2782_v54 = vpop.f32.mrf.mxu1 }
 0x1e6   : > { %3259 = vst.msk [vmem:[%s4660_s5 + $0x400] sm:$0xff] %vm3130_vm2, %v2970_v49  ;;  %3403 = vst.msk [vmem:[%s4660_s5 + $0x880] sm:$0xff] %vm3130_vm2, %v3114_v50  ;;  %v2973_v55 = vmax.f32 %v2215_v51, 0.0  ;;  %v3117_v56 = vmax.f32 %v2791_v52, 0.0  ;;  %v2207_v57 = vadd.f32 %v5450_v35, %v2206_v53  ;;  %v2783_v58 = vadd.f32 %v5450_v35, %v2782_v54 }
 0x1e7   : > { %v4067_v59 = vpop.f32.mrf.mxu0  ;;  %v4211_v60 = vpop.f32.mrf.mxu1 }
 0x1e8   : > { %3262 = vst.msk [vmem:[%s4660_s5 + $0x418] sm:$0xff] %vm3130_vm2, %v2973_v55  ;;  %3406 = vst.msk [vmem:[%s4660_s5 + $0x898] sm:$0xff] %vm3130_vm2, %v3117_v56  ;;  %v2971_v61 = vmax.f32 %v2207_v57, 0.0  ;;  %v3115_v62 = vmax.f32 %v2783_v58, 0.0  ;;  %v2228_v63 = vadd.f32 %v5450_v35, %v4067_v59  ;;  %v2804_v0 = vadd.f32 %v5450_v35, %v4211_v60 }
 0x1e9   : > { %v2219_v1 = vpop.f32.mrf.mxu0  ;;  %v2795_v2 = vpop.f32.mrf.mxu1 }
 0x1ea   : > { %3260 = vst.msk [vmem:[%s4660_s5 + $0x408] sm:$0xff] %vm3130_vm2, %v2971_v61  ;;  %3404 = vst.msk [vmem:[%s4660_s5 + $0x888] sm:$0xff] %vm3130_vm2, %v3115_v62  ;;  %v2976_v3 = vmax.f32 %v2228_v63, 0.0  ;;  %v3120_v4 = vmax.f32 %v2804_v0, 0.0  ;;  %v2220_v5 = vadd.f32 %v5450_v35, %v2219_v1  ;;  %v2796_v6 = vadd.f32 %v5450_v35, %v2795_v2 }
 0x1eb   : > { %v4068_v7 = vpop.f32.mrf.mxu0  ;;  %v4212_v8 = vpop.f32.mrf.mxu1 }
 0x1ec   : > { %3265 = vst.msk [vmem:[%s4660_s5 + $0x430] sm:$0xff] %vm3130_vm2, %v2976_v3  ;;  %3409 = vst.msk [vmem:[%s4660_s5 + $0x8b0] sm:$0xff] %vm3130_vm2, %v3120_v4  ;;  %v2974_v9 = vmax.f32 %v2220_v5, 0.0  ;;  %v3118_v10 = vmax.f32 %v2796_v6, 0.0  ;;  %v2231_v11 = vadd.f32 %v5450_v35, %v4068_v7  ;;  %v2807_v12 = vadd.f32 %v5450_v35, %v4212_v8 }
 0x1ed   : > { %v2222_v13 = vpop.f32.mrf.mxu0  ;;  %v2798_v14 = vpop.f32.mrf.mxu1 }
 0x1ee   : > { %3263 = vst.msk [vmem:[%s4660_s5 + $0x420] sm:$0xff] %vm3130_vm2, %v2974_v9  ;;  %3407 = vst.msk [vmem:[%s4660_s5 + $0x8a0] sm:$0xff] %vm3130_vm2, %v3118_v10  ;;  %v2977_v15 = vmax.f32 %v2231_v11, 0.0  ;;  %v3121_v16 = vmax.f32 %v2807_v12, 0.0  ;;  %v2223_v17 = vadd.f32 %v5450_v35, %v2222_v13  ;;  %v2799_v18 = vadd.f32 %v5450_v35, %v2798_v14 }
 0x1ef   : > { %v4071_v19 = vpop.f32.mrf.mxu0  ;;  %v4215_v20 = vpop.f32.mrf.mxu1 }
 0x1f0   : > { %3266 = vst.msk [vmem:[%s4660_s5 + $0x438] sm:$0xff] %vm3130_vm2, %v2977_v15  ;;  %3410 = vst.msk [vmem:[%s4660_s5 + $0x8b8] sm:$0xff] %vm3130_vm2, %v3121_v16  ;;  %v2975_v21 = vmax.f32 %v2223_v17, 0.0  ;;  %v3119_v22 = vmax.f32 %v2799_v18, 0.0  ;;  %v2244_v23 = vadd.f32 %v5450_v35, %v4071_v19  ;;  %v2820_v24 = vadd.f32 %v5450_v35, %v4215_v20 }
 0x1f1   : > { %v2235_v25 = vpop.f32.mrf.mxu0  ;;  %v2811_v26 = vpop.f32.mrf.mxu1 }
 0x1f2   : > { %3264 = vst.msk [vmem:[%s4660_s5 + $0x428] sm:$0xff] %vm3130_vm2, %v2975_v21  ;;  %3408 = vst.msk [vmem:[%s4660_s5 + $0x8a8] sm:$0xff] %vm3130_vm2, %v3119_v22  ;;  %v2980_v27 = vmax.f32 %v2244_v23, 0.0  ;;  %v3124_v28 = vmax.f32 %v2820_v24, 0.0  ;;  %v2236_v30 = vadd.f32 %v5450_v35, %v2235_v25  ;;  %v2812_v31 = vadd.f32 %v5450_v35, %v2811_v26 }
 0x1f3   : > { %v4072_v45 = vpop.f32.mrf.mxu0  ;;  %v4216_v32 = vpop.f32.mrf.mxu1 }
 0x1f4   : > { %3269 = vst.msk [vmem:[%s4660_s5 + $0x450] sm:$0xff] %vm3130_vm2, %v2980_v27  ;;  %3413 = vst.msk [vmem:[%s4660_s5 + $0x8d0] sm:$0xff] %vm3130_vm2, %v3124_v28  ;;  %v2978_v33 = vmax.f32 %v2236_v30, 0.0  ;;  %v3122_v34 = vmax.f32 %v2812_v31, 0.0  ;;  %v2247_v36 = vadd.f32 %v5450_v35, %v4072_v45  ;;  %v2823_v37 = vadd.f32 %v5450_v35, %v4216_v32 }
 0x1f5   : > { %v2238_v29 = vpop.f32.mrf.mxu0  ;;  %v2814_v38 = vpop.f32.mrf.mxu1 }
 0x1f6   : > { %3267 = vst.msk [vmem:[%s4660_s5 + $0x440] sm:$0xff] %vm3130_vm2, %v2978_v33  ;;  %3411 = vst.msk [vmem:[%s4660_s5 + $0x8c0] sm:$0xff] %vm3130_vm2, %v3122_v34  ;;  %v2981_v39 = vmax.f32 %v2247_v36, 0.0  ;;  %v3125_v40 = vmax.f32 %v2823_v37, 0.0  ;;  %v2239_v41 = vadd.f32 %v5450_v35, %v2238_v29  ;;  %v2815_v42 = vadd.f32 %v5450_v35, %v2814_v38 }
 0x1f7   : > { %v4075_v43 = vpop.f32.mrf.mxu0  ;;  %v4219_v44 = vpop.f32.mrf.mxu1 }
 0x1f8   : > { %3270 = vst.msk [vmem:[%s4660_s5 + $0x458] sm:$0xff] %vm3130_vm2, %v2981_v39  ;;  %3414 = vst.msk [vmem:[%s4660_s5 + $0x8d8] sm:$0xff] %vm3130_vm2, %v3125_v40  ;;  %v2979_v46 = vmax.f32 %v2239_v41, 0.0  ;;  %v3123_v47 = vmax.f32 %v2815_v42, 0.0  ;;  %v2260_v48 = vadd.f32 %v5450_v35, %v4075_v43  ;;  %v2836_v49 = vadd.f32 %v5450_v35, %v4219_v44 }
 0x1f9   : > { %v2251_v50 = vpop.f32.mrf.mxu0  ;;  %v2827_v51 = vpop.f32.mrf.mxu1 }
 0x1fa   : > { %3268 = vst.msk [vmem:[%s4660_s5 + $0x448] sm:$0xff] %vm3130_vm2, %v2979_v46  ;;  %3412 = vst.msk [vmem:[%s4660_s5 + $0x8c8] sm:$0xff] %vm3130_vm2, %v3123_v47  ;;  %v2984_v52 = vmax.f32 %v2260_v48, 0.0  ;;  %v3128_v53 = vmax.f32 %v2836_v49, 0.0  ;;  %v2252_v54 = vadd.f32 %v5450_v35, %v2251_v50  ;;  %v2828_v55 = vadd.f32 %v5450_v35, %v2827_v51 }
 0x1fb   : > { %v4076_v56 = vpop.f32.mrf.mxu0  ;;  %v4220_v57 = vpop.f32.mrf.mxu1 }
 0x1fc   : > { %3273 = vst.msk [vmem:[%s4660_s5 + $0x470] sm:$0xff] %vm3130_vm2, %v2984_v52  ;;  %3417 = vst.msk [vmem:[%s4660_s5 + $0x8f0] sm:$0xff] %vm3130_vm2, %v3128_v53  ;;  %v2982_v58 = vmax.f32 %v2252_v54, 0.0  ;;  %v3126_v59 = vmax.f32 %v2828_v55, 0.0  ;;  %v2263_v60 = vadd.f32 %v5450_v35, %v4076_v56  ;;  %v2839_v61 = vadd.f32 %v5450_v35, %v4220_v57 }
 0x1fd   : > { %v2254_v62 = vpop.f32.mrf.mxu0  ;;  %v2830_v63 = vpop.f32.mrf.mxu1 }
 0x1fe   : > { %3271 = vst.msk [vmem:[%s4660_s5 + $0x460] sm:$0xff] %vm3130_vm2, %v2982_v58  ;;  %3415 = vst.msk [vmem:[%s4660_s5 + $0x8e0] sm:$0xff] %vm3130_vm2, %v3126_v59  ;;  %v2985_v0 = vmax.f32 %v2263_v60, 0.0  ;;  %v3129_v1 = vmax.f32 %v2839_v61, 0.0  ;;  %v2255_v2 = vadd.f32 %v5450_v35, %v2254_v62  ;;  %v2831_v3 = vadd.f32 %v5450_v35, %v2830_v63 }
 0x200   : > { %3274 = vst.msk [vmem:[%s4660_s5 + $0x478] sm:$0xff] %vm3130_vm2, %v2985_v0  ;;  %3418 = vst.msk [vmem:[%s4660_s5 + $0x8f8] sm:$0xff] %vm3130_vm2, %v3129_v1  ;;  %v2983_v4 = vmax.f32 %v2255_v2, 0.0  ;;  %v3127_v5 = vmax.f32 %v2831_v3, 0.0 }
 0x202   : > { %3272 = vst.msk [vmem:[%s4660_s5 + $0x468] sm:$0xff] %vm3130_vm2, %v2983_v4  ;;  %3416 = vst.msk [vmem:[%s4660_s5 + $0x8e8] sm:$0xff] %vm3130_vm2, %v3127_v5 }
 0x203 PF: > { %s13_s12 = sadd.s32 1, %s4394_s12  }
 0x204   : > { %p10_p4 = scmp.ge.s32.totalorder %s13_s12, 4  }
 0x206   :  { %12 = sbr.rel (!%p10_p4) target bundleno = 1 (0x1), region = 62 }

// kernel: mynet_forward.5
= control target key start
LH: loop header
LB: loop body
LE: loop exit
PB: predicated region body
PF: predicated region fallthrough
CT: control target
= control target key end

     0   :  { %s1750_s0 = inlined_call_operand.vmem [shape: f32[9,288,128], index: 0, kind: input, shape index: {}]   ;;  %s1751_s1 = inlined_call_operand.vmem [shape: f32[288,128], index: 1, kind: output, shape index: {}]  }
   0x1   :  { %v8_v0 = vld [vmem:[%s1750_s0] sm:$0xff]  ;;  %v9_v6 = vld [vmem:[%s1750_s0 + $0x8] sm:$0xff]  ;;  %v10_v15 = vld [vmem:[%s1750_s0 + $0x10] sm:$0xff] }
   0x2   :  { %v44_v1 = vld [vmem:[%s1750_s0 + $0x120] sm:$0xff]  ;;  %v45_v7 = vld [vmem:[%s1750_s0 + $0x128] sm:$0xff]  ;;  %v46_v16 = vld [vmem:[%s1750_s0 + $0x130] sm:$0xff] }
   0x3   :  { %v80_v2 = vld [vmem:[%s1750_s0 + $0x240] sm:$0xff]  ;;  %v332_v3 = vmax.f32 %v8_v0, %v44_v1  ;;  %v81_v8 = vld [vmem:[%s1750_s0 + $0x248] sm:$0xff]  ;;  %v340_v10 = vmax.f32 %v9_v6, %v45_v7  ;;  %v82_v17 = vld [vmem:[%s1750_s0 + $0x250] sm:$0xff]  ;;  %v348_v20 = vmax.f32 %v10_v15, %v46_v16 }
   0x4   :  { %v116_v4 = vld [vmem:[%s1750_s0 + $0x360] sm:$0xff]  ;;  %v117_v13 = vld [vmem:[%s1750_s0 + $0x368] sm:$0xff]  ;;  %v118_v24 = vld [vmem:[%s1750_s0 + $0x370] sm:$0xff] }
   0x5   :  { %v333_v5 = vmax.f32 %v332_v3, %v80_v2  ;;  %v152_v9 = vld [vmem:[%s1750_s0 + $0x480] sm:$0xff]  ;;  %v341_v14 = vmax.f32 %v340_v10, %v81_v8  ;;  %v153_v19 = vld [vmem:[%s1750_s0 + $0x488] sm:$0xff]  ;;  %v349_v26 = vmax.f32 %v348_v20, %v82_v17  ;;  %v11_v27 = vld [vmem:[%s1750_s0 + $0x18] sm:$0xff] }
   0x6   :  { %v188_v11 = vld [vmem:[%s1750_s0 + $0x5a0] sm:$0xff]  ;;  %v189_v22 = vld [vmem:[%s1750_s0 + $0x5a8] sm:$0xff]  ;;  %v47_v28 = vld [vmem:[%s1750_s0 + $0x138] sm:$0xff] }
   0x7   :  { %v334_v12 = vmax.f32 %v333_v5, %v116_v4  ;;  %v224_v21 = vld [vmem:[%s1750_s0 + $0x6c0] sm:$0xff]  ;;  %v342_v23 = vmax.f32 %v341_v14, %v117_v13  ;;  %v83_v29 = vld [vmem:[%s1750_s0 + $0x258] sm:$0xff]  ;;  %v154_v33 = vld [vmem:[%s1750_s0 + $0x490] sm:$0xff]  ;;  %v356_v34 = vmax.f32 %v11_v27, %v47_v28  ;;  %v350_v38 = vmax.f32 %v349_v26, %v118_v24 }
   0x8   :  { %v260_v30 = vld [vmem:[%s1750_s0 + $0x7e0] sm:$0xff]  ;;  %v225_v36 = vld [vmem:[%s1750_s0 + $0x6c8] sm:$0xff]  ;;  %v190_v37 = vld [vmem:[%s1750_s0 + $0x5b0] sm:$0xff] }
   0x9   :  { %v335_v18 = vmax.f32 %v334_v12, %v152_v9  ;;  %v296_v31 = vld [vmem:[%s1750_s0 + $0x900] sm:$0xff]  ;;  %v343_v32 = vmax.f32 %v342_v23, %v153_v19  ;;  %v119_v39 = vld [vmem:[%s1750_s0 + $0x378] sm:$0xff]  ;;  %v357_v41 = vmax.f32 %v356_v34, %v83_v29  ;;  %v261_v46 = vld [vmem:[%s1750_s0 + $0x7e8] sm:$0xff]  ;;  %v351_v48 = vmax.f32 %v350_v38, %v154_v33 }
   0xa   :  { %v12_v42 = vld [vmem:[%s1750_s0 + $0x20] sm:$0xff]  ;;  %v297_v47 = vld [vmem:[%s1750_s0 + $0x908] sm:$0xff]  ;;  %v155_v49 = vld [vmem:[%s1750_s0 + $0x498] sm:$0xff] }
   0xb   :  { %v336_v25 = vmax.f32 %v335_v18, %v188_v11  ;;  %v344_v40 = vmax.f32 %v343_v32, %v189_v22  ;;  %v48_v43 = vld [vmem:[%s1750_s0 + $0x140] sm:$0xff]  ;;  %v226_v52 = vld [vmem:[%s1750_s0 + $0x6d0] sm:$0xff]  ;;  %v191_v53 = vld [vmem:[%s1750_s0 + $0x5b8] sm:$0xff]  ;;  %v358_v54 = vmax.f32 %v357_v41, %v119_v39  ;;  %v352_v57 = vmax.f32 %v351_v48, %v190_v37 }
   0xc   :  { %v84_v44 = vld [vmem:[%s1750_s0 + $0x260] sm:$0xff]  ;;  %v364_v50 = vmax.f32 %v12_v42, %v48_v43  ;;  %v13_v59 = vld [vmem:[%s1750_s0 + $0x28] sm:$0xff]  ;;  %v262_v63 = vld [vmem:[%s1750_s0 + $0x7f0] sm:$0xff] }
   0xd   :  { %v337_v35 = vmax.f32 %v336_v25, %v224_v21  ;;  %v345_v51 = vmax.f32 %v344_v40, %v225_v36  ;;  %v120_v55 = vld [vmem:[%s1750_s0 + $0x380] sm:$0xff]  ;;  %v49_v60 = vld [vmem:[%s1750_s0 + $0x148] sm:$0xff]  ;;  %v298_v0 = vld [vmem:[%s1750_s0 + $0x910] sm:$0xff]  ;;  %v359_v1 = vmax.f32 %v358_v54, %v155_v49  ;;  %v353_v4 = vmax.f32 %v352_v57, %v226_v52 }
   0xe   :  { %v365_v58 = vmax.f32 %v364_v50, %v84_v44  ;;  %v85_v61 = vld [vmem:[%s1750_s0 + $0x268] sm:$0xff]  ;;  %v156_v2 = vld [vmem:[%s1750_s0 + $0x4a0] sm:$0xff]  ;;  %v372_v3 = vmax.f32 %v13_v59, %v49_v60  ;;  %v227_v5 = vld [vmem:[%s1750_s0 + $0x6d8] sm:$0xff] }
   0xf   :  { %v338_v45 = vmax.f32 %v337_v35, %v260_v30  ;;  %v346_v62 = vmax.f32 %v345_v51, %v261_v46  ;;  %v192_v6 = vld [vmem:[%s1750_s0 + $0x5c0] sm:$0xff]  ;;  %v121_v8 = vld [vmem:[%s1750_s0 + $0x388] sm:$0xff]  ;;  %v360_v10 = vmax.f32 %v359_v1, %v191_v53  ;;  %v14_v12 = vld [vmem:[%s1750_s0 + $0x30] sm:$0xff]  ;;  %v354_v15 = vmax.f32 %v353_v4, %v262_v63 }
  0x10   :  { %v366_v7 = vmax.f32 %v365_v58, %v120_v55  ;;  %v373_v11 = vmax.f32 %v372_v3, %v85_v61  ;;  %v50_v13 = vld [vmem:[%s1750_s0 + $0x150] sm:$0xff]  ;;  %v263_v16 = vld [vmem:[%s1750_s0 + $0x7f8] sm:$0xff]  ;;  %v157_v19 = vld [vmem:[%s1750_s0 + $0x4a8] sm:$0xff] }
  0x11   :  { %v339_v56 = vmax.f32 %v338_v45, %v296_v31  ;;  %v347_v9 = vmax.f32 %v346_v62, %v297_v47  ;;  %v86_v14 = vld [vmem:[%s1750_s0 + $0x270] sm:$0xff]  ;;  %v299_v17 = vld [vmem:[%s1750_s0 + $0x918] sm:$0xff]  ;;  %v380_v20 = vmax.f32 %v14_v12, %v50_v13  ;;  %v361_v21 = vmax.f32 %v360_v10, %v227_v5  ;;  %v228_v22 = vld [vmem:[%s1750_s0 + $0x6e0] sm:$0xff] }
  0x12   :  { %v367_v18 = vmax.f32 %v366_v7, %v156_v2  ;;  %v193_v23 = vld [vmem:[%s1750_s0 + $0x5c8] sm:$0xff]  ;;  %v374_v24 = vmax.f32 %v373_v11, %v121_v8  ;;  %v122_v25 = vld [vmem:[%s1750_s0 + $0x390] sm:$0xff]  ;;  %v355_v26 = vmax.f32 %v354_v15, %v298_v0  ;;  %v15_v29 = vld [vmem:[%s1750_s0 + $0x38] sm:$0xff] }
  0x13   :  { %620 = vst [vmem:[%s1751_s1] sm:$0xff] %v339_v56  ;;  %621 = vst [vmem:[%s1751_s1 + $0x8] sm:$0xff] %v347_v9  ;;  %v381_v28 = vmax.f32 %v380_v20, %v86_v14  ;;  %v51_v30 = vld [vmem:[%s1750_s0 + $0x158] sm:$0xff]  ;;  %v362_v32 = vmax.f32 %v361_v21, %v263_v16  ;;  %v264_v33 = vld [vmem:[%s1750_s0 + $0x800] sm:$0xff] }
  0x14   :  { %v368_v27 = vmax.f32 %v367_v18, %v192_v6  ;;  %v87_v31 = vld [vmem:[%s1750_s0 + $0x278] sm:$0xff]  ;;  %v300_v34 = vld [vmem:[%s1750_s0 + $0x920] sm:$0xff]  ;;  %v375_v35 = vmax.f32 %v374_v24, %v157_v19  ;;  %v158_v36 = vld [vmem:[%s1750_s0 + $0x4b0] sm:$0xff]  ;;  %v388_v37 = vmax.f32 %v15_v29, %v51_v30  ;;  %622 = vst [vmem:[%s1751_s1 + $0x10] sm:$0xff] %v355_v26 }
  0x15   :  { %v229_v39 = vld [vmem:[%s1750_s0 + $0x6e8] sm:$0xff]  ;;  %v194_v40 = vld [vmem:[%s1750_s0 + $0x5d0] sm:$0xff]  ;;  %v382_v41 = vmax.f32 %v381_v28, %v122_v25  ;;  %v123_v42 = vld [vmem:[%s1750_s0 + $0x398] sm:$0xff]  ;;  %v363_v43 = vmax.f32 %v362_v32, %v299_v17 }
  0x16   :  { %v369_v38 = vmax.f32 %v368_v27, %v228_v22  ;;  %v376_v44 = vmax.f32 %v375_v35, %v193_v23  ;;  %v389_v45 = vmax.f32 %v388_v37, %v87_v31  ;;  %v16_v46 = vld [vmem:[%s1750_s0 + $0x40] sm:$0xff]  ;;  %v265_v50 = vld [vmem:[%s1750_s0 + $0x808] sm:$0xff]  ;;  %v159_v53 = vld [vmem:[%s1750_s0 + $0x4b8] sm:$0xff] }
  0x17   :  { %v52_v47 = vld [vmem:[%s1750_s0 + $0x160] sm:$0xff]  ;;  %v301_v51 = vld [vmem:[%s1750_s0 + $0x928] sm:$0xff]  ;;  %v383_v52 = vmax.f32 %v382_v41, %v158_v36  ;;  %623 = vst [vmem:[%s1751_s1 + $0x18] sm:$0xff] %v363_v43  ;;  %v230_v56 = vld [vmem:[%s1750_s0 + $0x6f0] sm:$0xff] }
  0x18   :  { %v88_v48 = vld [vmem:[%s1750_s0 + $0x280] sm:$0xff]  ;;  %v370_v49 = vmax.f32 %v369_v38, %v264_v33  ;;  %v396_v54 = vmax.f32 %v16_v46, %v52_v47  ;;  %v377_v55 = vmax.f32 %v376_v44, %v229_v39  ;;  %v195_v57 = vld [vmem:[%s1750_s0 + $0x5d8] sm:$0xff]  ;;  %v390_v58 = vmax.f32 %v389_v45, %v123_v42  ;;  %v17_v63 = vld [vmem:[%s1750_s0 + $0x48] sm:$0xff] }
  0x19   :  { %v124_v59 = vld [vmem:[%s1750_s0 + $0x3a0] sm:$0xff]  ;;  %v384_v61 = vmax.f32 %v383_v52, %v194_v40  ;;  %v53_v0 = vld [vmem:[%s1750_s0 + $0x168] sm:$0xff]  ;;  %v266_v3 = vld [vmem:[%s1750_s0 + $0x810] sm:$0xff] }
  0x1a   :  { %v371_v60 = vmax.f32 %v370_v49, %v300_v34  ;;  %v397_v62 = vmax.f32 %v396_v54, %v88_v48  ;;  %v89_v1 = vld [vmem:[%s1750_s0 + $0x288] sm:$0xff]  ;;  %v378_v2 = vmax.f32 %v377_v55, %v265_v50  ;;  %v302_v4 = vld [vmem:[%s1750_s0 + $0x930] sm:$0xff]  ;;  %v391_v5 = vmax.f32 %v390_v58, %v159_v53  ;;  %v160_v6 = vld [vmem:[%s1750_s0 + $0x4c0] sm:$0xff] }
  0x1b   :  { %v404_v7 = vmax.f32 %v17_v63, %v53_v0  ;;  %v385_v8 = vmax.f32 %v384_v61, %v230_v56  ;;  %v231_v9 = vld [vmem:[%s1750_s0 + $0x6f8] sm:$0xff]  ;;  %v196_v10 = vld [vmem:[%s1750_s0 + $0x5e0] sm:$0xff]  ;;  %v125_v12 = vld [vmem:[%s1750_s0 + $0x3a8] sm:$0xff] }
  0x1c   :  { %624 = vst [vmem:[%s1751_s1 + $0x20] sm:$0xff] %v371_v60  ;;  %v398_v11 = vmax.f32 %v397_v62, %v124_v59  ;;  %v379_v13 = vmax.f32 %v378_v2, %v301_v51  ;;  %v392_v14 = vmax.f32 %v391_v5, %v195_v57  ;;  %v18_v16 = vld [vmem:[%s1750_s0 + $0x50] sm:$0xff]  ;;  %v267_v20 = vld [vmem:[%s1750_s0 + $0x818] sm:$0xff]  ;;  %v161_v23 = vld [vmem:[%s1750_s0 + $0x4c8] sm:$0xff] }
  0x1d   :  { %v405_v15 = vmax.f32 %v404_v7, %v89_v1  ;;  %v54_v17 = vld [vmem:[%s1750_s0 + $0x170] sm:$0xff]  ;;  %v386_v19 = vmax.f32 %v385_v8, %v266_v3  ;;  %v303_v21 = vld [vmem:[%s1750_s0 + $0x938] sm:$0xff]  ;;  %v232_v26 = vld [vmem:[%s1750_s0 + $0x700] sm:$0xff] }
  0x1e   :  { %v90_v18 = vld [vmem:[%s1750_s0 + $0x290] sm:$0xff]  ;;  %v399_v22 = vmax.f32 %v398_v11, %v160_v6  ;;  %v412_v24 = vmax.f32 %v18_v16, %v54_v17  ;;  %625 = vst [vmem:[%s1751_s1 + $0x28] sm:$0xff] %v379_v13  ;;  %v393_v25 = vmax.f32 %v392_v14, %v231_v9  ;;  %v197_v27 = vld [vmem:[%s1750_s0 + $0x5e8] sm:$0xff]  ;;  %v19_v33 = vld [vmem:[%s1750_s0 + $0x58] sm:$0xff] }
  0x1f   :  { %v406_v28 = vmax.f32 %v405_v15, %v125_v12  ;;  %v126_v29 = vld [vmem:[%s1750_s0 + $0x3b0] sm:$0xff]  ;;  %v387_v30 = vmax.f32 %v386_v19, %v302_v4  ;;  %v55_v34 = vld [vmem:[%s1750_s0 + $0x178] sm:$0xff]  ;;  %v268_v37 = vld [vmem:[%s1750_s0 + $0x820] sm:$0xff] }
  0x20   :  { %v400_v31 = vmax.f32 %v399_v22, %v196_v10  ;;  %v413_v32 = vmax.f32 %v412_v24, %v90_v18  ;;  %v91_v35 = vld [vmem:[%s1750_s0 + $0x298] sm:$0xff]  ;;  %v394_v36 = vmax.f32 %v393_v25, %v267_v20  ;;  %v304_v38 = vld [vmem:[%s1750_s0 + $0x940] sm:$0xff]  ;;  %v162_v40 = vld [vmem:[%s1750_s0 + $0x4d0] sm:$0xff]  ;;  %v420_v41 = vmax.f32 %v19_v33, %v55_v34 }
  0x21   :  { %v407_v39 = vmax.f32 %v406_v28, %v161_v23  ;;  %626 = vst [vmem:[%s1751_s1 + $0x30] sm:$0xff] %v387_v30  ;;  %v233_v43 = vld [vmem:[%s1750_s0 + $0x708] sm:$0xff]  ;;  %v198_v44 = vld [vmem:[%s1750_s0 + $0x5f0] sm:$0xff]  ;;  %v127_v46 = vld [vmem:[%s1750_s0 + $0x3b8] sm:$0xff] }
  0x22   :  { %v401_v42 = vmax.f32 %v400_v31, %v232_v26  ;;  %v414_v45 = vmax.f32 %v413_v32, %v126_v29  ;;  %v395_v47 = vmax.f32 %v394_v36, %v303_v21  ;;  %v421_v49 = vmax.f32 %v420_v41, %v91_v35  ;;  %v20_v50 = vld [vmem:[%s1750_s0 + $0x60] sm:$0xff]  ;;  %v269_v54 = vld [vmem:[%s1750_s0 + $0x828] sm:$0xff]  ;;  %v163_v57 = vld [vmem:[%s1750_s0 + $0x4d8] sm:$0xff] }
  0x23   :  { %v408_v48 = vmax.f32 %v407_v39, %v197_v27  ;;  %v56_v51 = vld [vmem:[%s1750_s0 + $0x180] sm:$0xff]  ;;  %v305_v55 = vld [vmem:[%s1750_s0 + $0x948] sm:$0xff]  ;;  %v234_v60 = vld [vmem:[%s1750_s0 + $0x710] sm:$0xff] }
  0x24   :  { %v92_v52 = vld [vmem:[%s1750_s0 + $0x2a0] sm:$0xff]  ;;  %v402_v53 = vmax.f32 %v401_v42, %v268_v37  ;;  %v415_v56 = vmax.f32 %v414_v45, %v162_v40  ;;  %v428_v58 = vmax.f32 %v20_v50, %v56_v51  ;;  %627 = vst [vmem:[%s1751_s1 + $0x38] sm:$0xff] %v395_v47  ;;  %v199_v61 = vld [vmem:[%s1750_s0 + $0x5f8] sm:$0xff]  ;;  %v422_v62 = vmax.f32 %v421_v49, %v127_v46  ;;  %v21_v3 = vld [vmem:[%s1750_s0 + $0x68] sm:$0xff] }
  0x25   :  { %v409_v59 = vmax.f32 %v408_v48, %v233_v43  ;;  %v128_v63 = vld [vmem:[%s1750_s0 + $0x3c0] sm:$0xff]  ;;  %v57_v4 = vld [vmem:[%s1750_s0 + $0x188] sm:$0xff]  ;;  %v270_v7 = vld [vmem:[%s1750_s0 + $0x830] sm:$0xff] }
  0x26   :  { %v403_v0 = vmax.f32 %v402_v53, %v304_v38  ;;  %v416_v1 = vmax.f32 %v415_v56, %v198_v44  ;;  %v429_v2 = vmax.f32 %v428_v58, %v92_v52  ;;  %v93_v5 = vld [vmem:[%s1750_s0 + $0x2a8] sm:$0xff]  ;;  %v306_v8 = vld [vmem:[%s1750_s0 + $0x950] sm:$0xff]  ;;  %v423_v9 = vmax.f32 %v422_v62, %v163_v57  ;;  %v164_v10 = vld [vmem:[%s1750_s0 + $0x4e0] sm:$0xff] }
  0x27   :  { %v410_v6 = vmax.f32 %v409_v59, %v269_v54  ;;  %v436_v11 = vmax.f32 %v21_v3, %v57_v4  ;;  %v235_v13 = vld [vmem:[%s1750_s0 + $0x718] sm:$0xff]  ;;  %v200_v14 = vld [vmem:[%s1750_s0 + $0x600] sm:$0xff]  ;;  %v129_v16 = vld [vmem:[%s1750_s0 + $0x3c8] sm:$0xff] }
  0x28   :  { %628 = vst [vmem:[%s1751_s1 + $0x40] sm:$0xff] %v403_v0  ;;  %v417_v12 = vmax.f32 %v416_v1, %v234_v60  ;;  %v430_v15 = vmax.f32 %v429_v2, %v128_v63  ;;  %v424_v18 = vmax.f32 %v423_v9, %v199_v61  ;;  %v22_v20 = vld [vmem:[%s1750_s0 + $0x70] sm:$0xff]  ;;  %v271_v24 = vld [vmem:[%s1750_s0 + $0x838] sm:$0xff]  ;;  %v165_v27 = vld [vmem:[%s1750_s0 + $0x4e8] sm:$0xff] }
  0x29   :  { %v411_v17 = vmax.f32 %v410_v6, %v305_v55  ;;  %v437_v19 = vmax.f32 %v436_v11, %v93_v5  ;;  %v58_v21 = vld [vmem:[%s1750_s0 + $0x190] sm:$0xff]  ;;  %v307_v25 = vld [vmem:[%s1750_s0 + $0x958] sm:$0xff]  ;;  %v236_v30 = vld [vmem:[%s1750_s0 + $0x720] sm:$0xff] }
  0x2a   :  { %v94_v22 = vld [vmem:[%s1750_s0 + $0x2b0] sm:$0xff]  ;;  %v418_v23 = vmax.f32 %v417_v12, %v270_v7  ;;  %v431_v26 = vmax.f32 %v430_v15, %v164_v10  ;;  %v444_v28 = vmax.f32 %v22_v20, %v58_v21  ;;  %v425_v29 = vmax.f32 %v424_v18, %v235_v13  ;;  %v201_v31 = vld [vmem:[%s1750_s0 + $0x608] sm:$0xff]  ;;  %v23_v37 = vld [vmem:[%s1750_s0 + $0x78] sm:$0xff] }
  0x2b   :  { %629 = vst [vmem:[%s1751_s1 + $0x48] sm:$0xff] %v411_v17  ;;  %v438_v32 = vmax.f32 %v437_v19, %v129_v16  ;;  %v130_v33 = vld [vmem:[%s1750_s0 + $0x3d0] sm:$0xff]  ;;  %v59_v38 = vld [vmem:[%s1750_s0 + $0x198] sm:$0xff]  ;;  %v272_v41 = vld [vmem:[%s1750_s0 + $0x840] sm:$0xff] }
  0x2c   :  { %v419_v34 = vmax.f32 %v418_v23, %v306_v8  ;;  %v432_v35 = vmax.f32 %v431_v26, %v200_v14  ;;  %v445_v36 = vmax.f32 %v444_v28, %v94_v22  ;;  %v95_v39 = vld [vmem:[%s1750_s0 + $0x2b8] sm:$0xff]  ;;  %v426_v40 = vmax.f32 %v425_v29, %v271_v24  ;;  %v308_v42 = vld [vmem:[%s1750_s0 + $0x960] sm:$0xff]  ;;  %v166_v44 = vld [vmem:[%s1750_s0 + $0x4f0] sm:$0xff] }
  0x2d   :  { %v439_v43 = vmax.f32 %v438_v32, %v165_v27  ;;  %v452_v45 = vmax.f32 %v23_v37, %v59_v38  ;;  %v237_v47 = vld [vmem:[%s1750_s0 + $0x728] sm:$0xff]  ;;  %v202_v48 = vld [vmem:[%s1750_s0 + $0x610] sm:$0xff]  ;;  %v131_v50 = vld [vmem:[%s1750_s0 + $0x3d8] sm:$0xff] }
  0x2e   :  { %630 = vst [vmem:[%s1751_s1 + $0x50] sm:$0xff] %v419_v34  ;;  %v433_v46 = vmax.f32 %v432_v35, %v236_v30  ;;  %v446_v49 = vmax.f32 %v445_v36, %v130_v33  ;;  %v427_v51 = vmax.f32 %v426_v40, %v307_v25  ;;  %v24_v54 = vld [vmem:[%s1750_s0 + $0x80] sm:$0xff]  ;;  %v273_v58 = vld [vmem:[%s1750_s0 + $0x848] sm:$0xff]  ;;  %v167_v61 = vld [vmem:[%s1750_s0 + $0x4f8] sm:$0xff] }
  0x2f   :  { %v440_v52 = vmax.f32 %v439_v43, %v201_v31  ;;  %v453_v53 = vmax.f32 %v452_v45, %v95_v39  ;;  %v60_v55 = vld [vmem:[%s1750_s0 + $0x1a0] sm:$0xff]  ;;  %v309_v59 = vld [vmem:[%s1750_s0 + $0x968] sm:$0xff]  ;;  %v238_v0 = vld [vmem:[%s1750_s0 + $0x730] sm:$0xff] }
  0x30   :  { %v96_v56 = vld [vmem:[%s1750_s0 + $0x2c0] sm:$0xff]  ;;  %v434_v57 = vmax.f32 %v433_v46, %v272_v41  ;;  %v447_v60 = vmax.f32 %v446_v49, %v166_v44  ;;  %v460_v62 = vmax.f32 %v24_v54, %v60_v55  ;;  %631 = vst [vmem:[%s1751_s1 + $0x58] sm:$0xff] %v427_v51  ;;  %v203_v1 = vld [vmem:[%s1750_s0 + $0x618] sm:$0xff]  ;;  %v25_v7 = vld [vmem:[%s1750_s0 + $0x88] sm:$0xff] }
  0x31   :  { %v441_v63 = vmax.f32 %v440_v52, %v237_v47  ;;  %v454_v2 = vmax.f32 %v453_v53, %v131_v50  ;;  %v132_v3 = vld [vmem:[%s1750_s0 + $0x3e0] sm:$0xff]  ;;  %v61_v8 = vld [vmem:[%s1750_s0 + $0x1a8] sm:$0xff]  ;;  %v274_v11 = vld [vmem:[%s1750_s0 + $0x850] sm:$0xff] }
  0x32   :  { %v435_v4 = vmax.f32 %v434_v57, %v308_v42  ;;  %v448_v5 = vmax.f32 %v447_v60, %v202_v48  ;;  %v461_v6 = vmax.f32 %v460_v62, %v96_v56  ;;  %v97_v9 = vld [vmem:[%s1750_s0 + $0x2c8] sm:$0xff]  ;;  %v310_v12 = vld [vmem:[%s1750_s0 + $0x970] sm:$0xff]  ;;  %v168_v14 = vld [vmem:[%s1750_s0 + $0x500] sm:$0xff]  ;;  %v468_v15 = vmax.f32 %v25_v7, %v61_v8 }
  0x33   :  { %v442_v10 = vmax.f32 %v441_v63, %v273_v58  ;;  %v455_v13 = vmax.f32 %v454_v2, %v167_v61  ;;  %v239_v17 = vld [vmem:[%s1750_s0 + $0x738] sm:$0xff]  ;;  %v204_v18 = vld [vmem:[%s1750_s0 + $0x620] sm:$0xff]  ;;  %v133_v20 = vld [vmem:[%s1750_s0 + $0x3e8] sm:$0xff] }
  0x34   :  { %632 = vst [vmem:[%s1751_s1 + $0x60] sm:$0xff] %v435_v4  ;;  %v449_v16 = vmax.f32 %v448_v5, %v238_v0  ;;  %v462_v19 = vmax.f32 %v461_v6, %v132_v3  ;;  %v469_v23 = vmax.f32 %v468_v15, %v97_v9  ;;  %v26_v24 = vld [vmem:[%s1750_s0 + $0x90] sm:$0xff]  ;;  %v275_v28 = vld [vmem:[%s1750_s0 + $0x858] sm:$0xff]  ;;  %v169_v31 = vld [vmem:[%s1750_s0 + $0x508] sm:$0xff] }
  0x35   :  { %v443_v21 = vmax.f32 %v442_v10, %v309_v59  ;;  %v456_v22 = vmax.f32 %v455_v13, %v203_v1  ;;  %v62_v25 = vld [vmem:[%s1750_s0 + $0x1b0] sm:$0xff]  ;;  %v311_v29 = vld [vmem:[%s1750_s0 + $0x978] sm:$0xff]  ;;  %v240_v34 = vld [vmem:[%s1750_s0 + $0x740] sm:$0xff] }
  0x36   :  { %v98_v26 = vld [vmem:[%s1750_s0 + $0x2d0] sm:$0xff]  ;;  %v450_v27 = vmax.f32 %v449_v16, %v274_v11  ;;  %v463_v30 = vmax.f32 %v462_v19, %v168_v14  ;;  %v476_v32 = vmax.f32 %v26_v24, %v62_v25  ;;  %v205_v35 = vld [vmem:[%s1750_s0 + $0x628] sm:$0xff]  ;;  %v470_v36 = vmax.f32 %v469_v23, %v133_v20  ;;  %v27_v41 = vld [vmem:[%s1750_s0 + $0x98] sm:$0xff] }
  0x37   :  { %633 = vst [vmem:[%s1751_s1 + $0x68] sm:$0xff] %v443_v21  ;;  %v457_v33 = vmax.f32 %v456_v22, %v239_v17  ;;  %v134_v37 = vld [vmem:[%s1750_s0 + $0x3f0] sm:$0xff]  ;;  %v63_v42 = vld [vmem:[%s1750_s0 + $0x1b8] sm:$0xff]  ;;  %v276_v45 = vld [vmem:[%s1750_s0 + $0x860] sm:$0xff] }
  0x38   :  { %v451_v38 = vmax.f32 %v450_v27, %v310_v12  ;;  %v464_v39 = vmax.f32 %v463_v30, %v204_v18  ;;  %v477_v40 = vmax.f32 %v476_v32, %v98_v26  ;;  %v99_v43 = vld [vmem:[%s1750_s0 + $0x2d8] sm:$0xff]  ;;  %v312_v46 = vld [vmem:[%s1750_s0 + $0x980] sm:$0xff]  ;;  %v471_v47 = vmax.f32 %v470_v36, %v169_v31  ;;  %v170_v48 = vld [vmem:[%s1750_s0 + $0x510] sm:$0xff] }
  0x39   :  { %v458_v44 = vmax.f32 %v457_v33, %v275_v28  ;;  %v484_v49 = vmax.f32 %v27_v41, %v63_v42  ;;  %v241_v51 = vld [vmem:[%s1750_s0 + $0x748] sm:$0xff]  ;;  %v206_v52 = vld [vmem:[%s1750_s0 + $0x630] sm:$0xff]  ;;  %v135_v54 = vld [vmem:[%s1750_s0 + $0x3f8] sm:$0xff] }
  0x3a   :  { %634 = vst [vmem:[%s1751_s1 + $0x70] sm:$0xff] %v451_v38  ;;  %v465_v50 = vmax.f32 %v464_v39, %v240_v34  ;;  %v478_v53 = vmax.f32 %v477_v40, %v134_v37  ;;  %v472_v56 = vmax.f32 %v471_v47, %v205_v35  ;;  %v28_v58 = vld [vmem:[%s1750_s0 + $0xa0] sm:$0xff]  ;;  %v277_v62 = vld [vmem:[%s1750_s0 + $0x868] sm:$0xff]  ;;  %v171_v1 = vld [vmem:[%s1750_s0 + $0x518] sm:$0xff] }
  0x3b   :  { %v459_v55 = vmax.f32 %v458_v44, %v311_v29  ;;  %v485_v57 = vmax.f32 %v484_v49, %v99_v43  ;;  %v64_v59 = vld [vmem:[%s1750_s0 + $0x1c0] sm:$0xff]  ;;  %v313_v63 = vld [vmem:[%s1750_s0 + $0x988] sm:$0xff]  ;;  %v242_v4 = vld [vmem:[%s1750_s0 + $0x750] sm:$0xff] }
  0x3c   :  { %v100_v60 = vld [vmem:[%s1750_s0 + $0x2e0] sm:$0xff]  ;;  %v466_v61 = vmax.f32 %v465_v50, %v276_v45  ;;  %v479_v0 = vmax.f32 %v478_v53, %v170_v48  ;;  %v492_v2 = vmax.f32 %v28_v58, %v64_v59  ;;  %v473_v3 = vmax.f32 %v472_v56, %v241_v51  ;;  %v207_v5 = vld [vmem:[%s1750_s0 + $0x638] sm:$0xff]  ;;  %v29_v11 = vld [vmem:[%s1750_s0 + $0xa8] sm:$0xff] }
  0x3d   :  { %635 = vst [vmem:[%s1751_s1 + $0x78] sm:$0xff] %v459_v55  ;;  %v486_v6 = vmax.f32 %v485_v57, %v135_v54  ;;  %v136_v7 = vld [vmem:[%s1750_s0 + $0x400] sm:$0xff]  ;;  %v65_v12 = vld [vmem:[%s1750_s0 + $0x1c8] sm:$0xff]  ;;  %v278_v15 = vld [vmem:[%s1750_s0 + $0x870] sm:$0xff] }
  0x3e   :  { %v467_v8 = vmax.f32 %v466_v61, %v312_v46  ;;  %v480_v9 = vmax.f32 %v479_v0, %v206_v52  ;;  %v493_v10 = vmax.f32 %v492_v2, %v100_v60  ;;  %v101_v13 = vld [vmem:[%s1750_s0 + $0x2e8] sm:$0xff]  ;;  %v474_v14 = vmax.f32 %v473_v3, %v277_v62  ;;  %v314_v16 = vld [vmem:[%s1750_s0 + $0x990] sm:$0xff]  ;;  %v172_v18 = vld [vmem:[%s1750_s0 + $0x520] sm:$0xff] }
  0x3f   :  { %v487_v17 = vmax.f32 %v486_v6, %v171_v1  ;;  %v500_v19 = vmax.f32 %v29_v11, %v65_v12  ;;  %v243_v21 = vld [vmem:[%s1750_s0 + $0x758] sm:$0xff]  ;;  %v208_v22 = vld [vmem:[%s1750_s0 + $0x640] sm:$0xff]  ;;  %v137_v24 = vld [vmem:[%s1750_s0 + $0x408] sm:$0xff] }
  0x40   :  { %636 = vst [vmem:[%s1751_s1 + $0x80] sm:$0xff] %v467_v8  ;;  %v481_v20 = vmax.f32 %v480_v9, %v242_v4  ;;  %v494_v23 = vmax.f32 %v493_v10, %v136_v7  ;;  %v475_v25 = vmax.f32 %v474_v14, %v313_v63  ;;  %v30_v28 = vld [vmem:[%s1750_s0 + $0xb0] sm:$0xff]  ;;  %v279_v32 = vld [vmem:[%s1750_s0 + $0x878] sm:$0xff]  ;;  %v173_v35 = vld [vmem:[%s1750_s0 + $0x528] sm:$0xff] }
  0x41   :  { %v488_v26 = vmax.f32 %v487_v17, %v207_v5  ;;  %v501_v27 = vmax.f32 %v500_v19, %v101_v13  ;;  %v66_v29 = vld [vmem:[%s1750_s0 + $0x1d0] sm:$0xff]  ;;  %v315_v33 = vld [vmem:[%s1750_s0 + $0x998] sm:$0xff]  ;;  %v244_v38 = vld [vmem:[%s1750_s0 + $0x760] sm:$0xff] }
  0x42   :  { %v102_v30 = vld [vmem:[%s1750_s0 + $0x2f0] sm:$0xff]  ;;  %v482_v31 = vmax.f32 %v481_v20, %v278_v15  ;;  %v495_v34 = vmax.f32 %v494_v23, %v172_v18  ;;  %v508_v36 = vmax.f32 %v30_v28, %v66_v29  ;;  %637 = vst [vmem:[%s1751_s1 + $0x88] sm:$0xff] %v475_v25  ;;  %v209_v39 = vld [vmem:[%s1750_s0 + $0x648] sm:$0xff]  ;;  %v31_v45 = vld [vmem:[%s1750_s0 + $0xb8] sm:$0xff] }
  0x43   :  { %v489_v37 = vmax.f32 %v488_v26, %v243_v21  ;;  %v502_v40 = vmax.f32 %v501_v27, %v137_v24  ;;  %v138_v41 = vld [vmem:[%s1750_s0 + $0x410] sm:$0xff]  ;;  %v67_v46 = vld [vmem:[%s1750_s0 + $0x1d8] sm:$0xff]  ;;  %v280_v49 = vld [vmem:[%s1750_s0 + $0x880] sm:$0xff] }
  0x44   :  { %v483_v42 = vmax.f32 %v482_v31, %v314_v16  ;;  %v496_v43 = vmax.f32 %v495_v34, %v208_v22  ;;  %v509_v44 = vmax.f32 %v508_v36, %v102_v30  ;;  %v103_v47 = vld [vmem:[%s1750_s0 + $0x2f8] sm:$0xff]  ;;  %v316_v50 = vld [vmem:[%s1750_s0 + $0x9a0] sm:$0xff]  ;;  %v174_v52 = vld [vmem:[%s1750_s0 + $0x530] sm:$0xff]  ;;  %v516_v53 = vmax.f32 %v31_v45, %v67_v46 }
  0x45   :  { %v490_v48 = vmax.f32 %v489_v37, %v279_v32  ;;  %v503_v51 = vmax.f32 %v502_v40, %v173_v35  ;;  %v245_v55 = vld [vmem:[%s1750_s0 + $0x768] sm:$0xff]  ;;  %v210_v56 = vld [vmem:[%s1750_s0 + $0x650] sm:$0xff]  ;;  %v139_v58 = vld [vmem:[%s1750_s0 + $0x418] sm:$0xff] }
  0x46   :  { %638 = vst [vmem:[%s1751_s1 + $0x90] sm:$0xff] %v483_v42  ;;  %v497_v54 = vmax.f32 %v496_v43, %v244_v38  ;;  %v510_v57 = vmax.f32 %v509_v44, %v138_v41  ;;  %v517_v61 = vmax.f32 %v516_v53, %v103_v47  ;;  %v32_v62 = vld [vmem:[%s1750_s0 + $0xc0] sm:$0xff]  ;;  %v281_v2 = vld [vmem:[%s1750_s0 + $0x888] sm:$0xff]  ;;  %v175_v5 = vld [vmem:[%s1750_s0 + $0x538] sm:$0xff] }
  0x47   :  { %v491_v59 = vmax.f32 %v490_v48, %v315_v33  ;;  %v504_v60 = vmax.f32 %v503_v51, %v209_v39  ;;  %v68_v63 = vld [vmem:[%s1750_s0 + $0x1e0] sm:$0xff]  ;;  %v317_v3 = vld [vmem:[%s1750_s0 + $0x9a8] sm:$0xff]  ;;  %v246_v8 = vld [vmem:[%s1750_s0 + $0x770] sm:$0xff] }
  0x48   :  { %v104_v0 = vld [vmem:[%s1750_s0 + $0x300] sm:$0xff]  ;;  %v498_v1 = vmax.f32 %v497_v54, %v280_v49  ;;  %v511_v4 = vmax.f32 %v510_v57, %v174_v52  ;;  %v524_v6 = vmax.f32 %v32_v62, %v68_v63  ;;  %v211_v9 = vld [vmem:[%s1750_s0 + $0x658] sm:$0xff]  ;;  %v518_v10 = vmax.f32 %v517_v61, %v139_v58  ;;  %v33_v15 = vld [vmem:[%s1750_s0 + $0xc8] sm:$0xff] }
  0x49   :  { %639 = vst [vmem:[%s1751_s1 + $0x98] sm:$0xff] %v491_v59  ;;  %v505_v7 = vmax.f32 %v504_v60, %v245_v55  ;;  %v140_v11 = vld [vmem:[%s1750_s0 + $0x420] sm:$0xff]  ;;  %v69_v16 = vld [vmem:[%s1750_s0 + $0x1e8] sm:$0xff]  ;;  %v282_v19 = vld [vmem:[%s1750_s0 + $0x890] sm:$0xff] }
  0x4a   :  { %v499_v12 = vmax.f32 %v498_v1, %v316_v50  ;;  %v512_v13 = vmax.f32 %v511_v4, %v210_v56  ;;  %v525_v14 = vmax.f32 %v524_v6, %v104_v0  ;;  %v105_v17 = vld [vmem:[%s1750_s0 + $0x308] sm:$0xff]  ;;  %v318_v20 = vld [vmem:[%s1750_s0 + $0x9b0] sm:$0xff]  ;;  %v519_v21 = vmax.f32 %v518_v10, %v175_v5  ;;  %v176_v22 = vld [vmem:[%s1750_s0 + $0x540] sm:$0xff] }
  0x4b   :  { %v506_v18 = vmax.f32 %v505_v7, %v281_v2  ;;  %v532_v23 = vmax.f32 %v33_v15, %v69_v16  ;;  %v247_v25 = vld [vmem:[%s1750_s0 + $0x778] sm:$0xff]  ;;  %v212_v26 = vld [vmem:[%s1750_s0 + $0x660] sm:$0xff]  ;;  %v141_v28 = vld [vmem:[%s1750_s0 + $0x428] sm:$0xff] }
  0x4c   :  { %640 = vst [vmem:[%s1751_s1 + $0xa0] sm:$0xff] %v499_v12  ;;  %v513_v24 = vmax.f32 %v512_v13, %v246_v8  ;;  %v526_v27 = vmax.f32 %v525_v14, %v140_v11  ;;  %v520_v30 = vmax.f32 %v519_v21, %v211_v9  ;;  %v34_v32 = vld [vmem:[%s1750_s0 + $0xd0] sm:$0xff]  ;;  %v283_v36 = vld [vmem:[%s1750_s0 + $0x898] sm:$0xff]  ;;  %v177_v39 = vld [vmem:[%s1750_s0 + $0x548] sm:$0xff] }
  0x4d   :  { %v507_v29 = vmax.f32 %v506_v18, %v317_v3  ;;  %v533_v31 = vmax.f32 %v532_v23, %v105_v17  ;;  %v70_v33 = vld [vmem:[%s1750_s0 + $0x1f0] sm:$0xff]  ;;  %v319_v37 = vld [vmem:[%s1750_s0 + $0x9b8] sm:$0xff]  ;;  %v248_v42 = vld [vmem:[%s1750_s0 + $0x780] sm:$0xff] }
  0x4e   :  { %v106_v34 = vld [vmem:[%s1750_s0 + $0x310] sm:$0xff]  ;;  %v514_v35 = vmax.f32 %v513_v24, %v282_v19  ;;  %v527_v38 = vmax.f32 %v526_v27, %v176_v22  ;;  %v540_v40 = vmax.f32 %v34_v32, %v70_v33  ;;  %v521_v41 = vmax.f32 %v520_v30, %v247_v25  ;;  %v213_v43 = vld [vmem:[%s1750_s0 + $0x668] sm:$0xff]  ;;  %v35_v49 = vld [vmem:[%s1750_s0 + $0xd8] sm:$0xff] }
  0x4f   :  { %641 = vst [vmem:[%s1751_s1 + $0xa8] sm:$0xff] %v507_v29  ;;  %v534_v44 = vmax.f32 %v533_v31, %v141_v28  ;;  %v142_v45 = vld [vmem:[%s1750_s0 + $0x430] sm:$0xff]  ;;  %v71_v50 = vld [vmem:[%s1750_s0 + $0x1f8] sm:$0xff]  ;;  %v284_v53 = vld [vmem:[%s1750_s0 + $0x8a0] sm:$0xff] }
  0x50   :  { %v515_v46 = vmax.f32 %v514_v35, %v318_v20  ;;  %v528_v47 = vmax.f32 %v527_v38, %v212_v26  ;;  %v541_v48 = vmax.f32 %v540_v40, %v106_v34  ;;  %v107_v51 = vld [vmem:[%s1750_s0 + $0x318] sm:$0xff]  ;;  %v522_v52 = vmax.f32 %v521_v41, %v283_v36  ;;  %v320_v54 = vld [vmem:[%s1750_s0 + $0x9c0] sm:$0xff]  ;;  %v178_v56 = vld [vmem:[%s1750_s0 + $0x550] sm:$0xff] }
  0x51   :  { %v535_v55 = vmax.f32 %v534_v44, %v177_v39  ;;  %v548_v57 = vmax.f32 %v35_v49, %v71_v50  ;;  %v249_v59 = vld [vmem:[%s1750_s0 + $0x788] sm:$0xff]  ;;  %v214_v60 = vld [vmem:[%s1750_s0 + $0x670] sm:$0xff]  ;;  %v143_v62 = vld [vmem:[%s1750_s0 + $0x438] sm:$0xff] }
  0x52   :  { %642 = vst [vmem:[%s1751_s1 + $0xb0] sm:$0xff] %v515_v46  ;;  %v529_v58 = vmax.f32 %v528_v47, %v248_v42  ;;  %v542_v61 = vmax.f32 %v541_v48, %v142_v45  ;;  %v523_v63 = vmax.f32 %v522_v52, %v319_v37  ;;  %v36_v2 = vld [vmem:[%s1750_s0 + $0xe0] sm:$0xff]  ;;  %v285_v6 = vld [vmem:[%s1750_s0 + $0x8a8] sm:$0xff]  ;;  %v179_v9 = vld [vmem:[%s1750_s0 + $0x558] sm:$0xff] }
  0x53   :  { %v536_v0 = vmax.f32 %v535_v55, %v213_v43  ;;  %v549_v1 = vmax.f32 %v548_v57, %v107_v51  ;;  %v72_v3 = vld [vmem:[%s1750_s0 + $0x200] sm:$0xff]  ;;  %v321_v7 = vld [vmem:[%s1750_s0 + $0x9c8] sm:$0xff]  ;;  %v250_v12 = vld [vmem:[%s1750_s0 + $0x790] sm:$0xff] }
  0x54   :  { %v108_v4 = vld [vmem:[%s1750_s0 + $0x320] sm:$0xff]  ;;  %v530_v5 = vmax.f32 %v529_v58, %v284_v53  ;;  %v543_v8 = vmax.f32 %v542_v61, %v178_v56  ;;  %v556_v10 = vmax.f32 %v36_v2, %v72_v3  ;;  %643 = vst [vmem:[%s1751_s1 + $0xb8] sm:$0xff] %v523_v63  ;;  %v215_v13 = vld [vmem:[%s1750_s0 + $0x678] sm:$0xff]  ;;  %v37_v19 = vld [vmem:[%s1750_s0 + $0xe8] sm:$0xff] }
  0x55   :  { %v537_v11 = vmax.f32 %v536_v0, %v249_v59  ;;  %v550_v14 = vmax.f32 %v549_v1, %v143_v62  ;;  %v144_v15 = vld [vmem:[%s1750_s0 + $0x440] sm:$0xff]  ;;  %v73_v20 = vld [vmem:[%s1750_s0 + $0x208] sm:$0xff]  ;;  %v286_v23 = vld [vmem:[%s1750_s0 + $0x8b0] sm:$0xff] }
  0x56   :  { %v531_v16 = vmax.f32 %v530_v5, %v320_v54  ;;  %v544_v17 = vmax.f32 %v543_v8, %v214_v60  ;;  %v557_v18 = vmax.f32 %v556_v10, %v108_v4  ;;  %v109_v21 = vld [vmem:[%s1750_s0 + $0x328] sm:$0xff]  ;;  %v322_v24 = vld [vmem:[%s1750_s0 + $0x9d0] sm:$0xff]  ;;  %v180_v26 = vld [vmem:[%s1750_s0 + $0x560] sm:$0xff]  ;;  %v564_v27 = vmax.f32 %v37_v19, %v73_v20 }
  0x57   :  { %v538_v22 = vmax.f32 %v537_v11, %v285_v6  ;;  %v551_v25 = vmax.f32 %v550_v14, %v179_v9  ;;  %v251_v29 = vld [vmem:[%s1750_s0 + $0x798] sm:$0xff]  ;;  %v216_v30 = vld [vmem:[%s1750_s0 + $0x680] sm:$0xff]  ;;  %v145_v32 = vld [vmem:[%s1750_s0 + $0x448] sm:$0xff] }
  0x58   :  { %644 = vst [vmem:[%s1751_s1 + $0xc0] sm:$0xff] %v531_v16  ;;  %v545_v28 = vmax.f32 %v544_v17, %v250_v12  ;;  %v558_v31 = vmax.f32 %v557_v18, %v144_v15  ;;  %v565_v35 = vmax.f32 %v564_v27, %v109_v21  ;;  %v38_v36 = vld [vmem:[%s1750_s0 + $0xf0] sm:$0xff]  ;;  %v287_v40 = vld [vmem:[%s1750_s0 + $0x8b8] sm:$0xff]  ;;  %v181_v43 = vld [vmem:[%s1750_s0 + $0x568] sm:$0xff] }
  0x59   :  { %v539_v33 = vmax.f32 %v538_v22, %v321_v7  ;;  %v552_v34 = vmax.f32 %v551_v25, %v215_v13  ;;  %v74_v37 = vld [vmem:[%s1750_s0 + $0x210] sm:$0xff]  ;;  %v323_v41 = vld [vmem:[%s1750_s0 + $0x9d8] sm:$0xff]  ;;  %v252_v46 = vld [vmem:[%s1750_s0 + $0x7a0] sm:$0xff] }
  0x5a   :  { %v110_v38 = vld [vmem:[%s1750_s0 + $0x330] sm:$0xff]  ;;  %v546_v39 = vmax.f32 %v545_v28, %v286_v23  ;;  %v559_v42 = vmax.f32 %v558_v31, %v180_v26  ;;  %v572_v44 = vmax.f32 %v38_v36, %v74_v37  ;;  %v217_v47 = vld [vmem:[%s1750_s0 + $0x688] sm:$0xff]  ;;  %v566_v48 = vmax.f32 %v565_v35, %v145_v32  ;;  %v39_v53 = vld [vmem:[%s1750_s0 + $0xf8] sm:$0xff] }
  0x5b   :  { %645 = vst [vmem:[%s1751_s1 + $0xc8] sm:$0xff] %v539_v33  ;;  %v553_v45 = vmax.f32 %v552_v34, %v251_v29  ;;  %v146_v49 = vld [vmem:[%s1750_s0 + $0x450] sm:$0xff]  ;;  %v75_v54 = vld [vmem:[%s1750_s0 + $0x218] sm:$0xff]  ;;  %v288_v57 = vld [vmem:[%s1750_s0 + $0x8c0] sm:$0xff] }
  0x5c   :  { %v547_v50 = vmax.f32 %v546_v39, %v322_v24  ;;  %v560_v51 = vmax.f32 %v559_v42, %v216_v30  ;;  %v573_v52 = vmax.f32 %v572_v44, %v110_v38  ;;  %v111_v55 = vld [vmem:[%s1750_s0 + $0x338] sm:$0xff]  ;;  %v324_v58 = vld [vmem:[%s1750_s0 + $0x9e0] sm:$0xff]  ;;  %v567_v59 = vmax.f32 %v566_v48, %v181_v43  ;;  %v182_v60 = vld [vmem:[%s1750_s0 + $0x570] sm:$0xff] }
  0x5d   :  { %v554_v56 = vmax.f32 %v553_v45, %v287_v40  ;;  %v580_v61 = vmax.f32 %v39_v53, %v75_v54  ;;  %v253_v63 = vld [vmem:[%s1750_s0 + $0x7a8] sm:$0xff]  ;;  %v218_v0 = vld [vmem:[%s1750_s0 + $0x690] sm:$0xff]  ;;  %v147_v2 = vld [vmem:[%s1750_s0 + $0x458] sm:$0xff] }
  0x5e   :  { %646 = vst [vmem:[%s1751_s1 + $0xd0] sm:$0xff] %v547_v50  ;;  %v561_v62 = vmax.f32 %v560_v51, %v252_v46  ;;  %v574_v1 = vmax.f32 %v573_v52, %v146_v49  ;;  %v568_v4 = vmax.f32 %v567_v59, %v217_v47  ;;  %v40_v6 = vld [vmem:[%s1750_s0 + $0x100] sm:$0xff]  ;;  %v289_v10 = vld [vmem:[%s1750_s0 + $0x8c8] sm:$0xff]  ;;  %v183_v13 = vld [vmem:[%s1750_s0 + $0x578] sm:$0xff] }
  0x5f   :  { %v555_v3 = vmax.f32 %v554_v56, %v323_v41  ;;  %v581_v5 = vmax.f32 %v580_v61, %v111_v55  ;;  %v76_v7 = vld [vmem:[%s1750_s0 + $0x220] sm:$0xff]  ;;  %v325_v11 = vld [vmem:[%s1750_s0 + $0x9e8] sm:$0xff]  ;;  %v254_v16 = vld [vmem:[%s1750_s0 + $0x7b0] sm:$0xff] }
  0x60   :  { %v112_v8 = vld [vmem:[%s1750_s0 + $0x340] sm:$0xff]  ;;  %v562_v9 = vmax.f32 %v561_v62, %v288_v57  ;;  %v575_v12 = vmax.f32 %v574_v1, %v182_v60  ;;  %v588_v14 = vmax.f32 %v40_v6, %v76_v7  ;;  %v569_v15 = vmax.f32 %v568_v4, %v253_v63  ;;  %v219_v17 = vld [vmem:[%s1750_s0 + $0x698] sm:$0xff]  ;;  %v41_v23 = vld [vmem:[%s1750_s0 + $0x108] sm:$0xff] }
  0x61   :  { %647 = vst [vmem:[%s1751_s1 + $0xd8] sm:$0xff] %v555_v3  ;;  %v582_v18 = vmax.f32 %v581_v5, %v147_v2  ;;  %v148_v19 = vld [vmem:[%s1750_s0 + $0x460] sm:$0xff]  ;;  %v77_v24 = vld [vmem:[%s1750_s0 + $0x228] sm:$0xff]  ;;  %v290_v27 = vld [vmem:[%s1750_s0 + $0x8d0] sm:$0xff] }
  0x62   :  { %v563_v20 = vmax.f32 %v562_v9, %v324_v58  ;;  %v576_v21 = vmax.f32 %v575_v12, %v218_v0  ;;  %v589_v22 = vmax.f32 %v588_v14, %v112_v8  ;;  %v113_v25 = vld [vmem:[%s1750_s0 + $0x348] sm:$0xff]  ;;  %v570_v26 = vmax.f32 %v569_v15, %v289_v10  ;;  %v326_v28 = vld [vmem:[%s1750_s0 + $0x9f0] sm:$0xff]  ;;  %v184_v30 = vld [vmem:[%s1750_s0 + $0x580] sm:$0xff] }
  0x63   :  { %v583_v29 = vmax.f32 %v582_v18, %v183_v13  ;;  %v596_v31 = vmax.f32 %v41_v23, %v77_v24  ;;  %v255_v33 = vld [vmem:[%s1750_s0 + $0x7b8] sm:$0xff]  ;;  %v220_v34 = vld [vmem:[%s1750_s0 + $0x6a0] sm:$0xff]  ;;  %v149_v36 = vld [vmem:[%s1750_s0 + $0x468] sm:$0xff] }
  0x64   :  { %648 = vst [vmem:[%s1751_s1 + $0xe0] sm:$0xff] %v563_v20  ;;  %v577_v32 = vmax.f32 %v576_v21, %v254_v16  ;;  %v590_v35 = vmax.f32 %v589_v22, %v148_v19  ;;  %v571_v37 = vmax.f32 %v570_v26, %v325_v11  ;;  %v42_v40 = vld [vmem:[%s1750_s0 + $0x110] sm:$0xff]  ;;  %v291_v44 = vld [vmem:[%s1750_s0 + $0x8d8] sm:$0xff]  ;;  %v185_v47 = vld [vmem:[%s1750_s0 + $0x588] sm:$0xff] }
  0x65   :  { %v584_v38 = vmax.f32 %v583_v29, %v219_v17  ;;  %v597_v39 = vmax.f32 %v596_v31, %v113_v25  ;;  %v78_v41 = vld [vmem:[%s1750_s0 + $0x230] sm:$0xff]  ;;  %v327_v45 = vld [vmem:[%s1750_s0 + $0x9f8] sm:$0xff]  ;;  %v256_v50 = vld [vmem:[%s1750_s0 + $0x7c0] sm:$0xff] }
  0x66   :  { %v114_v42 = vld [vmem:[%s1750_s0 + $0x350] sm:$0xff]  ;;  %v578_v43 = vmax.f32 %v577_v32, %v290_v27  ;;  %v591_v46 = vmax.f32 %v590_v35, %v184_v30  ;;  %v604_v48 = vmax.f32 %v42_v40, %v78_v41  ;;  %649 = vst [vmem:[%s1751_s1 + $0xe8] sm:$0xff] %v571_v37  ;;  %v221_v51 = vld [vmem:[%s1750_s0 + $0x6a8] sm:$0xff]  ;;  %v43_v57 = vld [vmem:[%s1750_s0 + $0x118] sm:$0xff] }
  0x67   :  { %v585_v49 = vmax.f32 %v584_v38, %v255_v33  ;;  %v598_v52 = vmax.f32 %v597_v39, %v149_v36  ;;  %v150_v53 = vld [vmem:[%s1750_s0 + $0x470] sm:$0xff]  ;;  %v79_v58 = vld [vmem:[%s1750_s0 + $0x238] sm:$0xff]  ;;  %v292_v61 = vld [vmem:[%s1750_s0 + $0x8e0] sm:$0xff] }
  0x68   :  { %v579_v54 = vmax.f32 %v578_v43, %v326_v28  ;;  %v592_v55 = vmax.f32 %v591_v46, %v220_v34  ;;  %v605_v56 = vmax.f32 %v604_v48, %v114_v42  ;;  %v115_v59 = vld [vmem:[%s1750_s0 + $0x358] sm:$0xff]  ;;  %v186_v63 = vld [vmem:[%s1750_s0 + $0x590] sm:$0xff]  ;;  %v612_v0 = vmax.f32 %v43_v57, %v79_v58  ;;  %v257_v2 = vld [vmem:[%s1750_s0 + $0x7c8] sm:$0xff] }
  0x69   :  { %v586_v60 = vmax.f32 %v585_v49, %v291_v44  ;;  %v599_v62 = vmax.f32 %v598_v52, %v185_v47  ;;  %v151_v4 = vld [vmem:[%s1750_s0 + $0x478] sm:$0xff]  ;;  %v328_v6 = vld [vmem:[%s1750_s0 + $0xa00] sm:$0xff]  ;;  %v222_v8 = vld [vmem:[%s1750_s0 + $0x6b0] sm:$0xff] }
  0x6a   :  { %650 = vst [vmem:[%s1751_s1 + $0xf0] sm:$0xff] %v579_v54  ;;  %v593_v1 = vmax.f32 %v592_v55, %v256_v50  ;;  %v606_v3 = vmax.f32 %v605_v56, %v150_v53  ;;  %v613_v9 = vmax.f32 %v612_v0, %v115_v59  ;;  %v293_v11 = vld [vmem:[%s1750_s0 + $0x8e8] sm:$0xff]  ;;  %v187_v13 = vld [vmem:[%s1750_s0 + $0x598] sm:$0xff]  ;;  %v258_v15 = vld [vmem:[%s1750_s0 + $0x7d0] sm:$0xff] }
  0x6b   :  { %v587_v5 = vmax.f32 %v586_v60, %v327_v45  ;;  %v600_v7 = vmax.f32 %v599_v62, %v221_v51  ;;  %v329_v18 = vld [vmem:[%s1750_s0 + $0xa08] sm:$0xff]  ;;  %v223_v20 = vld [vmem:[%s1750_s0 + $0x6b8] sm:$0xff]  ;;  %v294_v22 = vld [vmem:[%s1750_s0 + $0x8f0] sm:$0xff] }
  0x6c   :  { %v594_v10 = vmax.f32 %v593_v1, %v292_v61  ;;  %v607_v12 = vmax.f32 %v606_v3, %v186_v63  ;;  %v614_v16 = vmax.f32 %v613_v9, %v151_v4  ;;  %v259_v25 = vld [vmem:[%s1750_s0 + $0x7d8] sm:$0xff]  ;;  %v330_v27 = vld [vmem:[%s1750_s0 + $0xa10] sm:$0xff] }
  0x6d   :  { %651 = vst [vmem:[%s1751_s1 + $0xf8] sm:$0xff] %v587_v5  ;;  %v601_v14 = vmax.f32 %v600_v7, %v257_v2  ;;  %v295_v30 = vld [vmem:[%s1750_s0 + $0x8f8] sm:$0xff] }
  0x6e   :  { %v595_v17 = vmax.f32 %v594_v10, %v328_v6  ;;  %v608_v19 = vmax.f32 %v607_v12, %v222_v8  ;;  %v615_v23 = vmax.f32 %v614_v16, %v187_v13  ;;  %v331_v33 = vld [vmem:[%s1750_s0 + $0xa18] sm:$0xff] }
  0x6f   :  { %v602_v21 = vmax.f32 %v601_v14, %v293_v11 }
  0x70   :  { %652 = vst [vmem:[%s1751_s1 + $0x100] sm:$0xff] %v595_v17  ;;  %v609_v24 = vmax.f32 %v608_v19, %v258_v15  ;;  %v616_v28 = vmax.f32 %v615_v23, %v223_v20 }
  0x71   :  { %v603_v26 = vmax.f32 %v602_v21, %v329_v18 }
  0x72   :  { %v610_v29 = vmax.f32 %v609_v24, %v294_v22  ;;  %v617_v31 = vmax.f32 %v616_v28, %v259_v25 }
  0x73   :  { %653 = vst [vmem:[%s1751_s1 + $0x108] sm:$0xff] %v603_v26 }
  0x74   :  { %v611_v32 = vmax.f32 %v610_v29, %v330_v27  ;;  %v618_v34 = vmax.f32 %v617_v31, %v295_v30 }
  0x76   :  { %654 = vst [vmem:[%s1751_s1 + $0x110] sm:$0xff] %v611_v32  ;;  %v619_v35 = vmax.f32 %v618_v34, %v331_v33 }
  0x78   :  { %655 = vst [vmem:[%s1751_s1 + $0x118] sm:$0xff] %v619_v35 }

// kernel: mynet_forward.6
= control target key start
LH: loop header
LB: loop body
LE: loop exit
PB: predicated region body
PF: predicated region fallthrough
CT: control target
= control target key end

     0   :  { %v1293_v0 = vmov 0   ;;  %vm524_vm0 = vcmask 523264   ;;  %s1801_s1 = inlined_call_operand.vmem [shape: bf16[320,64], index: 1, kind: input, shape index: {}]   ;;  %s1802_s0 = inlined_call_operand.vmem [shape: bf16[288,320], index: 0, kind: input, shape index: {}]   ;;  %s1803_s2 = inlined_call_operand.vmem [shape: f32[1,64], index: 2, kind: input, shape index: {}]   ;;  %s1804_s3 = inlined_call_operand.vmem [shape: f32[288,64], index: 3, kind: output, shape index: {}]  }
   0x1   :  { %579 = vmatprep.subr.bf16.mxu0 %v1293_v0  ;;  %1168 = vmatprep.subr.bf16.mxu1 %v1293_v0  ;;  %v1201_v1 = vld [vmem:[%s1801_s1 + $0x38] sm:$0xff]   ;;  %v1202_v2 = vld [vmem:[%s1801_s1 + $0x30] sm:$0xff]   ;;  %v1203_v3 = vld [vmem:[%s1801_s1 + $0x28] sm:$0xff]  }
   0x2   :  { %580 = vmatpush1.bf16.msra.mxu0 %v1201_v1  ;;  %1184 = vmatpush1.bf16.msra.mxu1 %v1201_v1  ;;  %v1204_v4 = vld [vmem:[%s1801_s1 + $0x20] sm:$0xff]   ;;  %v1205_v5 = vld [vmem:[%s1801_s1 + $0x18] sm:$0xff]   ;;  %v1206_v7 = vld [vmem:[%s1801_s1 + $0x10] sm:$0xff]  }
   0x3   :  { %581 = vmatprep.subr.bf16.mxu0 %v1293_v0  ;;  %1169 = vmatprep.subr.bf16.mxu1 %v1293_v0  ;;  %v1219_v6 = vld [vmem:[%s1802_s0 + $0x4] ss:$12 sps:$4 sm:$0xff]   ;;  %v1222_v8 = vld [vmem:[%s1802_s0 + $0x154] ss:$12 sps:$4 sm:$0xff]   ;;  %v1207_v9 = vld [vmem:[%s1801_s1 + $0x8] sm:$0xff]  }
   0x4   :  { %611 = vmatprep.mubr.bf16.mxu0 %v1219_v6  ;;  %723 = vmatprep.mubr.bf16.mxu1 %v1222_v8  ;;  %v1208_v10 = vld [vmem:[%s1801_s1] sm:$0xff]   ;;  %v1209_v11 = vld [vmem:[%s1801_s1 + $0x78] sm:$0xff]   ;;  %v1210_v12 = vld [vmem:[%s1801_s1 + $0x70] sm:$0xff]  }
   0x5   :  { %v1211_v13 = vld [vmem:[%s1801_s1 + $0x68] sm:$0xff]   ;;  %v1212_v14 = vld [vmem:[%s1801_s1 + $0x60] sm:$0xff]   ;;  %v1213_v15 = vld [vmem:[%s1801_s1 + $0x58] sm:$0xff]  }
   0x6   :  { %582 = vmatpush1.bf16.msra.mxu0 %v1202_v2  ;;  %1185 = vmatpush1.bf16.msra.mxu1 %v1202_v2  ;;  %v1214_v16 = vld [vmem:[%s1801_s1 + $0x50] sm:$0xff]   ;;  %v1215_v17 = vld [vmem:[%s1801_s1 + $0x48] sm:$0xff]   ;;  %v1216_v18 = vld [vmem:[%s1801_s1 + $0x40] sm:$0xff]  }
   0x7   :  { %583 = vmatprep.subr.bf16.mxu0 %v1293_v0  ;;  %1170 = vmatprep.subr.bf16.mxu1 %v1293_v0  ;;  %v1227_v19 = vld [vmem:[%s1801_s1 + $0x98] sm:$0xff]   ;;  %v1217_v20 = vld [vmem:[%s1802_s0] ss:$12 sps:$4 sm:$0xff]   ;;  %v1234_v24 = vld [vmem:[%s1801_s1 + $0x90] sm:$0xff]  }
   0x8   :  { %v1220_v21 = vld [vmem:[%s1802_s0 + $0x150] ss:$12 sps:$4 sm:$0xff]   ;;  %v1225_v23 = vld [vmem:[%s1802_s0 + $0x16c] ss:$12 sps:$4 sm:$0xff]   ;;  %v1229_v27 = vld [vmem:[%s1802_s0 + $0x168] ss:$12 sps:$4 sm:$0xff]  }
   0x9   :  { %v1223_v22 = vld [vmem:[%s1802_s0 + $0x1c] ss:$12 sps:$4 sm:$0xff]   ;;  %v1228_v26 = vld [vmem:[%s1802_s0 + $0x18] ss:$12 sps:$4 sm:$0xff]   ;;  %v1230_v28 = vld [vmem:[%s1802_s0 + $0x34] ss:$12 sps:$4 sm:$0xff]  }
   0xa   :  { %584 = vmatpush1.bf16.msra.mxu0 %v1203_v3  ;;  %1186 = vmatpush1.bf16.msra.mxu1 %v1203_v3  ;;  %v1241_v25 = vld [vmem:[%s1801_s1 + $0x88] sm:$0xff]   ;;  %v1232_v29 = vld [vmem:[%s1802_s0 + $0x184] ss:$12 sps:$4 sm:$0xff]   ;;  %v1255_v45 = vld [vmem:[%s1802_s0 + $0x94] ss:$12 sps:$4 sm:$0xff]  }
   0xb   :  { %585 = vmatprep.subr.bf16.mxu0 %v1293_v0  ;;  %1171 = vmatprep.subr.bf16.mxu1 %v1293_v0  ;;  %v1244_v30 = vld [vmem:[%s1801_s1 + $0x80] sm:$0xff]   ;;  %v1235_v31 = vld [vmem:[%s1802_s0 + $0x30] ss:$12 sps:$4 sm:$0xff]   ;;  %v1237_v33 = vld [vmem:[%s1802_s0 + $0x4c] ss:$12 sps:$4 sm:$0xff]  }
   0xc   :  { %v1236_v32 = vld [vmem:[%s1802_s0 + $0x180] ss:$12 sps:$4 sm:$0xff]   ;;  %v1239_v34 = vld [vmem:[%s1802_s0 + $0x19c] ss:$12 sps:$4 sm:$0xff]   ;;  %v1243_v36 = vld [vmem:[%s1802_s0 + $0x198] ss:$12 sps:$4 sm:$0xff]  }
   0xd   :  { %v1242_v35 = vld [vmem:[%s1802_s0 + $0x48] ss:$12 sps:$4 sm:$0xff]   ;;  %v1245_v37 = vld [vmem:[%s1802_s0 + $0x64] ss:$12 sps:$4 sm:$0xff]   ;;  %v1248_v39 = vld [vmem:[%s1802_s0 + $0x60] ss:$12 sps:$4 sm:$0xff]  }
   0xe   :  { %586 = vmatpush1.bf16.msra.mxu0 %v1204_v4  ;;  %1187 = vmatpush1.bf16.msra.mxu1 %v1204_v4  ;;  %v1247_v38 = vld [vmem:[%s1802_s0 + $0x8] ss:$12 sps:$4 sm:$0xff]   ;;  %v1249_v40 = vld [vmem:[%s1802_s0 + $0x20] ss:$12 sps:$4 sm:$0xff]   ;;  %v1252_v42 = vld [vmem:[%s1802_s0 + $0x38] ss:$12 sps:$4 sm:$0xff]  }
   0xf   :  { %587 = vmatprep.subr.bf16.mxu0 %v1293_v0  ;;  %1172 = vmatprep.subr.bf16.mxu1 %v1293_v0  ;;  %v1250_v41 = vld [vmem:[%s1802_s0 + $0x7c] ss:$12 sps:$4 sm:$0xff]   ;;  %v1253_v43 = vld [vmem:[%s1802_s0 + $0x78] ss:$12 sps:$4 sm:$0xff]   ;;  %v1259_v48 = vld [vmem:[%s1802_s0 + $0x80] ss:$12 sps:$4 sm:$0xff]  }
  0x10   :  { %v1254_v44 = vld [vmem:[%s1802_s0 + $0x50] ss:$12 sps:$4 sm:$0xff]   ;;  %v1257_v46 = vld [vmem:[%s1802_s0 + $0x68] ss:$12 sps:$4 sm:$0xff]   ;;  %v1260_v49 = vld [vmem:[%s1802_s0 + $0xac] ss:$12 sps:$4 sm:$0xff]  }
  0x11   :  { %v1258_v47 = vld [vmem:[%s1802_s0 + $0x90] ss:$12 sps:$4 sm:$0xff]   ;;  %v1262_v50 = vld [vmem:[%s1802_s0 + $0x98] ss:$12 sps:$4 sm:$0xff]   ;;  %v1263_v51 = vld [vmem:[%s1802_s0 + $0xa8] ss:$12 sps:$4 sm:$0xff]  }
  0x12   :  { %588 = vmatpush1.bf16.msra.mxu0 %v1205_v5  ;;  %1188 = vmatpush1.bf16.msra.mxu1 %v1205_v5  ;;  %v1264_v52 = vld [vmem:[%s1802_s0 + $0xb0] ss:$12 sps:$4 sm:$0xff]   ;;  %v1267_v54 = vld [vmem:[%s1802_s0 + $0xc8] ss:$12 sps:$4 sm:$0xff]   ;;  %v1268_v55 = vld [vmem:[%s1802_s0 + $0xc0] ss:$12 sps:$4 sm:$0xff]  }
  0x13   :  { %589 = vmatprep.subr.bf16.mxu0 %v1293_v0  ;;  %1173 = vmatprep.subr.bf16.mxu1 %v1293_v0  ;;  %v1265_v53 = vld [vmem:[%s1802_s0 + $0xc4] ss:$12 sps:$4 sm:$0xff]   ;;  %v1269_v56 = vld [vmem:[%s1802_s0 + $0xe0] ss:$12 sps:$4 sm:$0xff]   ;;  %v1270_v57 = vld [vmem:[%s1802_s0 + $0xdc] ss:$12 sps:$4 sm:$0xff]  }
  0x14   :  { %v1272_v58 = vld [vmem:[%s1802_s0 + $0xf8] ss:$12 sps:$4 sm:$0xff]   ;;  %v1274_v60 = vld [vmem:[%s1802_s0 + $0x110] ss:$12 sps:$4 sm:$0xff]   ;;  %v1275_v61 = vld [vmem:[%s1802_s0 + $0xf4] ss:$12 sps:$4 sm:$0xff]  }
  0x15   :  { %v1273_v59 = vld [vmem:[%s1802_s0 + $0xd8] ss:$12 sps:$4 sm:$0xff]   ;;  %v1277_v62 = vld [vmem:[%s1802_s0 + $0x128] ss:$12 sps:$4 sm:$0xff]   ;;  %v1278_v63 = vld [vmem:[%s1802_s0 + $0xf0] ss:$12 sps:$4 sm:$0xff]  }
  0x16   :  { %590 = vmatpush1.bf16.msra.mxu0 %v1206_v7  ;;  %1189 = vmatpush1.bf16.msra.mxu1 %v1206_v7  ;;  %v1280_v1 = vld [vmem:[%s1802_s0 + $0x10c] ss:$12 sps:$4 sm:$0xff]   ;;  %v1283_v3 = vld [vmem:[%s1802_s0 + $0x108] ss:$12 sps:$4 sm:$0xff]   ;;  %v1284_v4 = vld [vmem:[%s1802_s0 + $0x170] ss:$12 sps:$4 sm:$0xff]  }
  0x17   :  { %591 = vmatprep.subr.bf16.mxu0 %v1293_v0  ;;  %1174 = vmatprep.subr.bf16.mxu1 %v1293_v0  ;;  %v1282_v2 = vld [vmem:[%s1802_s0 + $0x158] ss:$12 sps:$4 sm:$0xff]   ;;  %v1287_v6 = vld [vmem:[%s1802_s0 + $0x188] ss:$12 sps:$4 sm:$0xff]   ;;  %v1288_v7 = vld [vmem:[%s1802_s0 + $0x120] ss:$12 sps:$4 sm:$0xff]  }
  0x18   :  { %v1285_v5 = vld [vmem:[%s1802_s0 + $0x124] ss:$12 sps:$4 sm:$0xff]   ;;  %v1289_v8 = vld [vmem:[%s1802_s0 + $0x1a0] ss:$12 sps:$4 sm:$0xff]  }
  0x1a   :  { %592 = vmatpush1.bf16.msra.mxu0 %v1207_v9  ;;  %1190 = vmatpush1.bf16.msra.mxu1 %v1207_v9  ;;  %v1290_v9 = vld [vmem:[%s1802_s0 + $0x13c] ss:$12 sps:$4 sm:$0xff]  }
  0x1b   :  { %593 = vmatprep.subr.bf16.mxu0 %v1293_v0  ;;  %1175 = vmatprep.subr.bf16.mxu1 %v1293_v0 }
  0x1e   :  { %594 = vmatpush1.bf16.msra.mxu0 %v1208_v10  ;;  %1191 = vmatpush1.bf16.msra.mxu1 %v1208_v10  ;;  %v1292_v10 = vld [vmem:[%s1802_s0 + $0x138] ss:$12 sps:$4 sm:$0xff]  }
  0x1f   :  { %595 = vmatprep.subr.bf16.mxu0 %v1293_v0  ;;  %1176 = vmatprep.subr.bf16.mxu1 %v1293_v0 }
  0x22   :  { %596 = vmatpush2.bf16.msra.mxu0 %v1209_v11  ;;  %1192 = vmatpush2.bf16.msra.mxu1 %v1209_v11 }
  0x23   :  { %597 = vmatprep.subr.bf16.mxu0 %v1293_v0  ;;  %1177 = vmatprep.subr.bf16.mxu1 %v1293_v0 }
  0x26   :  { %598 = vmatpush2.bf16.msra.mxu0 %v1210_v12  ;;  %1193 = vmatpush2.bf16.msra.mxu1 %v1210_v12 }
  0x27   :  { %599 = vmatprep.subr.bf16.mxu0 %v1293_v0  ;;  %1178 = vmatprep.subr.bf16.mxu1 %v1293_v0 }
  0x2a   :  { %600 = vmatpush2.bf16.msra.mxu0 %v1211_v13  ;;  %1194 = vmatpush2.bf16.msra.mxu1 %v1211_v13 }
  0x2b   :  { %601 = vmatprep.subr.bf16.mxu0 %v1293_v0  ;;  %1179 = vmatprep.subr.bf16.mxu1 %v1293_v0 }
  0x2e   :  { %602 = vmatpush2.bf16.msra.mxu0 %v1212_v14  ;;  %1195 = vmatpush2.bf16.msra.mxu1 %v1212_v14 }
  0x2f   :  { %603 = vmatprep.subr.bf16.mxu0 %v1293_v0  ;;  %1180 = vmatprep.subr.bf16.mxu1 %v1293_v0 }
  0x32   :  { %604 = vmatpush2.bf16.msra.mxu0 %v1213_v15  ;;  %1196 = vmatpush2.bf16.msra.mxu1 %v1213_v15 }
  0x33   :  { %605 = vmatprep.subr.bf16.mxu0 %v1293_v0  ;;  %1181 = vmatprep.subr.bf16.mxu1 %v1293_v0 }
  0x36   :  { %606 = vmatpush2.bf16.msra.mxu0 %v1214_v16  ;;  %1197 = vmatpush2.bf16.msra.mxu1 %v1214_v16 }
  0x37   :  { %607 = vmatprep.subr.bf16.mxu0 %v1293_v0  ;;  %1182 = vmatprep.subr.bf16.mxu1 %v1293_v0 }
  0x3a   :  { %608 = vmatpush2.bf16.msra.mxu0 %v1215_v17  ;;  %1198 = vmatpush2.bf16.msra.mxu1 %v1215_v17 }
  0x3b   :  { %609 = vmatprep.subr.bf16.mxu0 %v1293_v0  ;;  %1183 = vmatprep.subr.bf16.mxu1 %v1293_v0  ;;  %v1279_v0 = vld [vmem:[%s1802_s0 + $0x140] ss:$12 sps:$4 sm:$0xff]  }
  0x3e   :  { %610 = vmatpush2.bf16.msra.mxu0 %v1216_v18  ;;  %1199 = vmatpush2.bf16.msra.mxu1 %v1216_v18 }
  0x3f   :  { %1124 = vmatprep.subr.bf16.mxu1 %v1227_v19 }
  0x41   :  { %612 = vmatmul.mubr.bf16.vlgmr.msra.gmra.mxu0 %v1217_v20  ;;  %724 = vmatmul.mubr.bf16.vlgmr.msra.gmra.mxu1 %v1220_v21 }
  0x42   :  { %619 = vmatprep.mubr.bf16.mxu0 %v1223_v22  ;;  %731 = vmatprep.mubr.bf16.mxu1 %v1225_v23 }
  0x43   :  { %1125 = vmatpush3.bf16.msra.mxu1 %v1227_v19 }
  0x44   :  { %1126 = vmatprep.subr.bf16.mxu1 %v1234_v24 }
  0x47   :  { %1127 = vmatpush3.bf16.msra.mxu1 %v1234_v24 }
  0x48   :  { %1128 = vmatprep.subr.bf16.mxu1 %v1241_v25 }
  0x49   :  { %620 = vmatmul.mubr.bf16.gmra.mxu0 %v1228_v26  ;;  %732 = vmatmul.mubr.bf16.gmra.mxu1 %v1229_v27 }
  0x4a   :  { %627 = vmatprep.mubr.bf16.mxu0 %v1230_v28  ;;  %739 = vmatprep.mubr.bf16.mxu1 %v1232_v29 }
  0x4b   :  { %1129 = vmatpush3.bf16.msra.mxu1 %v1241_v25 }
  0x4c   :  { %1130 = vmatprep.subr.bf16.mxu1 %v1244_v30 }
  0x4f   :  { %1131 = vmatpush3.bf16.msra.mxu1 %v1244_v30 }
  0x51   :  { %628 = vmatmul.mubr.bf16.gmra.mxu0 %v1235_v31  ;;  %740 = vmatmul.mubr.bf16.gmra.mxu1 %v1236_v32 }
  0x52   :  { %635 = vmatprep.mubr.bf16.mxu0 %v1237_v33  ;;  %747 = vmatprep.mubr.bf16.mxu1 %v1239_v34 }
  0x59   :  { %636 = vmatmul.mubr.bf16.gmra.mxu0 %v1242_v35  ;;  %748 = vmatmul.mubr.bf16.gmra.mxu1 %v1243_v36 }
  0x5a   :  { %643 = vmatprep.mubr.bf16.mxu0 %v1245_v37  ;;  %1132 = vmatprep.mubr.msk.bf16.mxu1 %vm524_vm0, %v1247_v38 }
  0x61   :  { %644 = vmatmul.mubr.bf16.gmra.mxu0 %v1248_v39  ;;  %1133 = vmatmul.mubr.msk.bf16.vlgmr.msra.gmra.mxu1 %vm524_vm0, %v1249_v40 }
  0x62   :  { %651 = vmatprep.mubr.bf16.mxu0 %v1250_v41  ;;  %1136 = vmatprep.mubr.msk.bf16.mxu1 %vm524_vm0, %v1252_v42  ;;  %v1605_v41 = vld [vmem:[%s1803_s2] ss:$0 sm:$0xff] }
  0x69   :  { %652 = vmatmul.mubr.bf16.gmra.mxu0 %v1253_v43  ;;  %1137 = vmatmul.mubr.msk.bf16.gmra.mxu1 %vm524_vm0, %v1254_v44 }
  0x6a   :  { %659 = vmatprep.mubr.bf16.mxu0 %v1255_v45  ;;  %1140 = vmatprep.mubr.msk.bf16.mxu1 %vm524_vm0, %v1257_v46 }
  0x71   :  { %660 = vmatmul.mubr.bf16.gmra.mxu0 %v1258_v47  ;;  %1141 = vmatmul.mubr.msk.bf16.gmra.mxu1 %vm524_vm0, %v1259_v48 }
  0x72   :  { %667 = vmatprep.mubr.bf16.mxu0 %v1260_v49  ;;  %1144 = vmatprep.mubr.msk.bf16.mxu1 %vm524_vm0, %v1262_v50 }
  0x79   :  { %668 = vmatmul.mubr.bf16.gmra.mxu0 %v1263_v51  ;;  %1145 = vmatmul.mubr.msk.bf16.gmra.mxu1 %vm524_vm0, %v1264_v52 }
  0x7a   :  { %675 = vmatprep.mubr.bf16.mxu0 %v1265_v53  ;;  %1148 = vmatprep.mubr.msk.bf16.mxu1 %vm524_vm0, %v1267_v54 }
  0x81   :  { %676 = vmatmul.mubr.bf16.gmra.mxu0 %v1268_v55  ;;  %1149 = vmatmul.mubr.msk.bf16.gmra.mxu1 %vm524_vm0, %v1269_v56 }
  0x82   :  { %683 = vmatprep.mubr.bf16.mxu0 %v1270_v57  ;;  %1152 = vmatprep.mubr.msk.bf16.mxu1 %vm524_vm0, %v1272_v58 }
  0x89   :  { %684 = vmatmul.mubr.bf16.gmra.mxu0 %v1273_v59  ;;  %1153 = vmatmul.mubr.msk.bf16.gmra.mxu1 %vm524_vm0, %v1274_v60 }
  0x8a   :  { %691 = vmatprep.mubr.bf16.mxu0 %v1275_v61  ;;  %1156 = vmatprep.mubr.msk.bf16.mxu1 %vm524_vm0, %v1277_v62 }
  0x91   :  { %692 = vmatmul.mubr.bf16.gmra.mxu0 %v1278_v63  ;;  %1157 = vmatmul.mubr.msk.bf16.gmra.mxu1 %vm524_vm0, %v1279_v0 }
  0x92   :  { %699 = vmatprep.mubr.bf16.mxu0 %v1280_v1  ;;  %1160 = vmatprep.mubr.msk.bf16.mxu1 %vm524_vm0, %v1282_v2 }
  0x99   :  { %700 = vmatmul.mubr.bf16.gmra.mxu0 %v1283_v3  ;;  %1161 = vmatmul.mubr.msk.bf16.gmra.mxu1 %vm524_vm0, %v1284_v4 }
  0x9a   :  { %707 = vmatprep.mubr.bf16.mxu0 %v1285_v5  ;;  %1164 = vmatprep.mubr.msk.bf16.mxu1 %vm524_vm0, %v1287_v6 }
  0xa1   :  { %708 = vmatmul.mubr.bf16.gmra.mxu0 %v1288_v7  ;;  %1165 = vmatmul.mubr.msk.bf16.gmra.mxu1 %vm524_vm0, %v1289_v8 }
  0xa2   :  { %715 = vmatprep.mubr.bf16.mxu0 %v1290_v9 }
  0xa9   :  { %716 = vmatmul.mubr.bf16.gmra.mxu0 %v1292_v10 }
 0x101   :  { %v613_v11 = vpop.f32.mrf.mxu0  ;;  %v1586_v12 = vpop.f32.mrf.mxu1 }
 0x102   :  { %v614_v47 = vadd.f32 %v1605_v41, %v613_v11 }
 0x103   :  { %v615_v13 = vpop.f32.mrf.mxu0  ;;  %v727_v14 = vpop.f32.mrf.mxu1 }
 0x105   :  { %v616_v15 = vpop.f32.mrf.mxu0  ;;  %v1588_v16 = vpop.f32.mrf.mxu1 }
 0x106   :  { %v617_v56 = vadd.f32 %v1605_v41, %v616_v15 }
 0x107   :  { %v618_v17 = vpop.f32.mrf.mxu0  ;;  %v730_v18 = vpop.f32.mrf.mxu1 }
 0x109   :  { %v621_v19 = vpop.f32.mrf.mxu0  ;;  %v1590_v20 = vpop.f32.mrf.mxu1 }
 0x10a   :  { %v622_v44 = vadd.f32 %v1605_v41, %v621_v19 }
 0x10b   :  { %v623_v21 = vpop.f32.mrf.mxu0  ;;  %v735_v22 = vpop.f32.mrf.mxu1 }
 0x10d   :  { %v624_v23 = vpop.f32.mrf.mxu0  ;;  %v1592_v24 = vpop.f32.mrf.mxu1 }
 0x10e   :  { %v625_v51 = vadd.f32 %v1605_v41, %v624_v23 }
 0x10f   :  { %v626_v25 = vpop.f32.mrf.mxu0  ;;  %v738_v26 = vpop.f32.mrf.mxu1 }
 0x111   :  { %v629_v27 = vpop.f32.mrf.mxu0  ;;  %v1594_v28 = vpop.f32.mrf.mxu1 }
 0x112   :  { %v630_v2 = vadd.f32 %v1605_v41, %v629_v27 }
 0x113   :  { %v631_v29 = vpop.f32.mrf.mxu0  ;;  %v743_v30 = vpop.f32.mrf.mxu1 }
 0x115   :  { %v632_v31 = vpop.f32.mrf.mxu0  ;;  %v1596_v32 = vpop.f32.mrf.mxu1 }
 0x116   :  { %v633_v13 = vadd.f32 %v1605_v41, %v632_v31 }
 0x117   :  { %v634_v33 = vpop.f32.mrf.mxu0  ;;  %v746_v34 = vpop.f32.mrf.mxu1 }
 0x119   :  { %v637_v35 = vpop.f32.mrf.mxu0  ;;  %v1598_v36 = vpop.f32.mrf.mxu1 }
 0x11a   :  { %v638_v61 = vadd.f32 %v1605_v41, %v637_v35 }
 0x11b   :  { %v639_v37 = vpop.f32.mrf.mxu0  ;;  %v751_v38 = vpop.f32.mrf.mxu1 }
 0x11d   :  { %v640_v39 = vpop.f32.mrf.mxu0  ;;  %v1600_v40 = vpop.f32.mrf.mxu1 }
 0x11e   :  { %v641_v7 = vadd.f32 %v1605_v41, %v640_v39 }
 0x11f   :  { %v642_v42 = vpop.f32.mrf.mxu0  ;;  %v754_v43 = vpop.f32.mrf.mxu1 }
 0x121   :  { %v645_v45 = vpop.f32.mrf.mxu0  ;;  %v1134_v46 = vpop.f32.mrf.mxu1 }
 0x122   :  { %v799_v48 = vadd.f32 %v1134_v46, %v622_v44  ;;  %v646_v26 = vadd.f32 %v1605_v41, %v645_v45 }
 0x123   :  { %v647_v49 = vpop.f32.mrf.mxu0  ;;  %v790_v50 = vpop.f32.mrf.mxu1 }
 0x124   :  { %v935_v52 = vmax.f32 %v799_v48, 0.0  ;;  %v791_v53 = vadd.f32 %v790_v50, %v614_v47 }
 0x125   :  { %v648_v54 = vpop.f32.mrf.mxu0  ;;  %v1135_v55 = vpop.f32.mrf.mxu1 }
 0x126   :  { %971 = vst.msk [vmem:[%s1804_s3 + $0x10] sm:$0xff] %vm524_vm0, %v935_v52  ;;  %v933_v57 = vmax.f32 %v791_v53, 0.0  ;;  %v802_v58 = vadd.f32 %v1135_v55, %v625_v51  ;;  %v649_v39 = vadd.f32 %v1605_v41, %v648_v54 }
 0x127   :  { %v650_v59 = vpop.f32.mrf.mxu0  ;;  %v793_v60 = vpop.f32.mrf.mxu1 }
 0x128   :  { %969 = vst.msk [vmem:[%s1804_s3] sm:$0xff] %vm524_vm0, %v933_v57  ;;  %v936_v62 = vmax.f32 %v802_v58, 0.0  ;;  %v794_v63 = vadd.f32 %v793_v60, %v617_v56 }
 0x129   :  { %v653_v0 = vpop.f32.mrf.mxu0  ;;  %v1138_v1 = vpop.f32.mrf.mxu1 }
 0x12a   :  { %972 = vst.msk [vmem:[%s1804_s3 + $0x18] sm:$0xff] %vm524_vm0, %v936_v62  ;;  %v934_v3 = vmax.f32 %v794_v63, 0.0  ;;  %v815_v4 = vadd.f32 %v1138_v1, %v638_v61  ;;  %v654_v19 = vadd.f32 %v1605_v41, %v653_v0 }
 0x12b   :  { %v655_v5 = vpop.f32.mrf.mxu0  ;;  %v806_v6 = vpop.f32.mrf.mxu1 }
 0x12c   :  { %970 = vst.msk [vmem:[%s1804_s3 + $0x8] sm:$0xff] %vm524_vm0, %v934_v3  ;;  %v939_v8 = vmax.f32 %v815_v4, 0.0  ;;  %v807_v9 = vadd.f32 %v806_v6, %v630_v2 }
 0x12d   :  { %v656_v10 = vpop.f32.mrf.mxu0  ;;  %v1139_v11 = vpop.f32.mrf.mxu1 }
 0x12e   :  { %975 = vst.msk [vmem:[%s1804_s3 + $0x30] sm:$0xff] %vm524_vm0, %v939_v8  ;;  %v937_v14 = vmax.f32 %v807_v9, 0.0  ;;  %v818_v15 = vadd.f32 %v1139_v11, %v641_v7  ;;  %v657_v33 = vadd.f32 %v1605_v41, %v656_v10 }
 0x12f   :  { %v658_v17 = vpop.f32.mrf.mxu0  ;;  %v809_v18 = vpop.f32.mrf.mxu1 }
 0x130   :  { %973 = vst.msk [vmem:[%s1804_s3 + $0x20] sm:$0xff] %vm524_vm0, %v937_v14  ;;  %v940_v21 = vmax.f32 %v818_v15, 0.0  ;;  %v810_v22 = vadd.f32 %v809_v18, %v633_v13 }
 0x131   :  { %v661_v23 = vpop.f32.mrf.mxu0  ;;  %v1142_v25 = vpop.f32.mrf.mxu1 }
 0x132   :  { %976 = vst.msk [vmem:[%s1804_s3 + $0x38] sm:$0xff] %vm524_vm0, %v940_v21  ;;  %v938_v27 = vmax.f32 %v810_v22, 0.0  ;;  %v831_v29 = vadd.f32 %v1142_v25, %v654_v19  ;;  %v662_v50 = vadd.f32 %v1605_v41, %v661_v23 }
 0x133   :  { %v663_v30 = vpop.f32.mrf.mxu0  ;;  %v822_v31 = vpop.f32.mrf.mxu1 }
 0x134   :  { %974 = vst.msk [vmem:[%s1804_s3 + $0x28] sm:$0xff] %vm524_vm0, %v938_v27  ;;  %v943_v34 = vmax.f32 %v831_v29, 0.0  ;;  %v823_v35 = vadd.f32 %v822_v31, %v646_v26 }
 0x135   :  { %v664_v37 = vpop.f32.mrf.mxu0  ;;  %v1143_v38 = vpop.f32.mrf.mxu1 }
 0x136   :  { %979 = vst.msk [vmem:[%s1804_s3 + $0x50] sm:$0xff] %vm524_vm0, %v943_v34  ;;  %v941_v42 = vmax.f32 %v823_v35, 0.0  ;;  %v834_v43 = vadd.f32 %v1143_v38, %v657_v33  ;;  %v665_v59 = vadd.f32 %v1605_v41, %v664_v37 }
 0x137   :  { %v666_v44 = vpop.f32.mrf.mxu0  ;;  %v825_v45 = vpop.f32.mrf.mxu1 }
 0x138   :  { %977 = vst.msk [vmem:[%s1804_s3 + $0x40] sm:$0xff] %vm524_vm0, %v941_v42  ;;  %v944_v46 = vmax.f32 %v834_v43, 0.0  ;;  %v826_v47 = vadd.f32 %v825_v45, %v649_v39 }
 0x139   :  { %v669_v48 = vpop.f32.mrf.mxu0  ;;  %v1146_v49 = vpop.f32.mrf.mxu1 }
 0x13a   :  { %980 = vst.msk [vmem:[%s1804_s3 + $0x58] sm:$0xff] %vm524_vm0, %v944_v46  ;;  %v942_v51 = vmax.f32 %v826_v47, 0.0  ;;  %v670_v52 = vadd.f32 %v1605_v41, %v669_v48 }
 0x13b   :  { %v671_v53 = vpop.f32.mrf.mxu0  ;;  %v838_v54 = vpop.f32.mrf.mxu1 }
 0x13c   :  { %978 = vst.msk [vmem:[%s1804_s3 + $0x48] sm:$0xff] %vm524_vm0, %v942_v51  ;;  %v847_v55 = vadd.f32 %v1146_v49, %v670_v52  ;;  %v839_v56 = vadd.f32 %v838_v54, %v662_v50  ;;  %v734_v54 = vadd.f32 %v1605_v41, %v1590_v20  ;;  %v737_v20 = vadd.f32 %v1605_v41, %v1592_v24 }
 0x13d   :  { %v672_v57 = vpop.f32.mrf.mxu0  ;;  %v1147_v58 = vpop.f32.mrf.mxu1 }
 0x13e   :  { %v947_v60 = vmax.f32 %v847_v55, 0.0  ;;  %v945_v61 = vmax.f32 %v839_v56, 0.0  ;;  %v673_v62 = vadd.f32 %v1605_v41, %v672_v57 }
 0x13f   :  { %v674_v63 = vpop.f32.mrf.mxu0  ;;  %v841_v0 = vpop.f32.mrf.mxu1 }
 0x140   :  { %983 = vst.msk [vmem:[%s1804_s3 + $0x70] sm:$0xff] %vm524_vm0, %v947_v60  ;;  %981 = vst.msk [vmem:[%s1804_s3 + $0x60] sm:$0xff] %vm524_vm0, %v945_v61  ;;  %v850_v1 = vadd.f32 %v1147_v58, %v673_v62  ;;  %v842_v2 = vadd.f32 %v841_v0, %v665_v59  ;;  %v726_v58 = vadd.f32 %v1605_v41, %v1586_v12 }
 0x141   :  { %v677_v3 = vpop.f32.mrf.mxu0  ;;  %v1150_v4 = vpop.f32.mrf.mxu1  ;;  %v729_v12 = vadd.f32 %v1605_v41, %v1588_v16 }
 0x142   :  { %v948_v5 = vmax.f32 %v850_v1, 0.0  ;;  %v946_v6 = vmax.f32 %v842_v2, 0.0  ;;  %v678_v7 = vadd.f32 %v1605_v41, %v677_v3 }
 0x143   :  { %v679_v8 = vpop.f32.mrf.mxu0  ;;  %v854_v9 = vpop.f32.mrf.mxu1 }
 0x144   :  { %984 = vst.msk [vmem:[%s1804_s3 + $0x78] sm:$0xff] %vm524_vm0, %v948_v5  ;;  %982 = vst.msk [vmem:[%s1804_s3 + $0x68] sm:$0xff] %vm524_vm0, %v946_v6  ;;  %v855_v10 = vadd.f32 %v854_v9, %v678_v7 }
 0x145   :  { %v680_v11 = vpop.f32.mrf.mxu0  ;;  %v1151_v13 = vpop.f32.mrf.mxu1 }
 0x146   :  { %v949_v14 = vmax.f32 %v855_v10, 0.0  ;;  %v681_v15 = vadd.f32 %v1605_v41, %v680_v11  ;;  %v750_v10 = vadd.f32 %v1605_v41, %v1598_v36 }
 0x147   :  { %v682_v17 = vpop.f32.mrf.mxu0  ;;  %v857_v18 = vpop.f32.mrf.mxu1 }
 0x148   :  { %985 = vst.msk [vmem:[%s1804_s3 + $0x80] sm:$0xff] %vm524_vm0, %v949_v14  ;;  %v858_v19 = vadd.f32 %v857_v18, %v681_v15  ;;  %v742_v14 = vadd.f32 %v1605_v41, %v1594_v28 }
 0x149   :  { %v685_v21 = vpop.f32.mrf.mxu0  ;;  %v1154_v22 = vpop.f32.mrf.mxu1 }
 0x14a   :  { %v950_v23 = vmax.f32 %v858_v19, 0.0  ;;  %v686_v25 = vadd.f32 %v1605_v41, %v685_v21 }
 0x14b   :  { %v687_v26 = vpop.f32.mrf.mxu0  ;;  %v870_v27 = vpop.f32.mrf.mxu1 }
 0x14c   :  { %986 = vst.msk [vmem:[%s1804_s3 + $0x88] sm:$0xff] %vm524_vm0, %v950_v23  ;;  %v863_v29 = vadd.f32 %v1150_v4, %v686_v25  ;;  %v753_v25 = vadd.f32 %v1605_v41, %v1600_v40 }
 0x14d   :  { %v688_v30 = vpop.f32.mrf.mxu0  ;;  %v1155_v31 = vpop.f32.mrf.mxu1 }
 0x14e   :  { %v951_v33 = vmax.f32 %v863_v29, 0.0  ;;  %v689_v34 = vadd.f32 %v1605_v41, %v688_v30  ;;  %v745_v29 = vadd.f32 %v1605_v41, %v1596_v32 }
 0x14f   :  { %v690_v35 = vpop.f32.mrf.mxu0  ;;  %v873_v37 = vpop.f32.mrf.mxu1 }
 0x150   :  { %987 = vst.msk [vmem:[%s1804_s3 + $0x90] sm:$0xff] %vm524_vm0, %v951_v33  ;;  %v866_v38 = vadd.f32 %v1151_v13, %v689_v34 }
 0x151   :  { %v693_v39 = vpop.f32.mrf.mxu0  ;;  %v1703_v42 = vpop.f32.mrf.mxu1 }
 0x152   :  { %v952_v43 = vmax.f32 %v866_v38, 0.0  ;;  %v694_v44 = vadd.f32 %v1605_v41, %v693_v39 }
 0x153   :  { %v695_v45 = vpop.f32.mrf.mxu0  ;;  %v886_v46 = vpop.f32.mrf.mxu1 }
 0x154   :  { %988 = vst.msk [vmem:[%s1804_s3 + $0x98] sm:$0xff] %vm524_vm0, %v952_v43  ;;  %v871_v47 = vadd.f32 %v870_v27, %v694_v44 }
 0x155   :  { %v696_v48 = vpop.f32.mrf.mxu0  ;;  %v1710_v49 = vpop.f32.mrf.mxu1 }
 0x156   :  { %v953_v50 = vmax.f32 %v871_v47, 0.0  ;;  %v697_v51 = vadd.f32 %v1605_v41, %v696_v48 }
 0x157   :  { %v698_v52 = vpop.f32.mrf.mxu0  ;;  %v889_v53 = vpop.f32.mrf.mxu1 }
 0x158   :  { %989 = vst.msk [vmem:[%s1804_s3 + $0xa0] sm:$0xff] %vm524_vm0, %v953_v50  ;;  %v874_v55 = vadd.f32 %v873_v37, %v697_v51 }
 0x159   :  { %v701_v56 = vpop.f32.mrf.mxu0  ;;  %v1162_v57 = vpop.f32.mrf.mxu1 }
 0x15a   :  { %v954_v59 = vmax.f32 %v874_v55, 0.0  ;;  %v702_v60 = vadd.f32 %v1605_v41, %v701_v56  ;;  %v911_v61 = vadd.f32 %v1162_v57, %v734_v54 }
 0x15b   :  { %v703_v62 = vpop.f32.mrf.mxu0  ;;  %v902_v63 = vpop.f32.mrf.mxu1 }
 0x15c   :  { %990 = vst.msk [vmem:[%s1804_s3 + $0xa8] sm:$0xff] %vm524_vm0, %v954_v59  ;;  %v879_v0 = vadd.f32 %v1154_v22, %v702_v60  ;;  %v963_v1 = vmax.f32 %v911_v61, 0.0  ;;  %v903_v2 = vadd.f32 %v902_v63, %v726_v58 }
 0x15d   :  { %v704_v3 = vpop.f32.mrf.mxu0  ;;  %v1163_v4 = vpop.f32.mrf.mxu1 }
 0x15e   :  { %v955_v5 = vmax.f32 %v879_v0, 0.0  ;;  %999 = vst.msk [vmem:[%s1804_s3 + $0xf0] sm:$0xff] %vm524_vm0, %v963_v1  ;;  %v961_v24 = vmax.f32 %v903_v2, 0.0  ;;  %v705_v6 = vadd.f32 %v1605_v41, %v704_v3  ;;  %v914_v7 = vadd.f32 %v1163_v4, %v737_v20 }
 0x15f   :  { %v706_v8 = vpop.f32.mrf.mxu0  ;;  %v905_v9 = vpop.f32.mrf.mxu1 }
 0x160   :  { %991 = vst.msk [vmem:[%s1804_s3 + $0xb0] sm:$0xff] %vm524_vm0, %v955_v5  ;;  %997 = vst.msk [vmem:[%s1804_s3 + $0xe0] sm:$0xff] %vm524_vm0, %v961_v24  ;;  %v882_v16 = vadd.f32 %v1155_v31, %v705_v6  ;;  %v964_v11 = vmax.f32 %v914_v7, 0.0  ;;  %v906_v13 = vadd.f32 %v905_v9, %v729_v12 }
 0x161   :  { %v709_v15 = vpop.f32.mrf.mxu0  ;;  %v1166_v17 = vpop.f32.mrf.mxu1 }
 0x162   :  { %v956_v18 = vmax.f32 %v882_v16, 0.0  ;;  %1000 = vst.msk [vmem:[%s1804_s3 + $0xf8] sm:$0xff] %vm524_vm0, %v964_v11  ;;  %v962_v36 = vmax.f32 %v906_v13, 0.0  ;;  %v710_v19 = vadd.f32 %v1605_v41, %v709_v15  ;;  %v927_v21 = vadd.f32 %v1166_v17, %v750_v10 }
 0x163   :  { %v711_v22 = vpop.f32.mrf.mxu0  ;;  %v918_v23 = vpop.f32.mrf.mxu1 }
 0x164   :  { %992 = vst.msk [vmem:[%s1804_s3 + $0xb8] sm:$0xff] %vm524_vm0, %v956_v18  ;;  %998 = vst.msk [vmem:[%s1804_s3 + $0xe8] sm:$0xff] %vm524_vm0, %v962_v36  ;;  %v887_v28 = vadd.f32 %v886_v46, %v710_v19  ;;  %v967_v26 = vmax.f32 %v927_v21, 0.0  ;;  %v919_v27 = vadd.f32 %v918_v23, %v742_v14 }
 0x165   :  { %v712_v30 = vpop.f32.mrf.mxu0  ;;  %v1167_v31 = vpop.f32.mrf.mxu1 }
 0x166   :  { %v957_v33 = vmax.f32 %v887_v28, 0.0  ;;  %1003 = vst.msk [vmem:[%s1804_s3 + $0x110] sm:$0xff] %vm524_vm0, %v967_v26  ;;  %v965_v40 = vmax.f32 %v919_v27, 0.0  ;;  %v713_v34 = vadd.f32 %v1605_v41, %v712_v30  ;;  %v930_v35 = vadd.f32 %v1167_v31, %v753_v25 }
 0x167   :  { %v714_v37 = vpop.f32.mrf.mxu0  ;;  %v921_v38 = vpop.f32.mrf.mxu1 }
 0x168   :  { %993 = vst.msk [vmem:[%s1804_s3 + $0xc0] sm:$0xff] %vm524_vm0, %v957_v33  ;;  %1001 = vst.msk [vmem:[%s1804_s3 + $0x100] sm:$0xff] %vm524_vm0, %v965_v40  ;;  %v890_v32 = vadd.f32 %v889_v53, %v713_v34  ;;  %v968_v39 = vmax.f32 %v930_v35, 0.0  ;;  %v922_v43 = vadd.f32 %v921_v38, %v745_v29 }
 0x169   :  { %v717_v44 = vpop.f32.mrf.mxu0 }
 0x16a   :  { %v958_v45 = vmax.f32 %v890_v32, 0.0  ;;  %1004 = vst.msk [vmem:[%s1804_s3 + $0x118] sm:$0xff] %vm524_vm0, %v968_v39  ;;  %v966_v46 = vmax.f32 %v922_v43, 0.0  ;;  %v718_v47 = vadd.f32 %v1605_v41, %v717_v44 }
 0x16b   :  { %v719_v48 = vpop.f32.mrf.mxu0 }
 0x16c   :  { %994 = vst.msk [vmem:[%s1804_s3 + $0xc8] sm:$0xff] %vm524_vm0, %v958_v45  ;;  %1002 = vst.msk [vmem:[%s1804_s3 + $0x108] sm:$0xff] %vm524_vm0, %v966_v46  ;;  %v895_v50 = vadd.f32 %v1703_v42, %v718_v47 }
 0x16d   :  { %v720_v51 = vpop.f32.mrf.mxu0 }
 0x16e   :  { %v959_v52 = vmax.f32 %v895_v50, 0.0  ;;  %v721_v53 = vadd.f32 %v1605_v41, %v720_v51 }
 0x16f   :  { %v722_v54 = vpop.f32.mrf.mxu0 }
 0x170   :  { %995 = vst.msk [vmem:[%s1804_s3 + $0xd0] sm:$0xff] %vm524_vm0, %v959_v52  ;;  %v898_v55 = vadd.f32 %v1710_v49, %v721_v53 }
 0x172   :  { %v960_v56 = vmax.f32 %v898_v55, 0.0 }
 0x174   :  { %996 = vst.msk [vmem:[%s1804_s3 + $0xd8] sm:$0xff] %vm524_vm0, %v960_v56 }

// kernel: mynet_forward.7
= control target key start
LH: loop header
LB: loop body
LE: loop exit
PB: predicated region body
PF: predicated region fallthrough
CT: control target
= control target key end

     0   :  { %v1027_v34 = vmov 0.0   ;;  %vm1028_vm0 = vmmov 0   ;;  %s1330_s1 = inlined_call_operand.vmem [shape: bf16[640,128], index: 1, kind: input, shape index: {}]   ;;  %s1331_s0 = inlined_call_operand.vmem [shape: bf16[72,640], index: 0, kind: input, shape index: {}]   ;;  %s1332_s2 = inlined_call_operand.vmem [shape: f32[1,128], index: 2, kind: input, shape index: {}]   ;;  %s1333_s3 = inlined_call_operand.vmem [shape: f32[72,128], index: 3, kind: output, shape index: {}]  }
   0x1   :  { %v954_v0 = vld [vmem:[%s1330_s1 + $0x78] sm:$0xff]   ;;  %v958_v4 = vld [vmem:[%s1330_s1 + $0x70] sm:$0xff]   ;;  %v962_v8 = vld [vmem:[%s1330_s1 + $0x68] sm:$0xff]  }
   0x2   :  { %v955_v1 = vld [vmem:[%s1330_s1 + $0xf8] sm:$0xff]   ;;  %795 = vmatprep.subr.bf16.mxu0 %v954_v0  ;;  %v959_v5 = vld [vmem:[%s1330_s1 + $0xf0] sm:$0xff]   ;;  %v963_v9 = vld [vmem:[%s1330_s1 + $0xe8] sm:$0xff]  }
   0x3   :  { %v956_v2 = vld [vmem:[%s1330_s1 + $0x38] sm:$0xff]   ;;  %841 = vmatprep.subr.bf16.mxu1 %v955_v1  ;;  %v960_v6 = vld [vmem:[%s1330_s1 + $0x30] sm:$0xff]   ;;  %v964_v10 = vld [vmem:[%s1330_s1 + $0x28] sm:$0xff]  }
   0x4   :  { %v957_v3 = vld [vmem:[%s1330_s1 + $0xb8] sm:$0xff]   ;;  %796 = vmatpush3.bf16.msra.mxu0 %v956_v2  ;;  %v961_v7 = vld [vmem:[%s1330_s1 + $0xb0] sm:$0xff]   ;;  %v965_v11 = vld [vmem:[%s1330_s1 + $0xa8] sm:$0xff]  }
   0x5   :  { %842 = vmatpush3.bf16.msra.mxu1 %v957_v3  ;;  %797 = vmatprep.subr.bf16.mxu0 %v958_v4  ;;  %v966_v12 = vld [vmem:[%s1330_s1 + $0x60] sm:$0xff]   ;;  %v970_v16 = vld [vmem:[%s1330_s1 + $0x58] sm:$0xff]   ;;  %v974_v20 = vld [vmem:[%s1330_s1 + $0x50] sm:$0xff]  }
   0x6   :  { %843 = vmatprep.subr.bf16.mxu1 %v959_v5  ;;  %v967_v13 = vld [vmem:[%s1330_s1 + $0xe0] sm:$0xff]   ;;  %v971_v17 = vld [vmem:[%s1330_s1 + $0xd8] sm:$0xff]   ;;  %v975_v21 = vld [vmem:[%s1330_s1 + $0xd0] sm:$0xff]  }
   0x7   :  { %v968_v14 = vld [vmem:[%s1330_s1 + $0x20] sm:$0xff]   ;;  %v972_v18 = vld [vmem:[%s1330_s1 + $0x18] sm:$0xff]   ;;  %v976_v22 = vld [vmem:[%s1330_s1 + $0x10] sm:$0xff]  }
   0x8   :  { %798 = vmatpush3.bf16.msra.mxu0 %v960_v6  ;;  %v969_v15 = vld [vmem:[%s1330_s1 + $0xa0] sm:$0xff]   ;;  %v973_v19 = vld [vmem:[%s1330_s1 + $0x98] sm:$0xff]   ;;  %v977_v23 = vld [vmem:[%s1330_s1 + $0x90] sm:$0xff]  }
   0x9   :  { %844 = vmatpush3.bf16.msra.mxu1 %v961_v7  ;;  %799 = vmatprep.subr.bf16.mxu0 %v962_v8  ;;  %v978_v24 = vld [vmem:[%s1330_s1 + $0x48] sm:$0xff]   ;;  %v982_v28 = vld [vmem:[%s1330_s1 + $0x40] sm:$0xff]   ;;  %v992_v37 = vld [vmem:[%s1330_s1 + $0x138] sm:$0xff]  }
   0xa   :  { %845 = vmatprep.subr.bf16.mxu1 %v963_v9  ;;  %v979_v25 = vld [vmem:[%s1330_s1 + $0xc8] sm:$0xff]   ;;  %v983_v29 = vld [vmem:[%s1330_s1 + $0xc0] sm:$0xff]   ;;  %v993_v38 = vld [vmem:[%s1330_s1 + $0x130] sm:$0xff]  }
   0xb   :  { %v980_v26 = vld [vmem:[%s1330_s1 + $0x8] sm:$0xff]   ;;  %v984_v30 = vld [vmem:[%s1330_s1] sm:$0xff]   ;;  %v1003_v45 = vld [vmem:[%s1331_s0 + $0x5c] ss:$20 sps:$4 sm:$0xff]  }
   0xc   :  { %800 = vmatpush3.bf16.msra.mxu0 %v964_v10  ;;  %v981_v27 = vld [vmem:[%s1330_s1 + $0x88] sm:$0xff]   ;;  %v985_v31 = vld [vmem:[%s1330_s1 + $0x80] sm:$0xff]   ;;  %v1008_v49 = vld [vmem:[%s1330_s1 + $0x118] sm:$0xff]  }
   0xd   :  { %846 = vmatpush3.bf16.msra.mxu1 %v965_v11  ;;  %801 = vmatprep.subr.bf16.mxu0 %v966_v12  ;;  %v986_v32 = vld [vmem:[%s1331_s0] ss:$20 sps:$4 sm:$0xff]   ;;  %v988_v33 = vld [vmem:[%s1331_s0 + $0x4] ss:$20 sps:$4 sm:$0xff]   ;;  %v989_v35 = vld [vmem:[%s1331_s0 + $0x8] ss:$20 sps:$4 sm:$0xff]  }
   0xe   :  { %847 = vmatprep.subr.bf16.mxu1 %v967_v13  ;;  %v991_v36 = vld [vmem:[%s1331_s0 + $0xc] ss:$20 sps:$4 sm:$0xff]   ;;  %523 = vmatprep.mubr.bf16.mxu0 %v988_v33  ;;  %v996_v40 = vld [vmem:[%s1331_s0 + $0x34] ss:$20 sps:$4 sm:$0xff]   ;;  %v999_v42 = vld [vmem:[%s1331_s0 + $0x30] ss:$20 sps:$4 sm:$0xff]  }
   0xf   :  { %595 = vmatprep.mubr.bf16.mxu1 %v991_v36  ;;  %v994_v39 = vld [vmem:[%s1331_s0 + $0x2c] ss:$20 sps:$4 sm:$0xff]   ;;  %v998_v41 = vld [vmem:[%s1331_s0 + $0x28] ss:$20 sps:$4 sm:$0xff]   ;;  %v1005_v47 = vld [vmem:[%s1331_s0 + $0x50] ss:$20 sps:$4 sm:$0xff]  }
  0x10   :  { %802 = vmatpush3.bf16.msra.mxu0 %v968_v14  ;;  %v1000_v43 = vld [vmem:[%s1330_s1 + $0x128] sm:$0xff]   ;;  %v1007_v46 = vld [vmem:[%s1330_s1 + $0x120] sm:$0xff]   ;;  %v1009_v50 = vld [vmem:[%s1331_s0 + $0x7c] ss:$20 sps:$4 sm:$0xff]  }
  0x11   :  { %848 = vmatpush3.bf16.msra.mxu1 %v969_v15  ;;  %803 = vmatprep.subr.bf16.mxu0 %v970_v16  ;;  %v1001_v44 = vld [vmem:[%s1331_s0 + $0x54] ss:$20 sps:$4 sm:$0xff]   ;;  %v1006_v48 = vld [vmem:[%s1331_s0 + $0x58] ss:$20 sps:$4 sm:$0xff]   ;;  %v39_v53 = vld [vmem:[%s1331_s0 + $0xa0] sm:$0xff] }
  0x12   :  { %849 = vmatprep.subr.bf16.mxu1 %v971_v17  ;;  %v1011_v51 = vld [vmem:[%s1331_s0 + $0x84] ss:$20 sps:$4 sm:$0xff]   ;;  %v1015_v52 = vld [vmem:[%s1330_s1 + $0x110] sm:$0xff]   ;;  %v40_v54 = vld [vmem:[%s1331_s0 + $0xa8] sm:$0xff]  ;;  %v751_v57 = vcombine.high %v39_v53, %v39_v53  ;;  %v750_v61 = vcombine.low %v39_v53, %v39_v53 }
  0x13   :  { %v1013_v55 = vld [vmem:[%s1331_s0 + $0x78] ss:$20 sps:$4 sm:$0xff]   ;;  %v1014_v56 = vld [vmem:[%s1331_s0 + $0x80] ss:$20 sps:$4 sm:$0xff]   ;;  %v753_v58 = vcombine.high %v40_v54, %v40_v54  ;;  %v752_v62 = vcombine.low %v40_v54, %v40_v54  ;;  %v1022_v63 = vld [vmem:[%s1331_s0 + $0x10] ss:$20 sps:$4 sm:$0xff]  }
  0x14   :  { %804 = vmatpush3.bf16.msra.mxu0 %v972_v18  ;;  %v1018_v59 = vld [vmem:[%s1330_s1 + $0x108] sm:$0xff]   ;;  %v1021_v60 = vld [vmem:[%s1330_s1 + $0x100] sm:$0xff]   ;;  %v1025_v2 = vld [vmem:[%s1331_s0 + $0xb0] ss:$0 sps:$4 sm:$0xff]  }
  0x15   :  { %850 = vmatpush3.bf16.msra.mxu1 %v973_v19  ;;  %805 = vmatprep.subr.bf16.mxu0 %v974_v20  ;;  %v1023_v0 = vld [vmem:[%s1331_s0 + $0x88] ss:$20 sps:$4 sm:$0xff]   ;;  %v1024_v1 = vld [vmem:[%s1331_s0 + $0x38] ss:$20 sps:$4 sm:$0xff]   ;;  %v1026_v3 = vld [vmem:[%s1331_s0 + $0x60] ss:$20 sps:$4 sm:$0xff]  }
  0x16   :  { %851 = vmatprep.subr.bf16.mxu1 %v975_v21 }
  0x18   :  { %806 = vmatpush3.bf16.msra.mxu0 %v976_v22 }
  0x19   :  { %852 = vmatpush3.bf16.msra.mxu1 %v977_v23  ;;  %807 = vmatprep.subr.bf16.mxu0 %v978_v24 }
  0x1a   :  { %853 = vmatprep.subr.bf16.mxu1 %v979_v25 }
  0x1c   :  { %808 = vmatpush3.bf16.msra.mxu0 %v980_v26 }
  0x1d   :  { %854 = vmatpush3.bf16.msra.mxu1 %v981_v27  ;;  %809 = vmatprep.subr.bf16.mxu0 %v982_v28 }
  0x1e   :  { %855 = vmatprep.subr.bf16.mxu1 %v983_v29 }
  0x20   :  { %810 = vmatpush3.bf16.msra.mxu0 %v984_v30 }
  0x21   :  { %856 = vmatpush3.bf16.msra.mxu1 %v985_v31  ;;  %900 = vmatprep.subr.bf16.mxu0 %v1027_v34 }
  0x22   :  { %936 = vmatprep.subr.bf16.mxu1 %v1027_v34 }
  0x23   :  { %524 = vmatmul.mubr.bf16.vlgmr.msra.gmra.mxu0 %v986_v32 }
  0x24   :  { %596 = vmatmul.mubr.bf16.vlgmr.msra.gmra.mxu1 %v989_v35  ;;  %901 = vmatpush3.bf16.msra.mxu0 %v992_v37 }
  0x25   :  { %902 = vmatprep.subr.bf16.mxu0 %v1027_v34  ;;  %944 = vmatpush3.bf16.msra.mxu1 %v992_v37  ;;  %v1282_v37 = vld [vmem:[%s1332_s2] ss:$0 sm:$0xff] }
  0x26   :  { %531 = vmatprep.mubr.bf16.mxu0 %v994_v39  ;;  %937 = vmatprep.subr.bf16.mxu1 %v1027_v34 }
  0x27   :  { %603 = vmatprep.mubr.bf16.mxu1 %v996_v40 }
  0x28   :  { %903 = vmatpush3.bf16.msra.mxu0 %v993_v38 }
  0x29   :  { %904 = vmatprep.subr.bf16.mxu0 %v1027_v34  ;;  %945 = vmatpush3.bf16.msra.mxu1 %v993_v38 }
  0x2a   :  { %938 = vmatprep.subr.bf16.mxu1 %v1027_v34 }
  0x2b   :  { %532 = vmatmul.mubr.bf16.gmra.mxu0 %v998_v41 }
  0x2c   :  { %604 = vmatmul.mubr.bf16.gmra.mxu1 %v999_v42  ;;  %905 = vmatpush3.bf16.msra.mxu0 %v1000_v43 }
  0x2d   :  { %539 = vmatprep.mubr.bf16.mxu0 %v1001_v44  ;;  %611 = vmatprep.mubr.bf16.mxu1 %v1003_v45 }
  0x2e   :  { %906 = vmatprep.subr.bf16.mxu0 %v1027_v34  ;;  %946 = vmatpush3.bf16.msra.mxu1 %v1000_v43 }
  0x2f   :  { %939 = vmatprep.subr.bf16.mxu1 %v1027_v34 }
  0x30   :  { %907 = vmatpush3.bf16.msra.mxu0 %v1007_v46 }
  0x31   :  { %908 = vmatprep.subr.bf16.mxu0 %v1027_v34 }
  0x32   :  { %947 = vmatpush3.bf16.msra.mxu1 %v1007_v46 }
  0x33   :  { %540 = vmatmul.mubr.bf16.gmra.mxu0 %v1005_v47  ;;  %940 = vmatprep.subr.bf16.mxu1 %v1027_v34 }
  0x34   :  { %612 = vmatmul.mubr.bf16.gmra.mxu1 %v1006_v48  ;;  %909 = vmatpush3.bf16.msra.mxu0 %v1008_v49 }
  0x35   :  { %547 = vmatprep.mubr.bf16.mxu0 %v1009_v50  ;;  %619 = vmatprep.mubr.bf16.mxu1 %v1011_v51 }
  0x36   :  { %948 = vmatpush3.bf16.msra.mxu1 %v1008_v49  ;;  %910 = vmatprep.subr.bf16.mxu0 %v1027_v34 }
  0x37   :  { %941 = vmatprep.subr.bf16.mxu1 %v1027_v34 }
  0x38   :  { %911 = vmatpush3.bf16.msra.mxu0 %v1015_v52 }
  0x39   :  { %912 = vmatprep.subr.bf16.mxu0 %v1027_v34 }
  0x3a   :  { %949 = vmatpush3.bf16.msra.mxu1 %v1015_v52 }
  0x3b   :  { %548 = vmatmul.mubr.bf16.gmra.mxu0 %v1013_v55  ;;  %942 = vmatprep.subr.bf16.mxu1 %v1027_v34 }
  0x3c   :  { %620 = vmatmul.mubr.bf16.gmra.mxu1 %v1014_v56  ;;  %555 = vmatprep.mubr.bf16.mxu0 %v751_v57 }
  0x3d   :  { %627 = vmatprep.mubr.bf16.mxu1 %v753_v58  ;;  %913 = vmatpush3.bf16.msra.mxu0 %v1018_v59 }
  0x3e   :  { %950 = vmatpush3.bf16.msra.mxu1 %v1018_v59  ;;  %914 = vmatprep.subr.bf16.mxu0 %v1027_v34 }
  0x3f   :  { %943 = vmatprep.subr.bf16.mxu1 %v1027_v34 }
  0x41   :  { %915 = vmatpush3.bf16.msra.mxu0 %v1021_v60 }
  0x42   :  { %951 = vmatpush3.bf16.msra.mxu1 %v1021_v60 }
  0x43   :  { %556 = vmatmul.mubr.bf16.gmra.mxu0 %v750_v61 }
  0x44   :  { %628 = vmatmul.mubr.bf16.gmra.mxu1 %v752_v62  ;;  %916 = vmatprep.mubr.msk.bf16.mxu0 %vm1028_vm0, %v1027_v34 }
  0x45   :  { %928 = vmatprep.mubr.msk.bf16.mxu1 %vm1028_vm0, %v1027_v34 }
  0x4b   :  { %917 = vmatmul.mubr.bf16.vlgmr.msra.gmra.mxu0 %v1022_v63 }
  0x4c   :  { %929 = vmatmul.mubr.bf16.vlgmr.msra.gmra.mxu1 %v1023_v0  ;;  %920 = vmatprep.mubr.msk.bf16.mxu0 %vm1028_vm0, %v1027_v34 }
  0x4d   :  { %932 = vmatprep.mubr.msk.bf16.mxu1 %vm1028_vm0, %v1027_v34 }
  0x53   :  { %921 = vmatmul.mubr.bf16.gmra.mxu0 %v1024_v1 }
  0x54   :  { %933 = vmatmul.mubr.bf16.gmra.mxu1 %v1025_v2  ;;  %924 = vmatprep.mubr.msk.bf16.mxu0 %vm1028_vm0, %v1027_v34 }
  0x5b   :  { %925 = vmatmul.mubr.bf16.gmra.mxu0 %v1026_v3 }
  0xe3   :  { %v811_v4 = vpop.f32.mrf.mxu0 }
  0xe4   :  { %v857_v5 = vpop.f32.mrf.mxu1 }
  0xe5   :  { %v812_v6 = vpop.f32.mrf.mxu0 }
  0xe6   :  { %v858_v7 = vpop.f32.mrf.mxu1  ;;  %v813_v35 = vadd.f32 %v812_v6, %v811_v4 }
  0xe7   :  { %v814_v8 = vpop.f32.mrf.mxu0  ;;  %v859_v43 = vadd.f32 %v858_v7, %v857_v5 }
  0xe8   :  { %v860_v9 = vpop.f32.mrf.mxu1  ;;  %v526_v42 = vadd.f32 %v813_v35, %v1282_v37 }
  0xe9   :  { %v815_v10 = vpop.f32.mrf.mxu0 }
  0xea   :  { %v861_v11 = vpop.f32.mrf.mxu1  ;;  %v816_v44 = vadd.f32 %v815_v10, %v814_v8  ;;  %v598_v56 = vadd.f32 %v859_v43, %v526_v42 }
  0xeb   :  { %v817_v12 = vpop.f32.mrf.mxu0  ;;  %v862_v53 = vadd.f32 %v861_v11, %v860_v9 }
  0xec   :  { %v863_v13 = vpop.f32.mrf.mxu1  ;;  %v529_v52 = vadd.f32 %v816_v44, %v1282_v37 }
  0xed   :  { %v818_v14 = vpop.f32.mrf.mxu0 }
  0xee   :  { %v864_v15 = vpop.f32.mrf.mxu1  ;;  %v819_v54 = vadd.f32 %v818_v14, %v817_v12  ;;  %v601_v7 = vadd.f32 %v862_v53, %v529_v52 }
  0xef   :  { %v820_v16 = vpop.f32.mrf.mxu0  ;;  %v865_v4 = vadd.f32 %v864_v15, %v863_v13 }
  0xf0   :  { %v1259_v17 = vpop.f32.mrf.mxu1  ;;  %v534_v3 = vadd.f32 %v819_v54, %v1282_v37 }
  0xf1   :  { %v821_v18 = vpop.f32.mrf.mxu0 }
  0xf2   :  { %v1261_v19 = vpop.f32.mrf.mxu1  ;;  %v822_v0 = vadd.f32 %v821_v18, %v820_v16 }
  0xf3   :  { %v1263_v20 = vpop.f32.mrf.mxu0  ;;  %v868_v13 = vadd.f32 %v1261_v19, %v1259_v17 }
  0xf4   :  { %v1265_v21 = vpop.f32.mrf.mxu1  ;;  %v537_v18 = vadd.f32 %v822_v0, %v1282_v37 }
  0xf5   :  { %v1267_v22 = vpop.f32.mrf.mxu0 }
  0xf6   :  { %v1269_v23 = vpop.f32.mrf.mxu1 }
  0xf7   :  { %v1271_v24 = vpop.f32.mrf.mxu0 }
  0xf8   :  { %v1273_v25 = vpop.f32.mrf.mxu1 }
  0xf9   :  { %v1275_v26 = vpop.f32.mrf.mxu0 }
  0xfa   :  { %v1277_v27 = vpop.f32.mrf.mxu1 }
  0xfb   :  { %v829_v28 = vpop.f32.mrf.mxu0 }
  0xfc   :  { %v875_v29 = vpop.f32.mrf.mxu1 }
  0xfd   :  { %v830_v30 = vpop.f32.mrf.mxu0 }
  0xfe   :  { %v876_v31 = vpop.f32.mrf.mxu1  ;;  %v831_v38 = vadd.f32 %v830_v30, %v829_v28 }
  0xff   :  { %v832_v32 = vpop.f32.mrf.mxu0  ;;  %v877_v47 = vadd.f32 %v876_v31, %v875_v29  ;;  %v825_v29 = vadd.f32 %v1267_v22, %v1263_v20  ;;  %v871_v22 = vadd.f32 %v1269_v23, %v1265_v21  ;;  %v874_v23 = vadd.f32 %v1277_v27, %v1273_v25 }
 0x100   :  { %v878_v33 = vpop.f32.mrf.mxu1  ;;  %v550_v46 = vadd.f32 %v831_v38, %v1282_v37 }
 0x101   :  { %v833_v34 = vpop.f32.mrf.mxu0  ;;  %v542_v20 = vadd.f32 %v825_v29, %v1282_v37 }
 0x102   :  { %v879_v36 = vpop.f32.mrf.mxu1  ;;  %v834_v48 = vadd.f32 %v833_v34, %v832_v32  ;;  %v622_v61 = vadd.f32 %v877_v47, %v550_v46  ;;  %v606_v32 = vadd.f32 %v865_v4, %v534_v3 }
 0x103   :  { %v835_v39 = vpop.f32.mrf.mxu0  ;;  %v880_v58 = vadd.f32 %v879_v36, %v878_v33 }
 0x104   :  { %v881_v40 = vpop.f32.mrf.mxu1  ;;  %v553_v57 = vadd.f32 %v834_v48, %v1282_v37 }
 0x105   :  { %v836_v41 = vpop.f32.mrf.mxu0 }
 0x106   :  { %v882_v45 = vpop.f32.mrf.mxu1  ;;  %v837_v59 = vadd.f32 %v836_v41, %v835_v39  ;;  %v625_v12 = vadd.f32 %v880_v58, %v553_v57  ;;  %v609_v39 = vadd.f32 %v868_v13, %v537_v18 }
 0x107   :  { %v838_v49 = vpop.f32.mrf.mxu0  ;;  %v883_v9 = vadd.f32 %v882_v45, %v881_v40  ;;  %v828_v40 = vadd.f32 %v1275_v26, %v1271_v24  ;;  %v614_v26 = vadd.f32 %v871_v22, %v542_v20 }
 0x108   :  { %v884_v50 = vpop.f32.mrf.mxu1  ;;  %v558_v8 = vadd.f32 %v837_v59, %v1282_v37 }
 0x109   :  { %v839_v51 = vpop.f32.mrf.mxu0  ;;  %v545_v21 = vadd.f32 %v828_v40, %v1282_v37 }
 0x10a   :  { %v885_v55 = vpop.f32.mrf.mxu1  ;;  %v630_v35 = vadd.f32 %v883_v9, %v558_v8 }
 0x10b   :  { %v669_v60 = vpop.f32.mrf.mxu0  ;;  %v617_v53 = vadd.f32 %v874_v23, %v545_v21 }
 0x10c   :  { %v670_v62 = vadd.f32 %v669_v60, %v598_v56  ;;  %v693_v63 = vpop.f32.mrf.mxu1 }
 0x10d   :  { %v694_v1 = vadd.f32 %v693_v63, %v622_v61  ;;  %v918_v2 = vpop.f32.mrf.mxu0 }
 0x10e   :  { %v707_v5 = vmax.f32 %v670_v62, 0.0  ;;  %v930_v6 = vpop.f32.mrf.mxu1 }
 0x10f   :  { %v713_v10 = vmax.f32 %v694_v1, 0.0  ;;  %v672_v11 = vpop.f32.mrf.mxu0 }
 0x110   :  { %716 = vst [vmem:[%s1333_s3] sm:$0xff] %v707_v5  ;;  %v673_v14 = vadd.f32 %v672_v11, %v601_v7  ;;  %v696_v16 = vpop.f32.mrf.mxu1 }
 0x111   :  { %722 = vst [vmem:[%s1333_s3 + $0x30] sm:$0xff] %v713_v10  ;;  %v697_v15 = vadd.f32 %v696_v16, %v625_v12  ;;  %v919_v28 = vpop.f32.mrf.mxu0 }
 0x112   :  { %v708_v30 = vmax.f32 %v673_v14, 0.0  ;;  %v931_v31 = vpop.f32.mrf.mxu1 }
 0x113   :  { %v714_v33 = vmax.f32 %v697_v15, 0.0  ;;  %v677_v34 = vpop.f32.mrf.mxu0 }
 0x114   :  { %717 = vst [vmem:[%s1333_s3 + $0x8] sm:$0xff] %v708_v30  ;;  %v678_v17 = vadd.f32 %v677_v34, %v606_v32  ;;  %v701_v19 = vpop.f32.mrf.mxu1 }
 0x115   :  { %723 = vst [vmem:[%s1333_s3 + $0x38] sm:$0xff] %v714_v33  ;;  %v702_v36 = vadd.f32 %v701_v19, %v630_v35  ;;  %v922_v38 = vpop.f32.mrf.mxu0 }
 0x116   :  { %v709_v41 = vmax.f32 %v678_v17, 0.0  ;;  %v934_v42 = vpop.f32.mrf.mxu1 }
 0x117   :  { %v715_v43 = vmax.f32 %v702_v36, 0.0  ;;  %v680_v44 = vpop.f32.mrf.mxu0 }
 0x118   :  { %718 = vst [vmem:[%s1333_s3 + $0x10] sm:$0xff] %v709_v41  ;;  %v681_v45 = vadd.f32 %v680_v44, %v609_v39  ;;  %v704_v46 = vpop.f32.mrf.mxu1 }
 0x119   :  { %724 = vst [vmem:[%s1333_s3 + $0x40] sm:$0xff] %v715_v43  ;;  %v923_v47 = vpop.f32.mrf.mxu0 }
 0x11a   :  { %v710_v24 = vmax.f32 %v681_v45, 0.0  ;;  %v935_v48 = vpop.f32.mrf.mxu1 }
 0x11b   :  { %v685_v49 = vpop.f32.mrf.mxu0 }
 0x11c   :  { %719 = vst [vmem:[%s1333_s3 + $0x18] sm:$0xff] %v710_v24  ;;  %v686_v50 = vadd.f32 %v685_v49, %v614_v26 }
 0x11d   :  { %v926_v51 = vpop.f32.mrf.mxu0 }
 0x11e   :  { %v711_v52 = vmax.f32 %v686_v50, 0.0 }
 0x11f   :  { %v688_v54 = vpop.f32.mrf.mxu0 }
 0x120   :  { %720 = vst [vmem:[%s1333_s3 + $0x20] sm:$0xff] %v711_v52  ;;  %v689_v37 = vadd.f32 %v688_v54, %v617_v53 }
 0x121   :  { %v927_v55 = vpop.f32.mrf.mxu0 }
 0x122   :  { %v712_v25 = vmax.f32 %v689_v37, 0.0 }
 0x124   :  { %721 = vst [vmem:[%s1333_s3 + $0x28] sm:$0xff] %v712_v25 }

</bundles_post_ra>
